<compile_context>
chip_gen: v5e
topology: v5e:2x2
jax: 0.10.0
libtpu: 0.0.40
codegen_flags: <defaults>
</compile_context>

<pallas_src>
import math

import jax
import jax.numpy as jnp
from jax.experimental import pallas as pl
from jax.experimental.pallas import tpu as pltpu

# ----------------------------- small synthetic config -----------------------------
B = 2
T = 512                       # waveform length
HOP = 64                      # analysis hop == ISTFT hop
L = T // HOP + 1              # 9 frames (center-style framing)
C_FEAT = 32                   # feature dim produced by the feature extractor
D = 64                        # backbone hidden dim
I_DIM = 128                   # ConvNeXt MLP intermediate dim
N_LAYERS = 2                  # number of ConvNeXt blocks
KSIZE = 7                     # conv kernel size
PAD = KSIZE // 2
N_FFT = 4 * HOP               # 256
N_FREQ = N_FFT // 2 + 1       # 129
NF_PAD = 256                  # freq dim zero-padded to a lane-aligned width
R = N_FFT // HOP              # 4 hop-quarters per ISTFT frame
OLA_ROWS = L + R - 1          # 12 untrimmed hop rows per batch element
PAD_HOPS = (N_FFT // 2) // HOP  # 2 hop rows trimmed from each side (center framing)
OUT_HOPS = T // HOP           # 8 hop rows kept
EPS = 1e-6
LOG_MAG_MAX = math.log(1e2)   # clamp mag in log space (no transient +inf)

# row layout of the packed (N_VECS_D, D) vector blob
ROW_EMB_B, ROW_EMB_G, ROW_EMB_BETA, ROW_FIN_G, ROW_FIN_B, ROW_LAYER0 = 0, 1, 2, 3, 4, 5
N_VECS_D = ROW_LAYER0 + 5 * N_LAYERS       # per layer: dw_b, ln_g, ln_b, b2, gs


def _layer_norm(x, g, b):
    mean = jnp.mean(x, axis=-1, keepdims=True)
    var = jnp.mean((x - mean) ** 2, axis=-1, keepdims=True)
    return (x - mean) * jax.lax.rsqrt(var + EPS) * g + b


def _row(ref, r, width=None):
    """Load one (1, width) row from a packed 2-D parameter blob."""
    if width is None:
        return ref[pl.ds(r, 1), :]
    return ref[pl.ds(r, 1), pl.ds(0, width)]


# ------------------------------- fused forward kernel -------------------------------
def vocos_fused_kernel(
    frames_ref,                # (B, L, HOP)              f32
    fe_w_ref,                  # (HOP, C_FEAT)            bf16
    embed_w_ref,               # (KSIZE, C_FEAT, D)       bf16
    dw_w_ref,                  # (N_LAYERS, KSIZE, D)     f32  (elementwise, stays f32)
    w1_ref,                    # (N_LAYERS, D, I_DIM)     bf16
    w2_ref,                    # (N_LAYERS, I_DIM, D)     bf16
    w_head_ref,                # (D, 2*NF_PAD)            bf16  [mag | phase], zero-padded
    basis_ref,                 # (2*R, NF_PAD, HOP)       bf16  per-quarter windowed irfft basis
    vecs_d_ref,                # (N_VECS_D, D)            f32  packed D-wide vectors
    vecs_i_ref,                # (N_LAYERS+1, I_DIM)      f32  b1 rows + fe_b (zero-padded)
    b_head_ref,                # (1, 2*NF_PAD)            f32
    inv_env_ref,               # (OUT_HOPS, HOP)          f32  trimmed 1/window-envelope
    o_ref,                     # (B, OUT_HOPS, HOP)       f32
    pad_cf_s,                  # VMEM (L+2*PAD, C_FEAT)   conv staging (feature dim)
    pad_d_s,                   # VMEM (L+2*PAD, D)        conv staging (hidden dim)
    x_s,                       # VMEM (B*L, D)            folded activations
    fq_s,                      # VMEM (B*L, HOP)          per-quarter ISTFT frames
    ola_s,                     # VMEM (B*OLA_ROWS, HOP)   overlap-add accumulator
):
    # packed small vectors
    fe_b = _row(vecs_i_ref, N_LAYERS, C_FEAT)
    emb_b = _row(vecs_d_ref, ROW_EMB_B)
    emb_g = _row(vecs_d_ref, ROW_EMB_G)
    emb_bt = _row(vecs_d_ref, ROW_EMB_BETA)
    fin_g = _row(vecs_d_ref, ROW_FIN_G)
    fin_b = _row(vecs_d_ref, ROW_FIN_B)

    # Zero the staging / accumulation buffers once per call (single grid step).
    pad_cf_s[...] = jnp.zeros_like(pad_cf_s)
    pad_d_s[...] = jnp.zeros_like(pad_d_s)
    ola_s[...] = jnp.zeros_like(ola_s)

    # ---- 1+2) feature extractor + embed Conv1d(C_FEAT->D, k=7,'same') per batch ----
    for b in range(B):
        feats_b = (
            jnp.dot(frames_ref[b].astype(jnp.bfloat16), fe_w_ref[...],
                    preferred_element_type=jnp.float32)
            + fe_b
        )
        pad_cf_s[pl.ds(PAD, L), :] = feats_b
        acc = jnp.zeros((L, D), jnp.float32)
        for k in range(KSIZE):
            acc = acc + jnp.dot(
                pad_cf_s[pl.ds(k, L), :].astype(jnp.bfloat16), embed_w_ref[k],
                preferred_element_type=jnp.float32)
        x_s[pl.ds(b * L, L), :] = acc + emb_b
    x = _layer_norm(x_s[...], emb_g, emb_bt)          # (B*L, D); folded from here on

    # ---- 3) ConvNeXt blocks (dwconv k=7 -> LN -> Linear -> GELU -> Linear -> scale -> +res)
    for li in range(N_LAYERS):
        base = ROW_LAYER0 + 5 * li
        dw_b = _row(vecs_d_ref, base + 0)
        ln_g = _row(vecs_d_ref, base + 1)
        ln_b = _row(vecs_d_ref, base + 2)
        b2 = _row(vecs_d_ref, base + 3)
        gs = _row(vecs_d_ref, base + 4)
        b1 = _row(vecs_i_ref, li)

        # depthwise conv (elementwise taps, f32) handled per batch element via staging
        x_s[...] = x
        wdw = dw_w_ref[li]                             # (KSIZE, D), loaded once per block
        for b in range(B):
            pad_d_s[pl.ds(PAD, L), :] = x_s[pl.ds(b * L, L), :]
            dacc = jnp.zeros((L, D), jnp.float32)
            for k in range(KSIZE):
                dacc = dacc + pad_d_s[pl.ds(k, L), :] * wdw[k:k + 1, :]
            x_s[pl.ds(b * L, L), :] = dacc
        h0 = x_s[...] + dw_b

        xn = _layer_norm(h0, ln_g, ln_b)
        h = jnp.dot(xn.astype(jnp.bfloat16), w1_ref[li],
                    preferred_element_type=jnp.float32) + b1
        # TODO(synk): PyTorch nn.GELU default is exact erf; tanh approximation kept here.
        h = jax.nn.gelu(h)
        h = jnp.dot(h.astype(jnp.bfloat16), w2_ref[li],
                    preferred_element_type=jnp.float32) + b2
        x = x + gs * h

    # ---- 4) head: final LN -> fused lane-aligned [mag | phase] projection ----
    xf = _layer_norm(x, fin_g, fin_b)
    proj = (
        jnp.dot(xf.astype(jnp.bfloat16), w_head_ref[...],
                preferred_element_type=jnp.float32)
        + b_head_ref[...]
    )
    mag_lin = proj[:, :NF_PAD]                         # lane-aligned slice at 256
    phase = proj[:, NF_PAD:]
    mag = jnp.exp(jnp.minimum(mag_lin, LOG_MAG_MAX))   # clamp before exp (no +inf)
    real = (mag * jnp.cos(phase)).astype(jnp.bfloat16)
    imag = (mag * jnp.sin(phase)).astype(jnp.bfloat16)

    # ---- 5) windowed ISTFT (per hop-quarter basis) + fused overlap-add ----
    # Hann window and irfft coefficients are pre-folded into basis_ref; padded freq rows
    # are zero, so the padded mag/phase lanes contribute nothing.
    for j in range(R):
        fq_s[...] = (
            jnp.dot(real, basis_ref[2 * j], preferred_element_type=jnp.float32)
            + jnp.dot(imag, basis_ref[2 * j + 1], preferred_element_type=jnp.float32)
        )
        for b in range(B):
            dst = b * OLA_ROWS + j
            ola_s[pl.ds(dst, L), :] = (
                ola_s[pl.ds(dst, L), :] + fq_s[pl.ds(b * L, L), :]
            )

    # ---- 6) window-envelope normalization + center trim ----
    for b in range(B):
        start = b * OLA_ROWS + PAD_HOPS
        o_ref[b] = ola_s[pl.ds(start, OUT_HOPS), :] * inv_env_ref[...]


# ------------------------------- pallas_call wrapper -------------------------------
def vocos_fused(frames_in, p):
    """frames_in: (B, L, HOP) -> (B, OUT_HOPS, HOP) normalized, trimmed audio hops."""
    return pl.pallas_call(
        vocos_fused_kernel,
        out_shape=jax.ShapeDtypeStruct((B, OUT_HOPS, HOP), jnp.float32),
        scratch_shapes=[
            pltpu.VMEM((L + 2 * PAD, C_FEAT), jnp.float32),
            pltpu.VMEM((L + 2 * PAD, D), jnp.float32),
            pltpu.VMEM((B * L, D), jnp.float32),
            pltpu.VMEM((B * L, HOP), jnp.float32),
            pltpu.VMEM((B * OLA_ROWS, HOP), jnp.float32),
        ],
    )(
        frames_in,
        p["fe_w"], p["embed_w"], p["dw_w"], p["w1"], p["w2"],
        p["w_head"], p["basis_q"], p["vecs_d"], p["vecs_i"], p["b_head"], p["inv_env"],
    )


# ----------------------------------- JAX glue ---------------------------------------
@jax.jit
def vocos_forward(audio_input, p):
    """audio_input: (B, T) -> reconstructed audio (B, T)."""
    a = jnp.pad(audio_input, ((0, 0), (HOP // 2, HOP // 2)))
    frames_in = a.reshape(audio_input.shape[0], L, HOP)        # center framing
    hops = vocos_fused(frames_in, p)                           # (B, OUT_HOPS, HOP)
    return hops.reshape(audio_input.shape[0], T)               # contiguous, free reshape


# ----------------------------- deterministic parameters -----------------------------
def init_params(key):
    keys = jax.random.split(key, 16)
    it = iter(range(16))

    def rnd(shape, scale=0.05):
        return scale * jax.random.normal(keys[next(it)], shape, jnp.float32)

    # raw (unpacked) parameters
    fe_w = rnd((HOP, C_FEAT))
    fe_b = rnd((1, C_FEAT))
    embed_w = rnd((KSIZE, C_FEAT, D))
    embed_b = rnd((1, D))
    dw_w = rnd((N_LAYERS, KSIZE, D))
    dw_b = rnd((N_LAYERS, D))
    w1 = rnd((N_LAYERS, D, I_DIM))
    b1 = rnd((N_LAYERS, I_DIM))
    w2 = rnd((N_LAYERS, I_DIM, D))
    b2 = rnd((N_LAYERS, D))
    wp_mag = rnd((D, N_FREQ))
    bp_mag = rnd((1, N_FREQ))
    wp_ph = rnd((D, N_FREQ))
    bp_ph = rnd((1, N_FREQ))

    p = {}
    # bf16 matmul weights (f32 accumulation inside the kernel)
    p["fe_w"] = fe_w.astype(jnp.bfloat16)
    p["embed_w"] = embed_w.astype(jnp.bfloat16)
    p["w1"] = w1.astype(jnp.bfloat16)
    p["w2"] = w2.astype(jnp.bfloat16)
    p["dw_w"] = dw_w                                   # elementwise taps stay f32

    # fused, lane-aligned head projection: columns [mag(129) | pad | phase(129) | pad]
    w_head = jnp.zeros((D, 2 * NF_PAD), jnp.float32)
    w_head = w_head.at[:, :N_FREQ].set(wp_mag)
    w_head = w_head.at[:, NF_PAD:NF_PAD + N_FREQ].set(wp_ph)
    p["w_head"] = w_head.astype(jnp.bfloat16)
    b_head = jnp.zeros((1, 2 * NF_PAD), jnp.float32)
    b_head = b_head.at[:, :N_FREQ].set(bp_mag)
    b_head = b_head.at[:, NF_PAD:NF_PAD + N_FREQ].set(bp_ph)
    p["b_head"] = b_head

    # packed D-wide vector blob
    vecs_d = jnp.zeros((N_VECS_D, D), jnp.float32)
    vecs_d = vecs_d.at[ROW_EMB_B].set(embed_b[0])
    vecs_d = vecs_d.at[ROW_EMB_G].set(1.0)             # embed LN gamma
    vecs_d = vecs_d.at[ROW_EMB_BETA].set(0.0)          # embed LN beta
    vecs_d = vecs_d.at[ROW_FIN_G].set(1.0)             # final LN gamma
    vecs_d = vecs_d.at[ROW_FIN_B].set(0.0)             # final LN beta
    for li in range(N_LAYERS):
        base = ROW_LAYER0 + 5 * li
        vecs_d = vecs_d.at[base + 0].set(dw_b[li])
        vecs_d = vecs_d.at[base + 1].set(1.0)          # block LN gamma
        vecs_d = vecs_d.at[base + 2].set(0.0)          # block LN beta
        vecs_d = vecs_d.at[base + 3].set(b2[li])
        vecs_d = vecs_d.at[base + 4].set(0.1)          # layer-scale gamma
    p["vecs_d"] = vecs_d

    # packed I_DIM-wide blob: b1 per layer + fe_b (zero-padded to I_DIM)
    vecs_i = jnp.zeros((N_LAYERS + 1, I_DIM), jnp.float32)
    for li in range(N_LAYERS):
        vecs_i = vecs_i.at[li].set(b1[li])
    vecs_i = vecs_i.at[N_LAYERS, :C_FEAT].set(fe_b[0])
    p["vecs_i"] = vecs_i

    # fixed irfft DFT basis with periodic Hann window pre-folded in, split per hop-quarter,
    # freq rows zero-padded to NF_PAD, stored bf16 for the MXU.
    n = jnp.arange(N_FFT, dtype=jnp.float32)
    k = jnp.arange(N_FREQ, dtype=jnp.float32)
    ang = 2.0 * math.pi * k[:, None] * n[None, :] / N_FFT
    coef = jnp.where((k == 0) | (k == N_FFT // 2), 1.0, 2.0)[:, None]
    win = 0.5 - 0.5 * jnp.cos(2.0 * math.pi * n / N_FFT)
    br = coef * jnp.cos(ang) / N_FFT * win[None, :]                    # (N_FREQ, N_FFT)
    bi = -coef * jnp.sin(ang) / N_FFT * win[None, :]
    br_pad = jnp.zeros((NF_PAD, N_FFT), jnp.float32).at[:N_FREQ].set(br)
    bi_pad = jnp.zeros((NF_PAD, N_FFT), jnp.float32).at[:N_FREQ].set(bi)
    quarters = []
    for j in range(R):
        quarters.append(br_pad[:, j * HOP:(j + 1) * HOP])
        quarters.append(bi_pad[:, j * HOP:(j + 1) * HOP])
    p["basis_q"] = jnp.stack(quarters, axis=0).astype(jnp.bfloat16)    # (2*R, NF_PAD, HOP)

    # precomputed OLA window-envelope normalization, already trimmed to the output span
    w2sq = (win ** 2).reshape(R, HOP)
    env = jnp.zeros((OLA_ROWS, HOP), jnp.float32)
    for j in range(R):
        env = env + jnp.pad(
            jnp.broadcast_to(w2sq[j], (L, HOP)), ((j, R - 1 - j), (0, 0)))
    p["inv_env"] = 1.0 / jnp.maximum(env[PAD_HOPS:PAD_HOPS + OUT_HOPS], 1e-11)
    return p


# -------------------------------------- main ----------------------------------------
if __name__ == "__main__":
    key = jax.random.PRNGKey(0)
    k_in, k_par = jax.random.split(key)
    audio_input = jax.random.normal(k_in, (B, T), jnp.float32)
    params = init_params(k_par)

    audio_output = vocos_forward(audio_input, params)
    audio_output = jax.block_until_ready(audio_output)

    assert audio_output.shape == (B, T), audio_output.shape
    assert audio_output.dtype == jnp.float32
    assert bool(jnp.all(jnp.isfinite(audio_output)))
    print("KERNEL_OK")
</pallas_src>

<mosaic_0001>
module attributes {stable_mosaic.version = 11 : i64} {
  func.func @vocos_fused_kernel(%arg0: memref<2x9x64xf32, #tpu.memory_space<vmem>>, %arg1: memref<64x32xbf16, #tpu.memory_space<vmem>>, %arg2: memref<7x32x64xbf16, #tpu.memory_space<vmem>>, %arg3: memref<2x7x64xf32, #tpu.memory_space<vmem>>, %arg4: memref<2x64x128xbf16, #tpu.memory_space<vmem>>, %arg5: memref<2x128x64xbf16, #tpu.memory_space<vmem>>, %arg6: memref<64x512xbf16, #tpu.memory_space<vmem>>, %arg7: memref<8x256x64xbf16, #tpu.memory_space<vmem>>, %arg8: memref<15x64xf32, #tpu.memory_space<vmem>>, %arg9: memref<3x128xf32, #tpu.memory_space<vmem>>, %arg10: memref<1x512xf32, #tpu.memory_space<vmem>>, %arg11: memref<8x64xf32, #tpu.memory_space<vmem>>, %arg12: memref<2x8x64xf32, #tpu.memory_space<vmem>>, %arg13: memref<15x32xf32, #tpu.memory_space<vmem>>, %arg14: memref<15x64xf32, #tpu.memory_space<vmem>>, %arg15: memref<18x64xf32, #tpu.memory_space<vmem>>, %arg16: memref<18x64xf32, #tpu.memory_space<vmem>>, %arg17: memref<24x64xf32, #tpu.memory_space<vmem>>) attributes {dimension_semantics = [], scalar_prefetch = 0 : i64, scratch_operands = 5 : i64, tpu.core_type = #tpu.core_type<tc>} {
    %c2 = arith.constant 2 : index
    %c0 = arith.constant 0 : index
    %0 = vector.load %arg9[%c2, %c0] : memref<3x128xf32, #tpu.memory_space<vmem>>, vector<1x32xf32>
    %c0_0 = arith.constant 0 : index
    %c0_1 = arith.constant 0 : index
    %1 = vector.load %arg8[%c0_0, %c0_1] : memref<15x64xf32, #tpu.memory_space<vmem>>, vector<1x64xf32>
    %c1 = arith.constant 1 : index
    %c0_2 = arith.constant 0 : index
    %2 = vector.load %arg8[%c1, %c0_2] : memref<15x64xf32, #tpu.memory_space<vmem>>, vector<1x64xf32>
    %c2_3 = arith.constant 2 : index
    %c0_4 = arith.constant 0 : index
    %3 = vector.load %arg8[%c2_3, %c0_4] : memref<15x64xf32, #tpu.memory_space<vmem>>, vector<1x64xf32>
    %c3 = arith.constant 3 : index
    %c0_5 = arith.constant 0 : index
    %4 = vector.load %arg8[%c3, %c0_5] : memref<15x64xf32, #tpu.memory_space<vmem>>, vector<1x64xf32>
    %c4 = arith.constant 4 : index
    %c0_6 = arith.constant 0 : index
    %5 = vector.load %arg8[%c4, %c0_6] : memref<15x64xf32, #tpu.memory_space<vmem>>, vector<1x64xf32>
    %cst = arith.constant 0.000000e+00 : f32
    %6 = vector.broadcast %cst : f32 to vector<15x32xf32>
    %c0_7 = arith.constant 0 : index
    %c0_8 = arith.constant 0 : index
    %7 = vector.load %arg13[%c0_7, %c0_8] : memref<15x32xf32, #tpu.memory_space<vmem>>, vector<15x32xf32>
    tpu.vector_store %arg13[%c0_7, %c0_8], %6 {strides = array<i32>} : memref<15x32xf32, #tpu.memory_space<vmem>>, vector<15x32xf32>,
    %cst_9 = arith.constant 0.000000e+00 : f32
    %8 = vector.broadcast %cst_9 : f32 to vector<15x64xf32>
    %c0_10 = arith.constant 0 : index
    %c0_11 = arith.constant 0 : index
    %9 = vector.load %arg14[%c0_10, %c0_11] : memref<15x64xf32, #tpu.memory_space<vmem>>, vector<15x64xf32>
    tpu.vector_store %arg14[%c0_10, %c0_11], %8 {strides = array<i32>} : memref<15x64xf32, #tpu.memory_space<vmem>>, vector<15x64xf32>,
    %cst_12 = arith.constant 0.000000e+00 : f32
    %10 = vector.broadcast %cst_12 : f32 to vector<24x64xf32>
    %c0_13 = arith.constant 0 : index
    %c0_14 = arith.constant 0 : index
    %11 = vector.load %arg17[%c0_13, %c0_14] : memref<24x64xf32, #tpu.memory_space<vmem>>, vector<24x64xf32>
    tpu.vector_store %arg17[%c0_13, %c0_14], %10 {strides = array<i32>} : memref<24x64xf32, #tpu.memory_space<vmem>>, vector<24x64xf32>,
    %c0_15 = arith.constant 0 : index
    %c0_16 = arith.constant 0 : index
    %c0_17 = arith.constant 0 : index
    %12 = vector.load %arg0[%c0_15, %c0_16, %c0_17] : memref<2x9x64xf32, #tpu.memory_space<vmem>>, vector<1x9x64xf32>
    %13 = vector.shape_cast %12 : vector<1x9x64xf32> to vector<9x64xf32>
    %14 = arith.truncf %13 : vector<9x64xf32> to vector<9x64xbf16>
    %c0_18 = arith.constant 0 : index
    %c0_19 = arith.constant 0 : index
    %15 = vector.load %arg1[%c0_18, %c0_19] : memref<64x32xbf16, #tpu.memory_space<vmem>>, vector<64x32xbf16>
    %cst_20 = arith.constant dense<0.000000e+00> : vector<9x32xf32>
    %16 = tpu.matmul %14, %15, %cst_20 {dimension_numbers = #tpu.dot_dimension_numbers<[1], [0], [0], [1], [0, 0, 1, 1], [], []>} : vector<9x64xbf16>, vector<64x32xbf16>, vector<9x32xf32> -> vector<9x32xf32>
    %17 = vector.broadcast %0 : vector<1x32xf32> to vector<9x32xf32>
    %18 = arith.addf %16, %17 : vector<9x32xf32>
    %c3_21 = arith.constant 3 : index
    %c0_22 = arith.constant 0 : index
    %19 = vector.load %arg13[%c3_21, %c0_22] : memref<15x32xf32, #tpu.memory_space<vmem>>, vector<9x32xf32>
    tpu.vector_store %arg13[%c3_21, %c0_22], %18 {strides = array<i32>} : memref<15x32xf32, #tpu.memory_space<vmem>>, vector<9x32xf32>,
    %cst_23 = arith.constant 0.000000e+00 : f32
    %20 = vector.broadcast %cst_23 : f32 to vector<9x64xf32>
    %c0_24 = arith.constant 0 : index
    %c0_25 = arith.constant 0 : index
    %21 = vector.load %arg13[%c0_24, %c0_25] : memref<15x32xf32, #tpu.memory_space<vmem>>, vector<9x32xf32>
    %22 = arith.truncf %21 : vector<9x32xf32> to vector<9x32xbf16>
    %c0_26 = arith.constant 0 : index
    %c0_27 = arith.constant 0 : index
    %c0_28 = arith.constant 0 : index
    %23 = vector.load %arg2[%c0_26, %c0_27, %c0_28] : memref<7x32x64xbf16, #tpu.memory_space<vmem>>, vector<1x32x64xbf16>
    %24 = vector.shape_cast %23 : vector<1x32x64xbf16> to vector<32x64xbf16>
    %cst_29 = arith.constant dense<0.000000e+00> : vector<9x64xf32>
    %25 = tpu.matmul %22, %24, %cst_29 {dimension_numbers = #tpu.dot_dimension_numbers<[1], [0], [0], [1], [0, 0, 1, 1], [], []>} : vector<9x32xbf16>, vector<32x64xbf16>, vector<9x64xf32> -> vector<9x64xf32>
    %26 = arith.addf %20, %25 : vector<9x64xf32>
    %c1_30 = arith.constant 1 : index
    %c0_31 = arith.constant 0 : index
    %27 = vector.load %arg13[%c1_30, %c0_31] : memref<15x32xf32, #tpu.memory_space<vmem>>, vector<9x32xf32>
    %28 = arith.truncf %27 : vector<9x32xf32> to vector<9x32xbf16>
    %c1_32 = arith.constant 1 : index
    %c0_33 = arith.constant 0 : index
    %c0_34 = arith.constant 0 : index
    %29 = vector.load %arg2[%c1_32, %c0_33, %c0_34] : memref<7x32x64xbf16, #tpu.memory_space<vmem>>, vector<1x32x64xbf16>
    %30 = vector.shape_cast %29 : vector<1x32x64xbf16> to vector<32x64xbf16>
    %cst_35 = arith.constant dense<0.000000e+00> : vector<9x64xf32>
    %31 = tpu.matmul %28, %30, %cst_35 {dimension_numbers = #tpu.dot_dimension_numbers<[1], [0], [0], [1], [0, 0, 1, 1], [], []>} : vector<9x32xbf16>, vector<32x64xbf16>, vector<9x64xf32> -> vector<9x64xf32>
    %32 = arith.addf %26, %31 : vector<9x64xf32>
    %c2_36 = arith.constant 2 : index
    %c0_37 = arith.constant 0 : index
    %33 = vector.load %arg13[%c2_36, %c0_37] : memref<15x32xf32, #tpu.memory_space<vmem>>, vector<9x32xf32>
    %34 = arith.truncf %33 : vector<9x32xf32> to vector<9x32xbf16>
    %c2_38 = arith.constant 2 : index
    %c0_39 = arith.constant 0 : index
    %c0_40 = arith.constant 0 : index
    %35 = vector.load %arg2[%c2_38, %c0_39, %c0_40] : memref<7x32x64xbf16, #tpu.memory_space<vmem>>, vector<1x32x64xbf16>
    %36 = vector.shape_cast %35 : vector<1x32x64xbf16> to vector<32x64xbf16>
    %cst_41 = arith.constant dense<0.000000e+00> : vector<9x64xf32>
    %37 = tpu.matmul %34, %36, %cst_41 {dimension_numbers = #tpu.dot_dimension_numbers<[1], [0], [0], [1], [0, 0, 1, 1], [], []>} : vector<9x32xbf16>, vector<32x64xbf16>, vector<9x64xf32> -> vector<9x64xf32>
    %38 = arith.addf %32, %37 : vector<9x64xf32>
    %c3_42 = arith.constant 3 : index
    %c0_43 = arith.constant 0 : index
    %39 = vector.load %arg13[%c3_42, %c0_43] : memref<15x32xf32, #tpu.memory_space<vmem>>, vector<9x32xf32>
    %40 = arith.truncf %39 : vector<9x32xf32> to vector<9x32xbf16>
    %c3_44 = arith.constant 3 : index
    %c0_45 = arith.constant 0 : index
    %c0_46 = arith.constant 0 : index
    %41 = vector.load %arg2[%c3_44, %c0_45, %c0_46] : memref<7x32x64xbf16, #tpu.memory_space<vmem>>, vector<1x32x64xbf16>
    %42 = vector.shape_cast %41 : vector<1x32x64xbf16> to vector<32x64xbf16>
    %cst_47 = arith.constant dense<0.000000e+00> : vector<9x64xf32>
    %43 = tpu.matmul %40, %42, %cst_47 {dimension_numbers = #tpu.dot_dimension_numbers<[1], [0], [0], [1], [0, 0, 1, 1], [], []>} : vector<9x32xbf16>, vector<32x64xbf16>, vector<9x64xf32> -> vector<9x64xf32>
    %44 = arith.addf %38, %43 : vector<9x64xf32>
    %c4_48 = arith.constant 4 : index
    %c0_49 = arith.constant 0 : index
    %45 = vector.load %arg13[%c4_48, %c0_49] : memref<15x32xf32, #tpu.memory_space<vmem>>, vector<9x32xf32>
    %46 = arith.truncf %45 : vector<9x32xf32> to vector<9x32xbf16>
    %c4_50 = arith.constant 4 : index
    %c0_51 = arith.constant 0 : index
    %c0_52 = arith.constant 0 : index
    %47 = vector.load %arg2[%c4_50, %c0_51, %c0_52] : memref<7x32x64xbf16, #tpu.memory_space<vmem>>, vector<1x32x64xbf16>
    %48 = vector.shape_cast %47 : vector<1x32x64xbf16> to vector<32x64xbf16>
    %cst_53 = arith.constant dense<0.000000e+00> : vector<9x64xf32>
    %49 = tpu.matmul %46, %48, %cst_53 {dimension_numbers = #tpu.dot_dimension_numbers<[1], [0], [0], [1], [0, 0, 1, 1], [], []>} : vector<9x32xbf16>, vector<32x64xbf16>, vector<9x64xf32> -> vector<9x64xf32>
    %50 = arith.addf %44, %49 : vector<9x64xf32>
    %c5 = arith.constant 5 : index
    %c0_54 = arith.constant 0 : index
    %51 = vector.load %arg13[%c5, %c0_54] : memref<15x32xf32, #tpu.memory_space<vmem>>, vector<9x32xf32>
    %52 = arith.truncf %51 : vector<9x32xf32> to vector<9x32xbf16>
    %c5_55 = arith.constant 5 : index
    %c0_56 = arith.constant 0 : index
    %c0_57 = arith.constant 0 : index
    %53 = vector.load %arg2[%c5_55, %c0_56, %c0_57] : memref<7x32x64xbf16, #tpu.memory_space<vmem>>, vector<1x32x64xbf16>
    %54 = vector.shape_cast %53 : vector<1x32x64xbf16> to vector<32x64xbf16>
    %cst_58 = arith.constant dense<0.000000e+00> : vector<9x64xf32>
    %55 = tpu.matmul %52, %54, %cst_58 {dimension_numbers = #tpu.dot_dimension_numbers<[1], [0], [0], [1], [0, 0, 1, 1], [], []>} : vector<9x32xbf16>, vector<32x64xbf16>, vector<9x64xf32> -> vector<9x64xf32>
    %56 = arith.addf %50, %55 : vector<9x64xf32>
    %c6 = arith.constant 6 : index
    %c0_59 = arith.constant 0 : index
    %57 = vector.load %arg13[%c6, %c0_59] : memref<15x32xf32, #tpu.memory_space<vmem>>, vector<9x32xf32>
    %58 = arith.truncf %57 : vector<9x32xf32> to vector<9x32xbf16>
    %c6_60 = arith.constant 6 : index
    %c0_61 = arith.constant 0 : index
    %c0_62 = arith.constant 0 : index
    %59 = vector.load %arg2[%c6_60, %c0_61, %c0_62] : memref<7x32x64xbf16, #tpu.memory_space<vmem>>, vector<1x32x64xbf16>
    %60 = vector.shape_cast %59 : vector<1x32x64xbf16> to vector<32x64xbf16>
    %cst_63 = arith.constant dense<0.000000e+00> : vector<9x64xf32>
    %61 = tpu.matmul %58, %60, %cst_63 {dimension_numbers = #tpu.dot_dimension_numbers<[1], [0], [0], [1], [0, 0, 1, 1], [], []>} : vector<9x32xbf16>, vector<32x64xbf16>, vector<9x64xf32> -> vector<9x64xf32>
    %62 = arith.addf %56, %61 : vector<9x64xf32>
    %63 = vector.broadcast %1 : vector<1x64xf32> to vector<9x64xf32>
    %64 = arith.addf %62, %63 : vector<9x64xf32>
    %c0_64 = arith.constant 0 : index
    %c0_65 = arith.constant 0 : index
    %65 = vector.load %arg15[%c0_64, %c0_65] : memref<18x64xf32, #tpu.memory_space<vmem>>, vector<9x64xf32>
    tpu.vector_store %arg15[%c0_64, %c0_65], %64 {strides = array<i32>} : memref<18x64xf32, #tpu.memory_space<vmem>>, vector<9x64xf32>,
    %c1_66 = arith.constant 1 : index
    %c0_67 = arith.constant 0 : index
    %c0_68 = arith.constant 0 : index
    %66 = vector.load %arg0[%c1_66, %c0_67, %c0_68] : memref<2x9x64xf32, #tpu.memory_space<vmem>>, vector<1x9x64xf32>
    %67 = vector.shape_cast %66 : vector<1x9x64xf32> to vector<9x64xf32>
    %68 = arith.truncf %67 : vector<9x64xf32> to vector<9x64xbf16>
    %c0_69 = arith.constant 0 : index
    %c0_70 = arith.constant 0 : index
    %69 = vector.load %arg1[%c0_69, %c0_70] : memref<64x32xbf16, #tpu.memory_space<vmem>>, vector<64x32xbf16>
    %cst_71 = arith.constant dense<0.000000e+00> : vector<9x32xf32>
    %70 = tpu.matmul %68, %69, %cst_71 {dimension_numbers = #tpu.dot_dimension_numbers<[1], [0], [0], [1], [0, 0, 1, 1], [], []>} : vector<9x64xbf16>, vector<64x32xbf16>, vector<9x32xf32> -> vector<9x32xf32>
    %71 = vector.broadcast %0 : vector<1x32xf32> to vector<9x32xf32>
    %72 = arith.addf %70, %71 : vector<9x32xf32>
    %c3_72 = arith.constant 3 : index
    %c0_73 = arith.constant 0 : index
    %73 = vector.load %arg13[%c3_72, %c0_73] : memref<15x32xf32, #tpu.memory_space<vmem>>, vector<9x32xf32>
    tpu.vector_store %arg13[%c3_72, %c0_73], %72 {strides = array<i32>} : memref<15x32xf32, #tpu.memory_space<vmem>>, vector<9x32xf32>,
    %cst_74 = arith.constant 0.000000e+00 : f32
    %74 = vector.broadcast %cst_74 : f32 to vector<9x64xf32>
    %c0_75 = arith.constant 0 : index
    %c0_76 = arith.constant 0 : index
    %75 = vector.load %arg13[%c0_75, %c0_76] : memref<15x32xf32, #tpu.memory_space<vmem>>, vector<9x32xf32>
    %76 = arith.truncf %75 : vector<9x32xf32> to vector<9x32xbf16>
    %c0_77 = arith.constant 0 : index
    %c0_78 = arith.constant 0 : index
    %c0_79 = arith.constant 0 : index
    %77 = vector.load %arg2[%c0_77, %c0_78, %c0_79] : memref<7x32x64xbf16, #tpu.memory_space<vmem>>, vector<1x32x64xbf16>
    %78 = vector.shape_cast %77 : vector<1x32x64xbf16> to vector<32x64xbf16>
    %cst_80 = arith.constant dense<0.000000e+00> : vector<9x64xf32>
    %79 = tpu.matmul %76, %78, %cst_80 {dimension_numbers = #tpu.dot_dimension_numbers<[1], [0], [0], [1], [0, 0, 1, 1], [], []>} : vector<9x32xbf16>, vector<32x64xbf16>, vector<9x64xf32> -> vector<9x64xf32>
    %80 = arith.addf %74, %79 : vector<9x64xf32>
    %c1_81 = arith.constant 1 : index
    %c0_82 = arith.constant 0 : index
    %81 = vector.load %arg13[%c1_81, %c0_82] : memref<15x32xf32, #tpu.memory_space<vmem>>, vector<9x32xf32>
    %82 = arith.truncf %81 : vector<9x32xf32> to vector<9x32xbf16>
    %c1_83 = arith.constant 1 : index
    %c0_84 = arith.constant 0 : index
    %c0_85 = arith.constant 0 : index
    %83 = vector.load %arg2[%c1_83, %c0_84, %c0_85] : memref<7x32x64xbf16, #tpu.memory_space<vmem>>, vector<1x32x64xbf16>
    %84 = vector.shape_cast %83 : vector<1x32x64xbf16> to vector<32x64xbf16>
    %cst_86 = arith.constant dense<0.000000e+00> : vector<9x64xf32>
    %85 = tpu.matmul %82, %84, %cst_86 {dimension_numbers = #tpu.dot_dimension_numbers<[1], [0], [0], [1], [0, 0, 1, 1], [], []>} : vector<9x32xbf16>, vector<32x64xbf16>, vector<9x64xf32> -> vector<9x64xf32>
    %86 = arith.addf %80, %85 : vector<9x64xf32>
    %c2_87 = arith.constant 2 : index
    %c0_88 = arith.constant 0 : index
    %87 = vector.load %arg13[%c2_87, %c0_88] : memref<15x32xf32, #tpu.memory_space<vmem>>, vector<9x32xf32>
    %88 = arith.truncf %87 : vector<9x32xf32> to vector<9x32xbf16>
    %c2_89 = arith.constant 2 : index
    %c0_90 = arith.constant 0 : index
    %c0_91 = arith.constant 0 : index
    %89 = vector.load %arg2[%c2_89, %c0_90, %c0_91] : memref<7x32x64xbf16, #tpu.memory_space<vmem>>, vector<1x32x64xbf16>
    %90 = vector.shape_cast %89 : vector<1x32x64xbf16> to vector<32x64xbf16>
    %cst_92 = arith.constant dense<0.000000e+00> : vector<9x64xf32>
    %91 = tpu.matmul %88, %90, %cst_92 {dimension_numbers = #tpu.dot_dimension_numbers<[1], [0], [0], [1], [0, 0, 1, 1], [], []>} : vector<9x32xbf16>, vector<32x64xbf16>, vector<9x64xf32> -> vector<9x64xf32>
    %92 = arith.addf %86, %91 : vector<9x64xf32>
    %c3_93 = arith.constant 3 : index
    %c0_94 = arith.constant 0 : index
    %93 = vector.load %arg13[%c3_93, %c0_94] : memref<15x32xf32, #tpu.memory_space<vmem>>, vector<9x32xf32>
    %94 = arith.truncf %93 : vector<9x32xf32> to vector<9x32xbf16>
    %c3_95 = arith.constant 3 : index
    %c0_96 = arith.constant 0 : index
    %c0_97 = arith.constant 0 : index
    %95 = vector.load %arg2[%c3_95, %c0_96, %c0_97] : memref<7x32x64xbf16, #tpu.memory_space<vmem>>, vector<1x32x64xbf16>
    %96 = vector.shape_cast %95 : vector<1x32x64xbf16> to vector<32x64xbf16>
    %cst_98 = arith.constant dense<0.000000e+00> : vector<9x64xf32>
    %97 = tpu.matmul %94, %96, %cst_98 {dimension_numbers = #tpu.dot_dimension_numbers<[1], [0], [0], [1], [0, 0, 1, 1], [], []>} : vector<9x32xbf16>, vector<32x64xbf16>, vector<9x64xf32> -> vector<9x64xf32>
    %98 = arith.addf %92, %97 : vector<9x64xf32>
    %c4_99 = arith.constant 4 : index
    %c0_100 = arith.constant 0 : index
    %99 = vector.load %arg13[%c4_99, %c0_100] : memref<15x32xf32, #tpu.memory_space<vmem>>, vector<9x32xf32>
    %100 = arith.truncf %99 : vector<9x32xf32> to vector<9x32xbf16>
    %c4_101 = arith.constant 4 : index
    %c0_102 = arith.constant 0 : index
    %c0_103 = arith.constant 0 : index
    %101 = vector.load %arg2[%c4_101, %c0_102, %c0_103] : memref<7x32x64xbf16, #tpu.memory_space<vmem>>, vector<1x32x64xbf16>
    %102 = vector.shape_cast %101 : vector<1x32x64xbf16> to vector<32x64xbf16>
    %cst_104 = arith.constant dense<0.000000e+00> : vector<9x64xf32>
    %103 = tpu.matmul %100, %102, %cst_104 {dimension_numbers = #tpu.dot_dimension_numbers<[1], [0], [0], [1], [0, 0, 1, 1], [], []>} : vector<9x32xbf16>, vector<32x64xbf16>, vector<9x64xf32> -> vector<9x64xf32>
    %104 = arith.addf %98, %103 : vector<9x64xf32>
    %c5_105 = arith.constant 5 : index
    %c0_106 = arith.constant 0 : index
    %105 = vector.load %arg13[%c5_105, %c0_106] : memref<15x32xf32, #tpu.memory_space<vmem>>, vector<9x32xf32>
    %106 = arith.truncf %105 : vector<9x32xf32> to vector<9x32xbf16>
    %c5_107 = arith.constant 5 : index
    %c0_108 = arith.constant 0 : index
    %c0_109 = arith.constant 0 : index
    %107 = vector.load %arg2[%c5_107, %c0_108, %c0_109] : memref<7x32x64xbf16, #tpu.memory_space<vmem>>, vector<1x32x64xbf16>
    %108 = vector.shape_cast %107 : vector<1x32x64xbf16> to vector<32x64xbf16>
    %cst_110 = arith.constant dense<0.000000e+00> : vector<9x64xf32>
    %109 = tpu.matmul %106, %108, %cst_110 {dimension_numbers = #tpu.dot_dimension_numbers<[1], [0], [0], [1], [0, 0, 1, 1], [], []>} : vector<9x32xbf16>, vector<32x64xbf16>, vector<9x64xf32> -> vector<9x64xf32>
    %110 = arith.addf %104, %109 : vector<9x64xf32>
    %c6_111 = arith.constant 6 : index
    %c0_112 = arith.constant 0 : index
    %111 = vector.load %arg13[%c6_111, %c0_112] : memref<15x32xf32, #tpu.memory_space<vmem>>, vector<9x32xf32>
    %112 = arith.truncf %111 : vector<9x32xf32> to vector<9x32xbf16>
    %c6_113 = arith.constant 6 : index
    %c0_114 = arith.constant 0 : index
    %c0_115 = arith.constant 0 : index
    %113 = vector.load %arg2[%c6_113, %c0_114, %c0_115] : memref<7x32x64xbf16, #tpu.memory_space<vmem>>, vector<1x32x64xbf16>
    %114 = vector.shape_cast %113 : vector<1x32x64xbf16> to vector<32x64xbf16>
    %cst_116 = arith.constant dense<0.000000e+00> : vector<9x64xf32>
    %115 = tpu.matmul %112, %114, %cst_116 {dimension_numbers = #tpu.dot_dimension_numbers<[1], [0], [0], [1], [0, 0, 1, 1], [], []>} : vector<9x32xbf16>, vector<32x64xbf16>, vector<9x64xf32> -> vector<9x64xf32>
    %116 = arith.addf %110, %115 : vector<9x64xf32>
    %117 = vector.broadcast %1 : vector<1x64xf32> to vector<9x64xf32>
    %118 = arith.addf %116, %117 : vector<9x64xf32>
    %c9 = arith.constant 9 : index
    %c0_117 = arith.constant 0 : index
    %119 = vector.load %arg15[%c9, %c0_117] : memref<18x64xf32, #tpu.memory_space<vmem>>, vector<9x64xf32>
    tpu.vector_store %arg15[%c9, %c0_117], %118 {strides = array<i32>} : memref<18x64xf32, #tpu.memory_space<vmem>>, vector<9x64xf32>,
    %c0_118 = arith.constant 0 : index
    %c0_119 = arith.constant 0 : index
    %120 = vector.load %arg15[%c0_118, %c0_119] : memref<18x64xf32, #tpu.memory_space<vmem>>, vector<18x64xf32>
    %cst_120 = arith.constant dense<0.000000e+00> : vector<18xf32>
    %121 = vector.multi_reduction <add>, %120, %cst_120 [1] : vector<18x64xf32> to vector<18xf32>
    %122 = vector.shape_cast %121 : vector<18xf32> to vector<18x1xf32>
    %cst_121 = arith.constant 6.400000e+01 : f32
    %123 = vector.broadcast %cst_121 : f32 to vector<18x1xf32>
    %124 = arith.divf %122, %123 : vector<18x1xf32>
    %125 = vector.broadcast %124 : vector<18x1xf32> to vector<18x64xf32>
    %126 = arith.subf %120, %125 : vector<18x64xf32>
    %127 = arith.mulf %126, %126 : vector<18x64xf32>
    %cst_122 = arith.constant dense<0.000000e+00> : vector<18xf32>
    %128 = vector.multi_reduction <add>, %127, %cst_122 [1] : vector<18x64xf32> to vector<18xf32>
    %129 = vector.shape_cast %128 : vector<18xf32> to vector<18x1xf32>
    %cst_123 = arith.constant 6.400000e+01 : f32
    %130 = vector.broadcast %cst_123 : f32 to vector<18x1xf32>
    %131 = arith.divf %129, %130 : vector<18x1xf32>
    %132 = vector.broadcast %124 : vector<18x1xf32> to vector<18x64xf32>
    %133 = arith.subf %120, %132 : vector<18x64xf32>
    %cst_124 = arith.constant 9.99999997E-7 : f32
    %134 = vector.broadcast %cst_124 : f32 to vector<18x1xf32>
    %135 = arith.addf %131, %134 : vector<18x1xf32>
    %136 = math.rsqrt %135 : vector<18x1xf32>
    %137 = vector.broadcast %136 : vector<18x1xf32> to vector<18x64xf32>
    %138 = arith.mulf %133, %137 : vector<18x64xf32>
    %139 = vector.broadcast %2 : vector<1x64xf32> to vector<18x64xf32>
    %140 = arith.mulf %138, %139 : vector<18x64xf32>
    %141 = vector.broadcast %3 : vector<1x64xf32> to vector<18x64xf32>
    %142 = arith.addf %140, %141 : vector<18x64xf32>
    %c5_125 = arith.constant 5 : index
    %c0_126 = arith.constant 0 : index
    %143 = vector.load %arg8[%c5_125, %c0_126] : memref<15x64xf32, #tpu.memory_space<vmem>>, vector<1x64xf32>
    %c6_127 = arith.constant 6 : index
    %c0_128 = arith.constant 0 : index
    %144 = vector.load %arg8[%c6_127, %c0_128] : memref<15x64xf32, #tpu.memory_space<vmem>>, vector<1x64xf32>
    %c7 = arith.constant 7 : index
    %c0_129 = arith.constant 0 : index
    %145 = vector.load %arg8[%c7, %c0_129] : memref<15x64xf32, #tpu.memory_space<vmem>>, vector<1x64xf32>
    %c8 = arith.constant 8 : index
    %c0_130 = arith.constant 0 : index
    %146 = vector.load %arg8[%c8, %c0_130] : memref<15x64xf32, #tpu.memory_space<vmem>>, vector<1x64xf32>
    %c9_131 = arith.constant 9 : index
    %c0_132 = arith.constant 0 : index
    %147 = vector.load %arg8[%c9_131, %c0_132] : memref<15x64xf32, #tpu.memory_space<vmem>>, vector<1x64xf32>
    %c0_133 = arith.constant 0 : index
    %c0_134 = arith.constant 0 : index
    %148 = vector.load %arg9[%c0_133, %c0_134] : memref<3x128xf32, #tpu.memory_space<vmem>>, vector<1x128xf32>
    %c0_135 = arith.constant 0 : index
    %c0_136 = arith.constant 0 : index
    %149 = vector.load %arg15[%c0_135, %c0_136] : memref<18x64xf32, #tpu.memory_space<vmem>>, vector<18x64xf32>
    tpu.vector_store %arg15[%c0_135, %c0_136], %142 {strides = array<i32>} : memref<18x64xf32, #tpu.memory_space<vmem>>, vector<18x64xf32>,
    %c0_137 = arith.constant 0 : index
    %c0_138 = arith.constant 0 : index
    %c0_139 = arith.constant 0 : index
    %150 = vector.load %arg3[%c0_137, %c0_138, %c0_139] : memref<2x7x64xf32, #tpu.memory_space<vmem>>, vector<1x7x64xf32>
    %151 = vector.shape_cast %150 : vector<1x7x64xf32> to vector<7x64xf32>
    %c0_140 = arith.constant 0 : index
    %c0_141 = arith.constant 0 : index
    %152 = vector.load %arg15[%c0_140, %c0_141] : memref<18x64xf32, #tpu.memory_space<vmem>>, vector<9x64xf32>
    %c3_142 = arith.constant 3 : index
    %c0_143 = arith.constant 0 : index
    %153 = vector.load %arg14[%c3_142, %c0_143] : memref<15x64xf32, #tpu.memory_space<vmem>>, vector<9x64xf32>
    tpu.vector_store %arg14[%c3_142, %c0_143], %152 {strides = array<i32>} : memref<15x64xf32, #tpu.memory_space<vmem>>, vector<9x64xf32>,
    %cst_144 = arith.constant 0.000000e+00 : f32
    %154 = vector.broadcast %cst_144 : f32 to vector<9x64xf32>
    %c0_145 = arith.constant 0 : index
    %c0_146 = arith.constant 0 : index
    %155 = vector.load %arg14[%c0_145, %c0_146] : memref<15x64xf32, #tpu.memory_space<vmem>>, vector<9x64xf32>
    %156 = vector.extract_strided_slice %151 {offsets = [0, 0], sizes = [1, 64], strides = [1, 1]} : vector<7x64xf32> to vector<1x64xf32>
    %157 = vector.broadcast %156 : vector<1x64xf32> to vector<9x64xf32>
    %158 = arith.mulf %155, %157 : vector<9x64xf32>
    %159 = arith.addf %154, %158 : vector<9x64xf32>
    %c1_147 = arith.constant 1 : index
    %c0_148 = arith.constant 0 : index
    %160 = vector.load %arg14[%c1_147, %c0_148] : memref<15x64xf32, #tpu.memory_space<vmem>>, vector<9x64xf32>
    %161 = vector.extract_strided_slice %151 {offsets = [1, 0], sizes = [1, 64], strides = [1, 1]} : vector<7x64xf32> to vector<1x64xf32>
    %162 = vector.broadcast %161 : vector<1x64xf32> to vector<9x64xf32>
    %163 = arith.mulf %160, %162 : vector<9x64xf32>
    %164 = arith.addf %159, %163 : vector<9x64xf32>
    %c2_149 = arith.constant 2 : index
    %c0_150 = arith.constant 0 : index
    %165 = vector.load %arg14[%c2_149, %c0_150] : memref<15x64xf32, #tpu.memory_space<vmem>>, vector<9x64xf32>
    %166 = vector.extract_strided_slice %151 {offsets = [2, 0], sizes = [1, 64], strides = [1, 1]} : vector<7x64xf32> to vector<1x64xf32>
    %167 = vector.broadcast %166 : vector<1x64xf32> to vector<9x64xf32>
    %168 = arith.mulf %165, %167 : vector<9x64xf32>
    %169 = arith.addf %164, %168 : vector<9x64xf32>
    %c3_151 = arith.constant 3 : index
    %c0_152 = arith.constant 0 : index
    %170 = vector.load %arg14[%c3_151, %c0_152] : memref<15x64xf32, #tpu.memory_space<vmem>>, vector<9x64xf32>
    %171 = vector.extract_strided_slice %151 {offsets = [3, 0], sizes = [1, 64], strides = [1, 1]} : vector<7x64xf32> to vector<1x64xf32>
    %172 = vector.broadcast %171 : vector<1x64xf32> to vector<9x64xf32>
    %173 = arith.mulf %170, %172 : vector<9x64xf32>
    %174 = arith.addf %169, %173 : vector<9x64xf32>
    %c4_153 = arith.constant 4 : index
    %c0_154 = arith.constant 0 : index
    %175 = vector.load %arg14[%c4_153, %c0_154] : memref<15x64xf32, #tpu.memory_space<vmem>>, vector<9x64xf32>
    %176 = vector.extract_strided_slice %151 {offsets = [4, 0], sizes = [1, 64], strides = [1, 1]} : vector<7x64xf32> to vector<1x64xf32>
    %177 = vector.broadcast %176 : vector<1x64xf32> to vector<9x64xf32>
    %178 = arith.mulf %175, %177 : vector<9x64xf32>
    %179 = arith.addf %174, %178 : vector<9x64xf32>
    %c5_155 = arith.constant 5 : index
    %c0_156 = arith.constant 0 : index
    %180 = vector.load %arg14[%c5_155, %c0_156] : memref<15x64xf32, #tpu.memory_space<vmem>>, vector<9x64xf32>
    %181 = vector.extract_strided_slice %151 {offsets = [5, 0], sizes = [1, 64], strides = [1, 1]} : vector<7x64xf32> to vector<1x64xf32>
    %182 = vector.broadcast %181 : vector<1x64xf32> to vector<9x64xf32>
    %183 = arith.mulf %180, %182 : vector<9x64xf32>
    %184 = arith.addf %179, %183 : vector<9x64xf32>
    %c6_157 = arith.constant 6 : index
    %c0_158 = arith.constant 0 : index
    %185 = vector.load %arg14[%c6_157, %c0_158] : memref<15x64xf32, #tpu.memory_space<vmem>>, vector<9x64xf32>
    %186 = vector.extract_strided_slice %151 {offsets = [6, 0], sizes = [1, 64], strides = [1, 1]} : vector<7x64xf32> to vector<1x64xf32>
    %187 = vector.broadcast %186 : vector<1x64xf32> to vector<9x64xf32>
    %188 = arith.mulf %185, %187 : vector<9x64xf32>
    %189 = arith.addf %184, %188 : vector<9x64xf32>
    %c0_159 = arith.constant 0 : index
    %c0_160 = arith.constant 0 : index
    %190 = vector.load %arg15[%c0_159, %c0_160] : memref<18x64xf32, #tpu.memory_space<vmem>>, vector<9x64xf32>
    tpu.vector_store %arg15[%c0_159, %c0_160], %189 {strides = array<i32>} : memref<18x64xf32, #tpu.memory_space<vmem>>, vector<9x64xf32>,
    %c9_161 = arith.constant 9 : index
    %c0_162 = arith.constant 0 : index
    %191 = vector.load %arg15[%c9_161, %c0_162] : memref<18x64xf32, #tpu.memory_space<vmem>>, vector<9x64xf32>
    %c3_163 = arith.constant 3 : index
    %c0_164 = arith.constant 0 : index
    %192 = vector.load %arg14[%c3_163, %c0_164] : memref<15x64xf32, #tpu.memory_space<vmem>>, vector<9x64xf32>
    tpu.vector_store %arg14[%c3_163, %c0_164], %191 {strides = array<i32>} : memref<15x64xf32, #tpu.memory_space<vmem>>, vector<9x64xf32>,
    %cst_165 = arith.constant 0.000000e+00 : f32
    %193 = vector.broadcast %cst_165 : f32 to vector<9x64xf32>
    %c0_166 = arith.constant 0 : index
    %c0_167 = arith.constant 0 : index
    %194 = vector.load %arg14[%c0_166, %c0_167] : memref<15x64xf32, #tpu.memory_space<vmem>>, vector<9x64xf32>
    %195 = vector.extract_strided_slice %151 {offsets = [0, 0], sizes = [1, 64], strides = [1, 1]} : vector<7x64xf32> to vector<1x64xf32>
    %196 = vector.broadcast %195 : vector<1x64xf32> to vector<9x64xf32>
    %197 = arith.mulf %194, %196 : vector<9x64xf32>
    %198 = arith.addf %193, %197 : vector<9x64xf32>
    %c1_168 = arith.constant 1 : index
    %c0_169 = arith.constant 0 : index
    %199 = vector.load %arg14[%c1_168, %c0_169] : memref<15x64xf32, #tpu.memory_space<vmem>>, vector<9x64xf32>
    %200 = vector.extract_strided_slice %151 {offsets = [1, 0], sizes = [1, 64], strides = [1, 1]} : vector<7x64xf32> to vector<1x64xf32>
    %201 = vector.broadcast %200 : vector<1x64xf32> to vector<9x64xf32>
    %202 = arith.mulf %199, %201 : vector<9x64xf32>
    %203 = arith.addf %198, %202 : vector<9x64xf32>
    %c2_170 = arith.constant 2 : index
    %c0_171 = arith.constant 0 : index
    %204 = vector.load %arg14[%c2_170, %c0_171] : memref<15x64xf32, #tpu.memory_space<vmem>>, vector<9x64xf32>
    %205 = vector.extract_strided_slice %151 {offsets = [2, 0], sizes = [1, 64], strides = [1, 1]} : vector<7x64xf32> to vector<1x64xf32>
    %206 = vector.broadcast %205 : vector<1x64xf32> to vector<9x64xf32>
    %207 = arith.mulf %204, %206 : vector<9x64xf32>
    %208 = arith.addf %203, %207 : vector<9x64xf32>
    %c3_172 = arith.constant 3 : index
    %c0_173 = arith.constant 0 : index
    %209 = vector.load %arg14[%c3_172, %c0_173] : memref<15x64xf32, #tpu.memory_space<vmem>>, vector<9x64xf32>
    %210 = vector.extract_strided_slice %151 {offsets = [3, 0], sizes = [1, 64], strides = [1, 1]} : vector<7x64xf32> to vector<1x64xf32>
    %211 = vector.broadcast %210 : vector<1x64xf32> to vector<9x64xf32>
    %212 = arith.mulf %209, %211 : vector<9x64xf32>
    %213 = arith.addf %208, %212 : vector<9x64xf32>
    %c4_174 = arith.constant 4 : index
    %c0_175 = arith.constant 0 : index
    %214 = vector.load %arg14[%c4_174, %c0_175] : memref<15x64xf32, #tpu.memory_space<vmem>>, vector<9x64xf32>
    %215 = vector.extract_strided_slice %151 {offsets = [4, 0], sizes = [1, 64], strides = [1, 1]} : vector<7x64xf32> to vector<1x64xf32>
    %216 = vector.broadcast %215 : vector<1x64xf32> to vector<9x64xf32>
    %217 = arith.mulf %214, %216 : vector<9x64xf32>
    %218 = arith.addf %213, %217 : vector<9x64xf32>
    %c5_176 = arith.constant 5 : index
    %c0_177 = arith.constant 0 : index
    %219 = vector.load %arg14[%c5_176, %c0_177] : memref<15x64xf32, #tpu.memory_space<vmem>>, vector<9x64xf32>
    %220 = vector.extract_strided_slice %151 {offsets = [5, 0], sizes = [1, 64], strides = [1, 1]} : vector<7x64xf32> to vector<1x64xf32>
    %221 = vector.broadcast %220 : vector<1x64xf32> to vector<9x64xf32>
    %222 = arith.mulf %219, %221 : vector<9x64xf32>
    %223 = arith.addf %218, %222 : vector<9x64xf32>
    %c6_178 = arith.constant 6 : index
    %c0_179 = arith.constant 0 : index
    %224 = vector.load %arg14[%c6_178, %c0_179] : memref<15x64xf32, #tpu.memory_space<vmem>>, vector<9x64xf32>
    %225 = vector.extract_strided_slice %151 {offsets = [6, 0], sizes = [1, 64], strides = [1, 1]} : vector<7x64xf32> to vector<1x64xf32>
    %226 = vector.broadcast %225 : vector<1x64xf32> to vector<9x64xf32>
    %227 = arith.mulf %224, %226 : vector<9x64xf32>
    %228 = arith.addf %223, %227 : vector<9x64xf32>
    %c9_180 = arith.constant 9 : index
    %c0_181 = arith.constant 0 : index
    %229 = vector.load %arg15[%c9_180, %c0_181] : memref<18x64xf32, #tpu.memory_space<vmem>>, vector<9x64xf32>
    tpu.vector_store %arg15[%c9_180, %c0_181], %228 {strides = array<i32>} : memref<18x64xf32, #tpu.memory_space<vmem>>, vector<9x64xf32>,
    %c0_182 = arith.constant 0 : index
    %c0_183 = arith.constant 0 : index
    %230 = vector.load %arg15[%c0_182, %c0_183] : memref<18x64xf32, #tpu.memory_space<vmem>>, vector<18x64xf32>
    %231 = vector.broadcast %143 : vector<1x64xf32> to vector<18x64xf32>
    %232 = arith.addf %230, %231 : vector<18x64xf32>
    %cst_184 = arith.constant dense<0.000000e+00> : vector<18xf32>
    %233 = vector.multi_reduction <add>, %232, %cst_184 [1] : vector<18x64xf32> to vector<18xf32>
    %234 = vector.shape_cast %233 : vector<18xf32> to vector<18x1xf32>
    %cst_185 = arith.constant 6.400000e+01 : f32
    %235 = vector.broadcast %cst_185 : f32 to vector<18x1xf32>
    %236 = arith.divf %234, %235 : vector<18x1xf32>
    %237 = vector.broadcast %236 : vector<18x1xf32> to vector<18x64xf32>
    %238 = arith.subf %232, %237 : vector<18x64xf32>
    %239 = arith.mulf %238, %238 : vector<18x64xf32>
    %cst_186 = arith.constant dense<0.000000e+00> : vector<18xf32>
    %240 = vector.multi_reduction <add>, %239, %cst_186 [1] : vector<18x64xf32> to vector<18xf32>
    %241 = vector.shape_cast %240 : vector<18xf32> to vector<18x1xf32>
    %cst_187 = arith.constant 6.400000e+01 : f32
    %242 = vector.broadcast %cst_187 : f32 to vector<18x1xf32>
    %243 = arith.divf %241, %242 : vector<18x1xf32>
    %244 = vector.broadcast %236 : vector<18x1xf32> to vector<18x64xf32>
    %245 = arith.subf %232, %244 : vector<18x64xf32>
    %cst_188 = arith.constant 9.99999997E-7 : f32
    %246 = vector.broadcast %cst_188 : f32 to vector<18x1xf32>
    %247 = arith.addf %243, %246 : vector<18x1xf32>
    %248 = math.rsqrt %247 : vector<18x1xf32>
    %249 = vector.broadcast %248 : vector<18x1xf32> to vector<18x64xf32>
    %250 = arith.mulf %245, %249 : vector<18x64xf32>
    %251 = vector.broadcast %144 : vector<1x64xf32> to vector<18x64xf32>
    %252 = arith.mulf %250, %251 : vector<18x64xf32>
    %253 = vector.broadcast %145 : vector<1x64xf32> to vector<18x64xf32>
    %254 = arith.addf %252, %253 : vector<18x64xf32>
    %255 = arith.truncf %254 : vector<18x64xf32> to vector<18x64xbf16>
    %c0_189 = arith.constant 0 : index
    %c0_190 = arith.constant 0 : index
    %c0_191 = arith.constant 0 : index
    %256 = vector.load %arg4[%c0_189, %c0_190, %c0_191] : memref<2x64x128xbf16, #tpu.memory_space<vmem>>, vector<1x64x128xbf16>
    %257 = vector.shape_cast %256 : vector<1x64x128xbf16> to vector<64x128xbf16>
    %cst_192 = arith.constant dense<0.000000e+00> : vector<18x128xf32>
    %258 = tpu.matmul %255, %257, %cst_192 {dimension_numbers = #tpu.dot_dimension_numbers<[1], [0], [0], [1], [0, 0, 1, 1], [], []>} : vector<18x64xbf16>, vector<64x128xbf16>, vector<18x128xf32> -> vector<18x128xf32>
    %259 = vector.broadcast %148 : vector<1x128xf32> to vector<18x128xf32>
    %260 = arith.addf %258, %259 : vector<18x128xf32>
    %261 = arith.mulf %260, %260 : vector<18x128xf32>
    %262 = arith.mulf %260, %261 : vector<18x128xf32>
    %cst_193 = arith.constant 4.471500e-02 : f32
    %263 = vector.broadcast %cst_193 : f32 to vector<18x128xf32>
    %264 = arith.mulf %263, %262 : vector<18x128xf32>
    %265 = arith.addf %260, %264 : vector<18x128xf32>
    %cst_194 = arith.constant 0.797884583 : f32
    %266 = vector.broadcast %cst_194 : f32 to vector<18x128xf32>
    %267 = arith.mulf %266, %265 : vector<18x128xf32>
    %268 = math.tanh %267 : vector<18x128xf32>
    %cst_195 = arith.constant 1.000000e+00 : f32
    %269 = vector.broadcast %cst_195 : f32 to vector<18x128xf32>
    %270 = arith.addf %269, %268 : vector<18x128xf32>
    %cst_196 = arith.constant 5.000000e-01 : f32
    %271 = vector.broadcast %cst_196 : f32 to vector<18x128xf32>
    %272 = arith.mulf %271, %270 : vector<18x128xf32>
    %273 = arith.mulf %260, %272 : vector<18x128xf32>
    %274 = arith.truncf %273 : vector<18x128xf32> to vector<18x128xbf16>
    %c0_197 = arith.constant 0 : index
    %c0_198 = arith.constant 0 : index
    %c0_199 = arith.constant 0 : index
    %275 = vector.load %arg5[%c0_197, %c0_198, %c0_199] : memref<2x128x64xbf16, #tpu.memory_space<vmem>>, vector<1x128x64xbf16>
    %276 = vector.shape_cast %275 : vector<1x128x64xbf16> to vector<128x64xbf16>
    %cst_200 = arith.constant dense<0.000000e+00> : vector<18x64xf32>
    %277 = tpu.matmul %274, %276, %cst_200 {dimension_numbers = #tpu.dot_dimension_numbers<[1], [0], [0], [1], [0, 0, 1, 1], [], []>} : vector<18x128xbf16>, vector<128x64xbf16>, vector<18x64xf32> -> vector<18x64xf32>
    %278 = vector.broadcast %146 : vector<1x64xf32> to vector<18x64xf32>
    %279 = arith.addf %277, %278 : vector<18x64xf32>
    %280 = vector.broadcast %147 : vector<1x64xf32> to vector<18x64xf32>
    %281 = arith.mulf %280, %279 : vector<18x64xf32>
    %282 = arith.addf %142, %281 : vector<18x64xf32>
    %c10 = arith.constant 10 : index
    %c0_201 = arith.constant 0 : index
    %283 = vector.load %arg8[%c10, %c0_201] : memref<15x64xf32, #tpu.memory_space<vmem>>, vector<1x64xf32>
    %c11 = arith.constant 11 : index
    %c0_202 = arith.constant 0 : index
    %284 = vector.load %arg8[%c11, %c0_202] : memref<15x64xf32, #tpu.memory_space<vmem>>, vector<1x64xf32>
    %c12 = arith.constant 12 : index
    %c0_203 = arith.constant 0 : index
    %285 = vector.load %arg8[%c12, %c0_203] : memref<15x64xf32, #tpu.memory_space<vmem>>, vector<1x64xf32>
    %c13 = arith.constant 13 : index
    %c0_204 = arith.constant 0 : index
    %286 = vector.load %arg8[%c13, %c0_204] : memref<15x64xf32, #tpu.memory_space<vmem>>, vector<1x64xf32>
    %c14 = arith.constant 14 : index
    %c0_205 = arith.constant 0 : index
    %287 = vector.load %arg8[%c14, %c0_205] : memref<15x64xf32, #tpu.memory_space<vmem>>, vector<1x64xf32>
    %c1_206 = arith.constant 1 : index
    %c0_207 = arith.constant 0 : index
    %288 = vector.load %arg9[%c1_206, %c0_207] : memref<3x128xf32, #tpu.memory_space<vmem>>, vector<1x128xf32>
    %c0_208 = arith.constant 0 : index
    %c0_209 = arith.constant 0 : index
    %289 = vector.load %arg15[%c0_208, %c0_209] : memref<18x64xf32, #tpu.memory_space<vmem>>, vector<18x64xf32>
    tpu.vector_store %arg15[%c0_208, %c0_209], %282 {strides = array<i32>} : memref<18x64xf32, #tpu.memory_space<vmem>>, vector<18x64xf32>,
    %c1_210 = arith.constant 1 : index
    %c0_211 = arith.constant 0 : index
    %c0_212 = arith.constant 0 : index
    %290 = vector.load %arg3[%c1_210, %c0_211, %c0_212] : memref<2x7x64xf32, #tpu.memory_space<vmem>>, vector<1x7x64xf32>
    %291 = vector.shape_cast %290 : vector<1x7x64xf32> to vector<7x64xf32>
    %c0_213 = arith.constant 0 : index
    %c0_214 = arith.constant 0 : index
    %292 = vector.load %arg15[%c0_213, %c0_214] : memref<18x64xf32, #tpu.memory_space<vmem>>, vector<9x64xf32>
    %c3_215 = arith.constant 3 : index
    %c0_216 = arith.constant 0 : index
    %293 = vector.load %arg14[%c3_215, %c0_216] : memref<15x64xf32, #tpu.memory_space<vmem>>, vector<9x64xf32>
    tpu.vector_store %arg14[%c3_215, %c0_216], %292 {strides = array<i32>} : memref<15x64xf32, #tpu.memory_space<vmem>>, vector<9x64xf32>,
    %cst_217 = arith.constant 0.000000e+00 : f32
    %294 = vector.broadcast %cst_217 : f32 to vector<9x64xf32>
    %c0_218 = arith.constant 0 : index
    %c0_219 = arith.constant 0 : index
    %295 = vector.load %arg14[%c0_218, %c0_219] : memref<15x64xf32, #tpu.memory_space<vmem>>, vector<9x64xf32>
    %296 = vector.extract_strided_slice %291 {offsets = [0, 0], sizes = [1, 64], strides = [1, 1]} : vector<7x64xf32> to vector<1x64xf32>
    %297 = vector.broadcast %296 : vector<1x64xf32> to vector<9x64xf32>
    %298 = arith.mulf %295, %297 : vector<9x64xf32>
    %299 = arith.addf %294, %298 : vector<9x64xf32>
    %c1_220 = arith.constant 1 : index
    %c0_221 = arith.constant 0 : index
    %300 = vector.load %arg14[%c1_220, %c0_221] : memref<15x64xf32, #tpu.memory_space<vmem>>, vector<9x64xf32>
    %301 = vector.extract_strided_slice %291 {offsets = [1, 0], sizes = [1, 64], strides = [1, 1]} : vector<7x64xf32> to vector<1x64xf32>
    %302 = vector.broadcast %301 : vector<1x64xf32> to vector<9x64xf32>
    %303 = arith.mulf %300, %302 : vector<9x64xf32>
    %304 = arith.addf %299, %303 : vector<9x64xf32>
    %c2_222 = arith.constant 2 : index
    %c0_223 = arith.constant 0 : index
    %305 = vector.load %arg14[%c2_222, %c0_223] : memref<15x64xf32, #tpu.memory_space<vmem>>, vector<9x64xf32>
    %306 = vector.extract_strided_slice %291 {offsets = [2, 0], sizes = [1, 64], strides = [1, 1]} : vector<7x64xf32> to vector<1x64xf32>
    %307 = vector.broadcast %306 : vector<1x64xf32> to vector<9x64xf32>
    %308 = arith.mulf %305, %307 : vector<9x64xf32>
    %309 = arith.addf %304, %308 : vector<9x64xf32>
    %c3_224 = arith.constant 3 : index
    %c0_225 = arith.constant 0 : index
    %310 = vector.load %arg14[%c3_224, %c0_225] : memref<15x64xf32, #tpu.memory_space<vmem>>, vector<9x64xf32>
    %311 = vector.extract_strided_slice %291 {offsets = [3, 0], sizes = [1, 64], strides = [1, 1]} : vector<7x64xf32> to vector<1x64xf32>
    %312 = vector.broadcast %311 : vector<1x64xf32> to vector<9x64xf32>
    %313 = arith.mulf %310, %312 : vector<9x64xf32>
    %314 = arith.addf %309, %313 : vector<9x64xf32>
    %c4_226 = arith.constant 4 : index
    %c0_227 = arith.constant 0 : index
    %315 = vector.load %arg14[%c4_226, %c0_227] : memref<15x64xf32, #tpu.memory_space<vmem>>, vector<9x64xf32>
    %316 = vector.extract_strided_slice %291 {offsets = [4, 0], sizes = [1, 64], strides = [1, 1]} : vector<7x64xf32> to vector<1x64xf32>
    %317 = vector.broadcast %316 : vector<1x64xf32> to vector<9x64xf32>
    %318 = arith.mulf %315, %317 : vector<9x64xf32>
    %319 = arith.addf %314, %318 : vector<9x64xf32>
    %c5_228 = arith.constant 5 : index
    %c0_229 = arith.constant 0 : index
    %320 = vector.load %arg14[%c5_228, %c0_229] : memref<15x64xf32, #tpu.memory_space<vmem>>, vector<9x64xf32>
    %321 = vector.extract_strided_slice %291 {offsets = [5, 0], sizes = [1, 64], strides = [1, 1]} : vector<7x64xf32> to vector<1x64xf32>
    %322 = vector.broadcast %321 : vector<1x64xf32> to vector<9x64xf32>
    %323 = arith.mulf %320, %322 : vector<9x64xf32>
    %324 = arith.addf %319, %323 : vector<9x64xf32>
    %c6_230 = arith.constant 6 : index
    %c0_231 = arith.constant 0 : index
    %325 = vector.load %arg14[%c6_230, %c0_231] : memref<15x64xf32, #tpu.memory_space<vmem>>, vector<9x64xf32>
    %326 = vector.extract_strided_slice %291 {offsets = [6, 0], sizes = [1, 64], strides = [1, 1]} : vector<7x64xf32> to vector<1x64xf32>
    %327 = vector.broadcast %326 : vector<1x64xf32> to vector<9x64xf32>
    %328 = arith.mulf %325, %327 : vector<9x64xf32>
    %329 = arith.addf %324, %328 : vector<9x64xf32>
    %c0_232 = arith.constant 0 : index
    %c0_233 = arith.constant 0 : index
    %330 = vector.load %arg15[%c0_232, %c0_233] : memref<18x64xf32, #tpu.memory_space<vmem>>, vector<9x64xf32>
    tpu.vector_store %arg15[%c0_232, %c0_233], %329 {strides = array<i32>} : memref<18x64xf32, #tpu.memory_space<vmem>>, vector<9x64xf32>,
    %c9_234 = arith.constant 9 : index
    %c0_235 = arith.constant 0 : index
    %331 = vector.load %arg15[%c9_234, %c0_235] : memref<18x64xf32, #tpu.memory_space<vmem>>, vector<9x64xf32>
    %c3_236 = arith.constant 3 : index
    %c0_237 = arith.constant 0 : index
    %332 = vector.load %arg14[%c3_236, %c0_237] : memref<15x64xf32, #tpu.memory_space<vmem>>, vector<9x64xf32>
    tpu.vector_store %arg14[%c3_236, %c0_237], %331 {strides = array<i32>} : memref<15x64xf32, #tpu.memory_space<vmem>>, vector<9x64xf32>,
    %cst_238 = arith.constant 0.000000e+00 : f32
    %333 = vector.broadcast %cst_238 : f32 to vector<9x64xf32>
    %c0_239 = arith.constant 0 : index
    %c0_240 = arith.constant 0 : index
    %334 = vector.load %arg14[%c0_239, %c0_240] : memref<15x64xf32, #tpu.memory_space<vmem>>, vector<9x64xf32>
    %335 = vector.extract_strided_slice %291 {offsets = [0, 0], sizes = [1, 64], strides = [1, 1]} : vector<7x64xf32> to vector<1x64xf32>
    %336 = vector.broadcast %335 : vector<1x64xf32> to vector<9x64xf32>
    %337 = arith.mulf %334, %336 : vector<9x64xf32>
    %338 = arith.addf %333, %337 : vector<9x64xf32>
    %c1_241 = arith.constant 1 : index
    %c0_242 = arith.constant 0 : index
    %339 = vector.load %arg14[%c1_241, %c0_242] : memref<15x64xf32, #tpu.memory_space<vmem>>, vector<9x64xf32>
    %340 = vector.extract_strided_slice %291 {offsets = [1, 0], sizes = [1, 64], strides = [1, 1]} : vector<7x64xf32> to vector<1x64xf32>
    %341 = vector.broadcast %340 : vector<1x64xf32> to vector<9x64xf32>
    %342 = arith.mulf %339, %341 : vector<9x64xf32>
    %343 = arith.addf %338, %342 : vector<9x64xf32>
    %c2_243 = arith.constant 2 : index
    %c0_244 = arith.constant 0 : index
    %344 = vector.load %arg14[%c2_243, %c0_244] : memref<15x64xf32, #tpu.memory_space<vmem>>, vector<9x64xf32>
    %345 = vector.extract_strided_slice %291 {offsets = [2, 0], sizes = [1, 64], strides = [1, 1]} : vector<7x64xf32> to vector<1x64xf32>
    %346 = vector.broadcast %345 : vector<1x64xf32> to vector<9x64xf32>
    %347 = arith.mulf %344, %346 : vector<9x64xf32>
    %348 = arith.addf %343, %347 : vector<9x64xf32>
    %c3_245 = arith.constant 3 : index
    %c0_246 = arith.constant 0 : index
    %349 = vector.load %arg14[%c3_245, %c0_246] : memref<15x64xf32, #tpu.memory_space<vmem>>, vector<9x64xf32>
    %350 = vector.extract_strided_slice %291 {offsets = [3, 0], sizes = [1, 64], strides = [1, 1]} : vector<7x64xf32> to vector<1x64xf32>
    %351 = vector.broadcast %350 : vector<1x64xf32> to vector<9x64xf32>
    %352 = arith.mulf %349, %351 : vector<9x64xf32>
    %353 = arith.addf %348, %352 : vector<9x64xf32>
    %c4_247 = arith.constant 4 : index
    %c0_248 = arith.constant 0 : index
    %354 = vector.load %arg14[%c4_247, %c0_248] : memref<15x64xf32, #tpu.memory_space<vmem>>, vector<9x64xf32>
    %355 = vector.extract_strided_slice %291 {offsets = [4, 0], sizes = [1, 64], strides = [1, 1]} : vector<7x64xf32> to vector<1x64xf32>
    %356 = vector.broadcast %355 : vector<1x64xf32> to vector<9x64xf32>
    %357 = arith.mulf %354, %356 : vector<9x64xf32>
    %358 = arith.addf %353, %357 : vector<9x64xf32>
    %c5_249 = arith.constant 5 : index
    %c0_250 = arith.constant 0 : index
    %359 = vector.load %arg14[%c5_249, %c0_250] : memref<15x64xf32, #tpu.memory_space<vmem>>, vector<9x64xf32>
    %360 = vector.extract_strided_slice %291 {offsets = [5, 0], sizes = [1, 64], strides = [1, 1]} : vector<7x64xf32> to vector<1x64xf32>
    %361 = vector.broadcast %360 : vector<1x64xf32> to vector<9x64xf32>
    %362 = arith.mulf %359, %361 : vector<9x64xf32>
    %363 = arith.addf %358, %362 : vector<9x64xf32>
    %c6_251 = arith.constant 6 : index
    %c0_252 = arith.constant 0 : index
    %364 = vector.load %arg14[%c6_251, %c0_252] : memref<15x64xf32, #tpu.memory_space<vmem>>, vector<9x64xf32>
    %365 = vector.extract_strided_slice %291 {offsets = [6, 0], sizes = [1, 64], strides = [1, 1]} : vector<7x64xf32> to vector<1x64xf32>
    %366 = vector.broadcast %365 : vector<1x64xf32> to vector<9x64xf32>
    %367 = arith.mulf %364, %366 : vector<9x64xf32>
    %368 = arith.addf %363, %367 : vector<9x64xf32>
    %c9_253 = arith.constant 9 : index
    %c0_254 = arith.constant 0 : index
    %369 = vector.load %arg15[%c9_253, %c0_254] : memref<18x64xf32, #tpu.memory_space<vmem>>, vector<9x64xf32>
    tpu.vector_store %arg15[%c9_253, %c0_254], %368 {strides = array<i32>} : memref<18x64xf32, #tpu.memory_space<vmem>>, vector<9x64xf32>,
    %c0_255 = arith.constant 0 : index
    %c0_256 = arith.constant 0 : index
    %370 = vector.load %arg15[%c0_255, %c0_256] : memref<18x64xf32, #tpu.memory_space<vmem>>, vector<18x64xf32>
    %371 = vector.broadcast %283 : vector<1x64xf32> to vector<18x64xf32>
    %372 = arith.addf %370, %371 : vector<18x64xf32>
    %cst_257 = arith.constant dense<0.000000e+00> : vector<18xf32>
    %373 = vector.multi_reduction <add>, %372, %cst_257 [1] : vector<18x64xf32> to vector<18xf32>
    %374 = vector.shape_cast %373 : vector<18xf32> to vector<18x1xf32>
    %cst_258 = arith.constant 6.400000e+01 : f32
    %375 = vector.broadcast %cst_258 : f32 to vector<18x1xf32>
    %376 = arith.divf %374, %375 : vector<18x1xf32>
    %377 = vector.broadcast %376 : vector<18x1xf32> to vector<18x64xf32>
    %378 = arith.subf %372, %377 : vector<18x64xf32>
    %379 = arith.mulf %378, %378 : vector<18x64xf32>
    %cst_259 = arith.constant dense<0.000000e+00> : vector<18xf32>
    %380 = vector.multi_reduction <add>, %379, %cst_259 [1] : vector<18x64xf32> to vector<18xf32>
    %381 = vector.shape_cast %380 : vector<18xf32> to vector<18x1xf32>
    %cst_260 = arith.constant 6.400000e+01 : f32
    %382 = vector.broadcast %cst_260 : f32 to vector<18x1xf32>
    %383 = arith.divf %381, %382 : vector<18x1xf32>
    %384 = vector.broadcast %376 : vector<18x1xf32> to vector<18x64xf32>
    %385 = arith.subf %372, %384 : vector<18x64xf32>
    %cst_261 = arith.constant 9.99999997E-7 : f32
    %386 = vector.broadcast %cst_261 : f32 to vector<18x1xf32>
    %387 = arith.addf %383, %386 : vector<18x1xf32>
    %388 = math.rsqrt %387 : vector<18x1xf32>
    %389 = vector.broadcast %388 : vector<18x1xf32> to vector<18x64xf32>
    %390 = arith.mulf %385, %389 : vector<18x64xf32>
    %391 = vector.broadcast %284 : vector<1x64xf32> to vector<18x64xf32>
    %392 = arith.mulf %390, %391 : vector<18x64xf32>
    %393 = vector.broadcast %285 : vector<1x64xf32> to vector<18x64xf32>
    %394 = arith.addf %392, %393 : vector<18x64xf32>
    %395 = arith.truncf %394 : vector<18x64xf32> to vector<18x64xbf16>
    %c1_262 = arith.constant 1 : index
    %c0_263 = arith.constant 0 : index
    %c0_264 = arith.constant 0 : index
    %396 = vector.load %arg4[%c1_262, %c0_263, %c0_264] : memref<2x64x128xbf16, #tpu.memory_space<vmem>>, vector<1x64x128xbf16>
    %397 = vector.shape_cast %396 : vector<1x64x128xbf16> to vector<64x128xbf16>
    %cst_265 = arith.constant dense<0.000000e+00> : vector<18x128xf32>
    %398 = tpu.matmul %395, %397, %cst_265 {dimension_numbers = #tpu.dot_dimension_numbers<[1], [0], [0], [1], [0, 0, 1, 1], [], []>} : vector<18x64xbf16>, vector<64x128xbf16>, vector<18x128xf32> -> vector<18x128xf32>
    %399 = vector.broadcast %288 : vector<1x128xf32> to vector<18x128xf32>
    %400 = arith.addf %398, %399 : vector<18x128xf32>
    %401 = arith.mulf %400, %400 : vector<18x128xf32>
    %402 = arith.mulf %400, %401 : vector<18x128xf32>
    %cst_266 = arith.constant 4.471500e-02 : f32
    %403 = vector.broadcast %cst_266 : f32 to vector<18x128xf32>
    %404 = arith.mulf %403, %402 : vector<18x128xf32>
    %405 = arith.addf %400, %404 : vector<18x128xf32>
    %cst_267 = arith.constant 0.797884583 : f32
    %406 = vector.broadcast %cst_267 : f32 to vector<18x128xf32>
    %407 = arith.mulf %406, %405 : vector<18x128xf32>
    %408 = math.tanh %407 : vector<18x128xf32>
    %cst_268 = arith.constant 1.000000e+00 : f32
    %409 = vector.broadcast %cst_268 : f32 to vector<18x128xf32>
    %410 = arith.addf %409, %408 : vector<18x128xf32>
    %cst_269 = arith.constant 5.000000e-01 : f32
    %411 = vector.broadcast %cst_269 : f32 to vector<18x128xf32>
    %412 = arith.mulf %411, %410 : vector<18x128xf32>
    %413 = arith.mulf %400, %412 : vector<18x128xf32>
    %414 = arith.truncf %413 : vector<18x128xf32> to vector<18x128xbf16>
    %c1_270 = arith.constant 1 : index
    %c0_271 = arith.constant 0 : index
    %c0_272 = arith.constant 0 : index
    %415 = vector.load %arg5[%c1_270, %c0_271, %c0_272] : memref<2x128x64xbf16, #tpu.memory_space<vmem>>, vector<1x128x64xbf16>
    %416 = vector.shape_cast %415 : vector<1x128x64xbf16> to vector<128x64xbf16>
    %cst_273 = arith.constant dense<0.000000e+00> : vector<18x64xf32>
    %417 = tpu.matmul %414, %416, %cst_273 {dimension_numbers = #tpu.dot_dimension_numbers<[1], [0], [0], [1], [0, 0, 1, 1], [], []>} : vector<18x128xbf16>, vector<128x64xbf16>, vector<18x64xf32> -> vector<18x64xf32>
    %418 = vector.broadcast %286 : vector<1x64xf32> to vector<18x64xf32>
    %419 = arith.addf %417, %418 : vector<18x64xf32>
    %420 = vector.broadcast %287 : vector<1x64xf32> to vector<18x64xf32>
    %421 = arith.mulf %420, %419 : vector<18x64xf32>
    %422 = arith.addf %282, %421 : vector<18x64xf32>
    %cst_274 = arith.constant dense<0.000000e+00> : vector<18xf32>
    %423 = vector.multi_reduction <add>, %422, %cst_274 [1] : vector<18x64xf32> to vector<18xf32>
    %424 = vector.shape_cast %423 : vector<18xf32> to vector<18x1xf32>
    %cst_275 = arith.constant 6.400000e+01 : f32
    %425 = vector.broadcast %cst_275 : f32 to vector<18x1xf32>
    %426 = arith.divf %424, %425 : vector<18x1xf32>
    %427 = vector.broadcast %426 : vector<18x1xf32> to vector<18x64xf32>
    %428 = arith.subf %422, %427 : vector<18x64xf32>
    %429 = arith.mulf %428, %428 : vector<18x64xf32>
    %cst_276 = arith.constant dense<0.000000e+00> : vector<18xf32>
    %430 = vector.multi_reduction <add>, %429, %cst_276 [1] : vector<18x64xf32> to vector<18xf32>
    %431 = vector.shape_cast %430 : vector<18xf32> to vector<18x1xf32>
    %cst_277 = arith.constant 6.400000e+01 : f32
    %432 = vector.broadcast %cst_277 : f32 to vector<18x1xf32>
    %433 = arith.divf %431, %432 : vector<18x1xf32>
    %434 = vector.broadcast %426 : vector<18x1xf32> to vector<18x64xf32>
    %435 = arith.subf %422, %434 : vector<18x64xf32>
    %cst_278 = arith.constant 9.99999997E-7 : f32
    %436 = vector.broadcast %cst_278 : f32 to vector<18x1xf32>
    %437 = arith.addf %433, %436 : vector<18x1xf32>
    %438 = math.rsqrt %437 : vector<18x1xf32>
    %439 = vector.broadcast %438 : vector<18x1xf32> to vector<18x64xf32>
    %440 = arith.mulf %435, %439 : vector<18x64xf32>
    %441 = vector.broadcast %4 : vector<1x64xf32> to vector<18x64xf32>
    %442 = arith.mulf %440, %441 : vector<18x64xf32>
    %443 = vector.broadcast %5 : vector<1x64xf32> to vector<18x64xf32>
    %444 = arith.addf %442, %443 : vector<18x64xf32>
    %445 = arith.truncf %444 : vector<18x64xf32> to vector<18x64xbf16>
    %c0_279 = arith.constant 0 : index
    %c0_280 = arith.constant 0 : index
    %446 = vector.load %arg6[%c0_279, %c0_280] : memref<64x512xbf16, #tpu.memory_space<vmem>>, vector<64x512xbf16>
    %cst_281 = arith.constant dense<0.000000e+00> : vector<18x512xf32>
    %447 = tpu.matmul %445, %446, %cst_281 {dimension_numbers = #tpu.dot_dimension_numbers<[1], [0], [0], [1], [0, 0, 1, 1], [], []>} : vector<18x64xbf16>, vector<64x512xbf16>, vector<18x512xf32> -> vector<18x512xf32>
    %c0_282 = arith.constant 0 : index
    %c0_283 = arith.constant 0 : index
    %448 = vector.load %arg10[%c0_282, %c0_283] : memref<1x512xf32, #tpu.memory_space<vmem>>, vector<1x512xf32>
    %449 = vector.broadcast %448 : vector<1x512xf32> to vector<18x512xf32>
    %450 = arith.addf %447, %449 : vector<18x512xf32>
    %451 = vector.extract_strided_slice %450 {offsets = [0, 0], sizes = [18, 256], strides = [1, 1]} : vector<18x512xf32> to vector<18x256xf32>
    %452 = vector.extract_strided_slice %450 {offsets = [0, 256], sizes = [18, 256], strides = [1, 1]} : vector<18x512xf32> to vector<18x256xf32>
    %cst_284 = arith.constant 4.60517025 : f32
    %453 = vector.broadcast %cst_284 : f32 to vector<18x256xf32>
    %454 = arith.minimumf %451, %453 : vector<18x256xf32>
    %455 = math.exp %454 : vector<18x256xf32>
    %456 = math.cos %452 : vector<18x256xf32>
    %457 = arith.mulf %455, %456 : vector<18x256xf32>
    %458 = arith.truncf %457 : vector<18x256xf32> to vector<18x256xbf16>
    %459 = math.sin %452 : vector<18x256xf32>
    %460 = arith.mulf %455, %459 : vector<18x256xf32>
    %461 = arith.truncf %460 : vector<18x256xf32> to vector<18x256xbf16>
    %c0_285 = arith.constant 0 : index
    %c0_286 = arith.constant 0 : index
    %c0_287 = arith.constant 0 : index
    %462 = vector.load %arg7[%c0_285, %c0_286, %c0_287] : memref<8x256x64xbf16, #tpu.memory_space<vmem>>, vector<1x256x64xbf16>
    %463 = vector.shape_cast %462 : vector<1x256x64xbf16> to vector<256x64xbf16>
    %cst_288 = arith.constant dense<0.000000e+00> : vector<18x64xf32>
    %464 = tpu.matmul %458, %463, %cst_288 {dimension_numbers = #tpu.dot_dimension_numbers<[1], [0], [0], [1], [0, 0, 1, 1], [], []>} : vector<18x256xbf16>, vector<256x64xbf16>, vector<18x64xf32> -> vector<18x64xf32>
    %c1_289 = arith.constant 1 : index
    %c0_290 = arith.constant 0 : index
    %c0_291 = arith.constant 0 : index
    %465 = vector.load %arg7[%c1_289, %c0_290, %c0_291] : memref<8x256x64xbf16, #tpu.memory_space<vmem>>, vector<1x256x64xbf16>
    %466 = vector.shape_cast %465 : vector<1x256x64xbf16> to vector<256x64xbf16>
    %cst_292 = arith.constant dense<0.000000e+00> : vector<18x64xf32>
    %467 = tpu.matmul %461, %466, %cst_292 {dimension_numbers = #tpu.dot_dimension_numbers<[1], [0], [0], [1], [0, 0, 1, 1], [], []>} : vector<18x256xbf16>, vector<256x64xbf16>, vector<18x64xf32> -> vector<18x64xf32>
    %468 = arith.addf %464, %467 : vector<18x64xf32>
    %c0_293 = arith.constant 0 : index
    %c0_294 = arith.constant 0 : index
    %469 = vector.load %arg16[%c0_293, %c0_294] : memref<18x64xf32, #tpu.memory_space<vmem>>, vector<18x64xf32>
    tpu.vector_store %arg16[%c0_293, %c0_294], %468 {strides = array<i32>} : memref<18x64xf32, #tpu.memory_space<vmem>>, vector<18x64xf32>,
    %c0_295 = arith.constant 0 : index
    %c0_296 = arith.constant 0 : index
    %470 = vector.load %arg17[%c0_295, %c0_296] : memref<24x64xf32, #tpu.memory_space<vmem>>, vector<9x64xf32>
    %c0_297 = arith.constant 0 : index
    %c0_298 = arith.constant 0 : index
    %471 = vector.load %arg16[%c0_297, %c0_298] : memref<18x64xf32, #tpu.memory_space<vmem>>, vector<9x64xf32>
    %472 = arith.addf %470, %471 : vector<9x64xf32>
    %c0_299 = arith.constant 0 : index
    %c0_300 = arith.constant 0 : index
    %473 = vector.load %arg17[%c0_299, %c0_300] : memref<24x64xf32, #tpu.memory_space<vmem>>, vector<9x64xf32>
    tpu.vector_store %arg17[%c0_299, %c0_300], %472 {strides = array<i32>} : memref<24x64xf32, #tpu.memory_space<vmem>>, vector<9x64xf32>,
    %c12_301 = arith.constant 12 : index
    %c0_302 = arith.constant 0 : index
    %474 = vector.load %arg17[%c12_301, %c0_302] : memref<24x64xf32, #tpu.memory_space<vmem>>, vector<9x64xf32>
    %c9_303 = arith.constant 9 : index
    %c0_304 = arith.constant 0 : index
    %475 = vector.load %arg16[%c9_303, %c0_304] : memref<18x64xf32, #tpu.memory_space<vmem>>, vector<9x64xf32>
    %476 = arith.addf %474, %475 : vector<9x64xf32>
    %c12_305 = arith.constant 12 : index
    %c0_306 = arith.constant 0 : index
    %477 = vector.load %arg17[%c12_305, %c0_306] : memref<24x64xf32, #tpu.memory_space<vmem>>, vector<9x64xf32>
    tpu.vector_store %arg17[%c12_305, %c0_306], %476 {strides = array<i32>} : memref<24x64xf32, #tpu.memory_space<vmem>>, vector<9x64xf32>,
    %c2_307 = arith.constant 2 : index
    %c0_308 = arith.constant 0 : index
    %c0_309 = arith.constant 0 : index
    %478 = vector.load %arg7[%c2_307, %c0_308, %c0_309] : memref<8x256x64xbf16, #tpu.memory_space<vmem>>, vector<1x256x64xbf16>
    %479 = vector.shape_cast %478 : vector<1x256x64xbf16> to vector<256x64xbf16>
    %cst_310 = arith.constant dense<0.000000e+00> : vector<18x64xf32>
    %480 = tpu.matmul %458, %479, %cst_310 {dimension_numbers = #tpu.dot_dimension_numbers<[1], [0], [0], [1], [0, 0, 1, 1], [], []>} : vector<18x256xbf16>, vector<256x64xbf16>, vector<18x64xf32> -> vector<18x64xf32>
    %c3_311 = arith.constant 3 : index
    %c0_312 = arith.constant 0 : index
    %c0_313 = arith.constant 0 : index
    %481 = vector.load %arg7[%c3_311, %c0_312, %c0_313] : memref<8x256x64xbf16, #tpu.memory_space<vmem>>, vector<1x256x64xbf16>
    %482 = vector.shape_cast %481 : vector<1x256x64xbf16> to vector<256x64xbf16>
    %cst_314 = arith.constant dense<0.000000e+00> : vector<18x64xf32>
    %483 = tpu.matmul %461, %482, %cst_314 {dimension_numbers = #tpu.dot_dimension_numbers<[1], [0], [0], [1], [0, 0, 1, 1], [], []>} : vector<18x256xbf16>, vector<256x64xbf16>, vector<18x64xf32> -> vector<18x64xf32>
    %484 = arith.addf %480, %483 : vector<18x64xf32>
    %c0_315 = arith.constant 0 : index
    %c0_316 = arith.constant 0 : index
    %485 = vector.load %arg16[%c0_315, %c0_316] : memref<18x64xf32, #tpu.memory_space<vmem>>, vector<18x64xf32>
    tpu.vector_store %arg16[%c0_315, %c0_316], %484 {strides = array<i32>} : memref<18x64xf32, #tpu.memory_space<vmem>>, vector<18x64xf32>,
    %c1_317 = arith.constant 1 : index
    %c0_318 = arith.constant 0 : index
    %486 = vector.load %arg17[%c1_317, %c0_318] : memref<24x64xf32, #tpu.memory_space<vmem>>, vector<9x64xf32>
    %c0_319 = arith.constant 0 : index
    %c0_320 = arith.constant 0 : index
    %487 = vector.load %arg16[%c0_319, %c0_320] : memref<18x64xf32, #tpu.memory_space<vmem>>, vector<9x64xf32>
    %488 = arith.addf %486, %487 : vector<9x64xf32>
    %c1_321 = arith.constant 1 : index
    %c0_322 = arith.constant 0 : index
    %489 = vector.load %arg17[%c1_321, %c0_322] : memref<24x64xf32, #tpu.memory_space<vmem>>, vector<9x64xf32>
    tpu.vector_store %arg17[%c1_321, %c0_322], %488 {strides = array<i32>} : memref<24x64xf32, #tpu.memory_space<vmem>>, vector<9x64xf32>,
    %c13_323 = arith.constant 13 : index
    %c0_324 = arith.constant 0 : index
    %490 = vector.load %arg17[%c13_323, %c0_324] : memref<24x64xf32, #tpu.memory_space<vmem>>, vector<9x64xf32>
    %c9_325 = arith.constant 9 : index
    %c0_326 = arith.constant 0 : index
    %491 = vector.load %arg16[%c9_325, %c0_326] : memref<18x64xf32, #tpu.memory_space<vmem>>, vector<9x64xf32>
    %492 = arith.addf %490, %491 : vector<9x64xf32>
    %c13_327 = arith.constant 13 : index
    %c0_328 = arith.constant 0 : index
    %493 = vector.load %arg17[%c13_327, %c0_328] : memref<24x64xf32, #tpu.memory_space<vmem>>, vector<9x64xf32>
    tpu.vector_store %arg17[%c13_327, %c0_328], %492 {strides = array<i32>} : memref<24x64xf32, #tpu.memory_space<vmem>>, vector<9x64xf32>,
    %c4_329 = arith.constant 4 : index
    %c0_330 = arith.constant 0 : index
    %c0_331 = arith.constant 0 : index
    %494 = vector.load %arg7[%c4_329, %c0_330, %c0_331] : memref<8x256x64xbf16, #tpu.memory_space<vmem>>, vector<1x256x64xbf16>
    %495 = vector.shape_cast %494 : vector<1x256x64xbf16> to vector<256x64xbf16>
    %cst_332 = arith.constant dense<0.000000e+00> : vector<18x64xf32>
    %496 = tpu.matmul %458, %495, %cst_332 {dimension_numbers = #tpu.dot_dimension_numbers<[1], [0], [0], [1], [0, 0, 1, 1], [], []>} : vector<18x256xbf16>, vector<256x64xbf16>, vector<18x64xf32> -> vector<18x64xf32>
    %c5_333 = arith.constant 5 : index
    %c0_334 = arith.constant 0 : index
    %c0_335 = arith.constant 0 : index
    %497 = vector.load %arg7[%c5_333, %c0_334, %c0_335] : memref<8x256x64xbf16, #tpu.memory_space<vmem>>, vector<1x256x64xbf16>
    %498 = vector.shape_cast %497 : vector<1x256x64xbf16> to vector<256x64xbf16>
    %cst_336 = arith.constant dense<0.000000e+00> : vector<18x64xf32>
    %499 = tpu.matmul %461, %498, %cst_336 {dimension_numbers = #tpu.dot_dimension_numbers<[1], [0], [0], [1], [0, 0, 1, 1], [], []>} : vector<18x256xbf16>, vector<256x64xbf16>, vector<18x64xf32> -> vector<18x64xf32>
    %500 = arith.addf %496, %499 : vector<18x64xf32>
    %c0_337 = arith.constant 0 : index
    %c0_338 = arith.constant 0 : index
    %501 = vector.load %arg16[%c0_337, %c0_338] : memref<18x64xf32, #tpu.memory_space<vmem>>, vector<18x64xf32>
    tpu.vector_store %arg16[%c0_337, %c0_338], %500 {strides = array<i32>} : memref<18x64xf32, #tpu.memory_space<vmem>>, vector<18x64xf32>,
    %c2_339 = arith.constant 2 : index
    %c0_340 = arith.constant 0 : index
    %502 = vector.load %arg17[%c2_339, %c0_340] : memref<24x64xf32, #tpu.memory_space<vmem>>, vector<9x64xf32>
    %c0_341 = arith.constant 0 : index
    %c0_342 = arith.constant 0 : index
    %503 = vector.load %arg16[%c0_341, %c0_342] : memref<18x64xf32, #tpu.memory_space<vmem>>, vector<9x64xf32>
    %504 = arith.addf %502, %503 : vector<9x64xf32>
    %c2_343 = arith.constant 2 : index
    %c0_344 = arith.constant 0 : index
    %505 = vector.load %arg17[%c2_343, %c0_344] : memref<24x64xf32, #tpu.memory_space<vmem>>, vector<9x64xf32>
    tpu.vector_store %arg17[%c2_343, %c0_344], %504 {strides = array<i32>} : memref<24x64xf32, #tpu.memory_space<vmem>>, vector<9x64xf32>,
    %c14_345 = arith.constant 14 : index
    %c0_346 = arith.constant 0 : index
    %506 = vector.load %arg17[%c14_345, %c0_346] : memref<24x64xf32, #tpu.memory_space<vmem>>, vector<9x64xf32>
    %c9_347 = arith.constant 9 : index
    %c0_348 = arith.constant 0 : index
    %507 = vector.load %arg16[%c9_347, %c0_348] : memref<18x64xf32, #tpu.memory_space<vmem>>, vector<9x64xf32>
    %508 = arith.addf %506, %507 : vector<9x64xf32>
    %c14_349 = arith.constant 14 : index
    %c0_350 = arith.constant 0 : index
    %509 = vector.load %arg17[%c14_349, %c0_350] : memref<24x64xf32, #tpu.memory_space<vmem>>, vector<9x64xf32>
    tpu.vector_store %arg17[%c14_349, %c0_350], %508 {strides = array<i32>} : memref<24x64xf32, #tpu.memory_space<vmem>>, vector<9x64xf32>,
    %c6_351 = arith.constant 6 : index
    %c0_352 = arith.constant 0 : index
    %c0_353 = arith.constant 0 : index
    %510 = vector.load %arg7[%c6_351, %c0_352, %c0_353] : memref<8x256x64xbf16, #tpu.memory_space<vmem>>, vector<1x256x64xbf16>
    %511 = vector.shape_cast %510 : vector<1x256x64xbf16> to vector<256x64xbf16>
    %cst_354 = arith.constant dense<0.000000e+00> : vector<18x64xf32>
    %512 = tpu.matmul %458, %511, %cst_354 {dimension_numbers = #tpu.dot_dimension_numbers<[1], [0], [0], [1], [0, 0, 1, 1], [], []>} : vector<18x256xbf16>, vector<256x64xbf16>, vector<18x64xf32> -> vector<18x64xf32>
    %c7_355 = arith.constant 7 : index
    %c0_356 = arith.constant 0 : index
    %c0_357 = arith.constant 0 : index
    %513 = vector.load %arg7[%c7_355, %c0_356, %c0_357] : memref<8x256x64xbf16, #tpu.memory_space<vmem>>, vector<1x256x64xbf16>
    %514 = vector.shape_cast %513 : vector<1x256x64xbf16> to vector<256x64xbf16>
    %cst_358 = arith.constant dense<0.000000e+00> : vector<18x64xf32>
    %515 = tpu.matmul %461, %514, %cst_358 {dimension_numbers = #tpu.dot_dimension_numbers<[1], [0], [0], [1], [0, 0, 1, 1], [], []>} : vector<18x256xbf16>, vector<256x64xbf16>, vector<18x64xf32> -> vector<18x64xf32>
    %516 = arith.addf %512, %515 : vector<18x64xf32>
    %c0_359 = arith.constant 0 : index
    %c0_360 = arith.constant 0 : index
    %517 = vector.load %arg16[%c0_359, %c0_360] : memref<18x64xf32, #tpu.memory_space<vmem>>, vector<18x64xf32>
    tpu.vector_store %arg16[%c0_359, %c0_360], %516 {strides = array<i32>} : memref<18x64xf32, #tpu.memory_space<vmem>>, vector<18x64xf32>,
    %c3_361 = arith.constant 3 : index
    %c0_362 = arith.constant 0 : index
    %518 = vector.load %arg17[%c3_361, %c0_362] : memref<24x64xf32, #tpu.memory_space<vmem>>, vector<9x64xf32>
    %c0_363 = arith.constant 0 : index
    %c0_364 = arith.constant 0 : index
    %519 = vector.load %arg16[%c0_363, %c0_364] : memref<18x64xf32, #tpu.memory_space<vmem>>, vector<9x64xf32>
    %520 = arith.addf %518, %519 : vector<9x64xf32>
    %c3_365 = arith.constant 3 : index
    %c0_366 = arith.constant 0 : index
    %521 = vector.load %arg17[%c3_365, %c0_366] : memref<24x64xf32, #tpu.memory_space<vmem>>, vector<9x64xf32>
    tpu.vector_store %arg17[%c3_365, %c0_366], %520 {strides = array<i32>} : memref<24x64xf32, #tpu.memory_space<vmem>>, vector<9x64xf32>,
    %c15 = arith.constant 15 : index
    %c0_367 = arith.constant 0 : index
    %522 = vector.load %arg17[%c15, %c0_367] : memref<24x64xf32, #tpu.memory_space<vmem>>, vector<9x64xf32>
    %c9_368 = arith.constant 9 : index
    %c0_369 = arith.constant 0 : index
    %523 = vector.load %arg16[%c9_368, %c0_369] : memref<18x64xf32, #tpu.memory_space<vmem>>, vector<9x64xf32>
    %524 = arith.addf %522, %523 : vector<9x64xf32>
    %c15_370 = arith.constant 15 : index
    %c0_371 = arith.constant 0 : index
    %525 = vector.load %arg17[%c15_370, %c0_371] : memref<24x64xf32, #tpu.memory_space<vmem>>, vector<9x64xf32>
    tpu.vector_store %arg17[%c15_370, %c0_371], %524 {strides = array<i32>} : memref<24x64xf32, #tpu.memory_space<vmem>>, vector<9x64xf32>,
    %c2_372 = arith.constant 2 : index
    %c0_373 = arith.constant 0 : index
    %526 = vector.load %arg17[%c2_372, %c0_373] : memref<24x64xf32, #tpu.memory_space<vmem>>, vector<8x64xf32>
    %c0_374 = arith.constant 0 : index
    %c0_375 = arith.constant 0 : index
    %527 = vector.load %arg11[%c0_374, %c0_375] : memref<8x64xf32, #tpu.memory_space<vmem>>, vector<8x64xf32>
    %528 = arith.mulf %526, %527 : vector<8x64xf32>
    %c0_376 = arith.constant 0 : index
    %c0_377 = arith.constant 0 : index
    %c0_378 = arith.constant 0 : index
    %529 = vector.load %arg12[%c0_376, %c0_377, %c0_378] : memref<2x8x64xf32, #tpu.memory_space<vmem>>, vector<1x8x64xf32>
    %530 = vector.shape_cast %529 : vector<1x8x64xf32> to vector<8x64xf32>
    %531 = vector.shape_cast %528 : vector<8x64xf32> to vector<1x8x64xf32>
    tpu.vector_store %arg12[%c0_376, %c0_377, %c0_378], %531 {strides = array<i32>} : memref<2x8x64xf32, #tpu.memory_space<vmem>>, vector<1x8x64xf32>,
    %c14_379 = arith.constant 14 : index
    %c0_380 = arith.constant 0 : index
    %532 = vector.load %arg17[%c14_379, %c0_380] : memref<24x64xf32, #tpu.memory_space<vmem>>, vector<8x64xf32>
    %c0_381 = arith.constant 0 : index
    %c0_382 = arith.constant 0 : index
    %533 = vector.load %arg11[%c0_381, %c0_382] : memref<8x64xf32, #tpu.memory_space<vmem>>, vector<8x64xf32>
    %534 = arith.mulf %532, %533 : vector<8x64xf32>
    %c1_383 = arith.constant 1 : index
    %c0_384 = arith.constant 0 : index
    %c0_385 = arith.constant 0 : index
    %535 = vector.load %arg12[%c1_383, %c0_384, %c0_385] : memref<2x8x64xf32, #tpu.memory_space<vmem>>, vector<1x8x64xf32>
    %536 = vector.shape_cast %535 : vector<1x8x64xf32> to vector<8x64xf32>
    %537 = vector.shape_cast %534 : vector<8x64xf32> to vector<1x8x64xf32>
    tpu.vector_store %arg12[%c1_383, %c0_384, %c0_385], %537 {strides = array<i32>} : memref<2x8x64xf32, #tpu.memory_space<vmem>>, vector<1x8x64xf32>,
    return
  }
}

</mosaic_0001>

<bundles_post_ra>
// kernel: vocos_forward.1
= control target key start
LH: loop header
LB: loop body
LE: loop exit
PB: predicated region body
PF: predicated region fallthrough
CT: control target
= control target key end

     0   :  { %vm48_vm0 = vcmask 261120   ;;  %vm50_vm1 = vcmask 260096   ;;  %v6560_v1 = vmov 0.0   ;;  %vm54_vm2 = vcmask 522240   ;;  %s8715_s1 = inlined_call_operand.vmem [shape: bf16[64,32], index: 1, kind: input, shape index: {}]   ;;  %s8716_s9 = inlined_call_operand.vmem [shape: f32[3,128], index: 9, kind: input, shape index: {}]   ;;  %s8717_s0 = inlined_call_operand.vmem [shape: f32[2,9,64], index: 0, kind: input, shape index: {}]   ;;  %s8718_s2 = inlined_call_operand.vmem [shape: bf16[7,32,64], index: 2, kind: input, shape index: {}]   ;;  %s8719_s8 = inlined_call_operand.vmem [shape: f32[15,64], index: 8, kind: input, shape index: {}]   ;;  %s8720_s3 = inlined_call_operand.vmem [shape: f32[2,7,64], index: 3, kind: input, shape index: {}]   ;;  %s8721_s4 = inlined_call_operand.vmem [shape: bf16[2,64,128], index: 4, kind: input, shape index: {}]   ;;  %s8722_s5 = inlined_call_operand.vmem [shape: bf16[2,128,64], index: 5, kind: input, shape index: {}]   ;;  %s8723_s6 = inlined_call_operand.vmem [shape: bf16[64,512], index: 6, kind: input, shape index: {}]   ;;  %s8724_s10 = inlined_call_operand.vmem [shape: f32[1,512], index: 10, kind: input, shape index: {}]   ;;  %s8725_s7 = inlined_call_operand.vmem [shape: bf16[8,256,64], index: 7, kind: input, shape index: {}]   ;;  %s8726_s11 = inlined_call_operand.vmem [shape: f32[8,64], index: 11, kind: input, shape index: {}]   ;;  %s8727_s12 = inlined_call_operand.vmem [shape: f32[2,8,64], index: 12, kind: output, shape index: {}]  }
   0x1   :  { %v6285_v0 = vld [vmem:[%s8715_s1 + $0x18] sm:$0xff]  ;;  %49 = vst.msk [vmem:[#allocation2] sm:$0xff] %vm48_vm0, %v6560_v1  ;;  %vm52_vm3 = vcmask 523264   ;;  %v6284_v2 = vld [vmem:[%s8715_s1 + $0x10] sm:$0xff]  ;;  %v6283_v3 = vld [vmem:[%s8715_s1 + $0x8] sm:$0xff]  ;;  %vm113_vm4 = vcmask 253952  }
   0x2   :  { %51 = vst.msk [vmem:[#allocation2 + $0x8] sm:$0x7f] %vm50_vm1, %v6560_v1  ;;  %102 = vmatpush.bf16.msra.mxu0 %v6285_v0  ;;  %v6282_v4 = vld [vmem:[%s8715_s1] sm:$0xff]  ;;  %v60_v6 = vld [vmem:[%s8717_s0 + $0x8] sm:$0x1]  ;;  %v6289_v8 = vld [vmem:[%s8718_s2 + $0x18] sm:$0xff] }
   0x3   :  { %53 = vst.msk [vmem:[#allocation3] sm:$0xff] %vm52_vm3, %v6560_v1  ;;  %v59_v5 = vld [vmem:[%s8717_s0] sm:$0xff]  ;;  %v6287_v9 = vld [vmem:[%s8718_s2 + $0x8] sm:$0xff]  ;;  %151 = vmatpush.bf16.msra.mxu1 %v6289_v8  ;;  %v6288_v11 = vld [vmem:[%s8718_s2 + $0x10] sm:$0xff]  ;;  %vm387_vm5 = vcmask 516096   ;;  %vm719_vm7 = vcmask 517120  }
   0x4   :  { %55 = vst.msk [vmem:[#allocation3 + $0x8] sm:$0x7f] %vm54_vm2, %v6560_v1  ;;  %v61_v7 = vpack.c.bf16 %v60_v6, %v59_v5  ;;  %v6291_v10 = vld [vmem:[%s8718_s2 + $0x28] sm:$0xff]  ;;  %180 = vmatpush.bf16.msra.mxu2 %v6287_v9  ;;  %v6286_v12 = vld [vmem:[%s8718_s2] sm:$0xff]  ;;  %v6293_v14 = vld [vmem:[%s8718_s2 + $0x38] sm:$0xff] }
   0x5   :  { %57 = vst.msk [vmem:[#allocation6 + $0x8] sm:$0xff] %vm52_vm3, %v6560_v1  ;;  %217 = vmatpush.bf16.msra.mxu3 %v6291_v10  ;;  %v6290_v13 = vld [vmem:[%s8718_s2 + $0x20] sm:$0xff]  ;;  %v6295_v15 = vld [vmem:[%s8718_s2 + $0x48] sm:$0xff]  ;;  %v6297_v16 = vld [vmem:[%s8718_s2 + $0x58] sm:$0xff] }
   0x6   :  { %58 = vst.msk [vmem:[#allocation6 + $0x10] sm:$0xff] %vm52_vm3, %v6560_v1  ;;  %103 = vmatpush.bf16.msra.mxu0 %v6284_v2  ;;  %v6292_v17 = vld [vmem:[%s8718_s2 + $0x30] sm:$0xff]  ;;  %v6294_v18 = vld [vmem:[%s8718_s2 + $0x40] sm:$0xff]  ;;  %v6299_v26 = vld [vmem:[%s8718_s2 + $0x68] sm:$0xff] }
   0x7   :  { %56 = vst.msk [vmem:[#allocation6] sm:$0xff] %vm52_vm3, %v6560_v1  ;;  %152 = vmatpush.bf16.msra.mxu1 %v6288_v11  ;;  %v6296_v19 = vld [vmem:[%s8718_s2 + $0x50] sm:$0xff]  ;;  %v42_v20 = vld [vmem:[%s8716_s9 + $0x2] sm:$0x1]  ;;  %v6303_v43 = vld [vmem:[%s8715_s1 + $0x18] sm:$0xff] }
   0x8   :  { %181 = vmatpush.bf16.msra.mxu2 %v6286_v12  ;;  %v6697_v21 = vperm.slane %v42_v20, 0  ;;  %v6298_v36 = vld [vmem:[%s8718_s2 + $0x60] sm:$0xff]  ;;  %v6302_v47 = vld [vmem:[%s8715_s1 + $0x10] sm:$0xff]  ;;  %v6301_v48 = vld [vmem:[%s8715_s1 + $0x8] sm:$0xff] }
   0x9   :  { %218 = vmatpush.bf16.msra.mxu3 %v6290_v13  ;;  %v267_v39 = vld [vmem:[#allocation2 + $0xc] sm:$0x1]  ;;  %v306_v40 = vld [vmem:[#allocation2 + $0xd] sm:$0x1]  ;;  %v6300_v49 = vld [vmem:[%s8715_s1] sm:$0xff] }
   0xa   :  { %104 = vmatpush.bf16.msra.mxu0 %v6283_v3  ;;  %v345_v51 = vld [vmem:[#allocation2 + $0xe] sm:$0x1]  ;;  %v5206_v53 = vld [vmem:[%s8717_s0 + $0x10] sm:$0xff]  ;;  %v5207_v54 = vld [vmem:[%s8717_s0 + $0x18] sm:$0x1] }
   0xb   :  { %256 = vmatpush.bf16.msrb.mxu1 %v6293_v14  ;;  %v392_v55 = vpack.c.bf16 %v5207_v54, %v5206_v53  ;;  %v6307_v60 = vld [vmem:[%s8718_s2 + $0x18] sm:$0xff]  ;;  %v6305_v61 = vld [vmem:[%s8718_s2 + $0x8] sm:$0xff]  ;;  %v6306_v2 = vld [vmem:[%s8718_s2 + $0x10] sm:$0xff] }
   0xc   :  { %295 = vmatpush.bf16.msrb.mxu2 %v6295_v15  ;;  %v6309_v3 = vld [vmem:[%s8718_s2 + $0x28] sm:$0xff]  ;;  %v6308_v9 = vld [vmem:[%s8718_s2 + $0x20] sm:$0xff]  ;;  %v6311_v13 = vld [vmem:[%s8718_s2 + $0x38] sm:$0xff] }
   0xd   :  { %334 = vmatpush.bf16.msrb.mxu3 %v6297_v16  ;;  %v6759_v16 = vld [vmem:[%s8719_s8] ss:$0 sm:$0xff]  ;;  %v593_v54 = vld [vmem:[#allocation2 + $0xc] sm:$0x1] }
   0xe   :  { %105 = vmatpush.bf16.msra.mxu0 %v6282_v4  ;;  %v6304_v4 = vld [vmem:[%s8718_s2] sm:$0xff] }
   0xf   :  { %257 = vmatpush.bf16.msrb.mxu1 %v6292_v17  ;;  %v6313_v17 = vld [vmem:[%s8718_s2 + $0x48] sm:$0xff] }
  0x10   :  { %296 = vmatpush.bf16.msrb.mxu2 %v6294_v18  ;;  %v6315_v18 = vld [vmem:[%s8718_s2 + $0x58] sm:$0xff] }
  0x11   :  { %5118 = vmatmul.msk.bf16.vlgmr.msra.gmra.mxu0 %vm52_vm3, %v61_v7  ;;  %335 = vmatpush.bf16.msrb.mxu3 %v6296_v19 }
  0x12   :  { %544 = vmatpush.bf16.msrb.mxu0 %v6309_v3 }
  0x16   :  { %545 = vmatpush.bf16.msrb.mxu0 %v6308_v9 }
  0x8e   :  { %v107_v22 = vpop.f32.mrf.mxu0 }
  0x8f   :  { %v108_v23 = vadd.f32 %v107_v22, %v6697_v21  ;;  %v6310_v22 = vld [vmem:[%s8718_s2 + $0x30] sm:$0xff] }
  0x91   :  { %112 = vst.msk [vmem:[#allocation2 + $0x3] sm:$0xff] %vm48_vm0, %v108_v23 }
  0x96   :  { %v109_v24 = vpop.f32.mrf.mxu0 }
  0x97   :  { %v110_v25 = vadd.f32 %v109_v24, %v6697_v21 }
  0x98   :  { %v122_v27 = vld [vmem:[#allocation2 + $0x1] sm:$0xff]  ;;  %v123_v28 = vld [vmem:[#allocation2 + $0x9] sm:$0x1]  ;;  %v189_v34 = vld [vmem:[#allocation2 + $0xa] sm:$0x1] }
  0x99   :  { %v115_v29 = vld [vmem:[#allocation2] sm:$0xff]  ;;  %114 = vst.msk [vmem:[#allocation2 + $0xb] sm:$0x1] %vm113_vm4, %v110_v25  ;;  %v124_v30 = vpack.c.bf16 %v123_v28, %v122_v27  ;;  %v116_v31 = vld [vmem:[#allocation2 + $0x8] sm:$0x1] }
  0x9a   :  { %v188_v32 = vld [vmem:[#allocation2 + $0x2] sm:$0xff]  ;;  %v117_v33 = vpack.c.bf16 %v116_v31, %v115_v29  ;;  %v6314_v29 = vld [vmem:[%s8718_s2 + $0x50] sm:$0xff] }
  0x9b   :  { %5131 = vmatmul.msk.bf16.vlgmr.msra.gmra.mxu1 %vm48_vm0, %v124_v30  ;;  %v190_v35 = vpack.c.bf16 %v189_v34, %v188_v32  ;;  %v227_v41 = vld [vmem:[#allocation2 + $0x3] sm:$0xff] }
  0x9c   :  { %5140 = vmatmul.msk.bf16.vlgmr.msra.gmra.mxu2 %vm48_vm0, %v117_v33  ;;  %373 = vmatpush.bf16.msra.mxu1 %v6299_v26  ;;  %v6312_v27 = vld [vmem:[%s8718_s2 + $0x40] sm:$0xff]  ;;  %v6317_v28 = vld [vmem:[%s8718_s2 + $0x68] sm:$0xff] }
  0x9d   :  { %5153 = vmatmul.msk.bf16.vlgmr.msra.gmra.mxu3 %vm48_vm0, %v190_v35  ;;  %479 = vmatpush.bf16.msra.mxu2 %v6307_v60  ;;  %v6316_v32 = vld [vmem:[%s8718_s2 + $0x60] sm:$0xff] }
  0x9e   :  { %508 = vmatpush.bf16.msra.mxu3 %v6305_v61  ;;  %696 = vmatpush.bf16.msra.mxu0 %v6317_v28 }
  0xa0   :  { %374 = vmatpush.bf16.msra.mxu1 %v6298_v36  ;;  %v228_v37 = vld [vmem:[#allocation2 + $0xb] sm:$0x1] }
  0xa1   :  { %v266_v38 = vld [vmem:[#allocation2 + $0x4] sm:$0xff]  ;;  %v229_v44 = vpack.c.bf16 %v228_v37, %v227_v41  ;;  %480 = vmatpush.bf16.msra.mxu2 %v6306_v2 }
  0xa2   :  { %v305_v42 = vld [vmem:[#allocation2 + $0x5] sm:$0xff]  ;;  %v268_v45 = vpack.c.bf16 %v267_v39, %v266_v38  ;;  %509 = vmatpush.bf16.msra.mxu3 %v6304_v4  ;;  %697 = vmatpush.bf16.msra.mxu0 %v6316_v32  ;;  %v6561_v4 = vmov 64.0  }
  0xa3   :  { %v307_v46 = vpack.c.bf16 %v306_v40, %v305_v42  ;;  %v344_v50 = vld [vmem:[#allocation2 + $0x6] sm:$0xff]  ;;  %6510 = vrcp.f32 %v6561_v4 }
  0xa4   :  { %v346_v52 = vpack.c.bf16 %v345_v51, %v344_v50 }
  0xab   :  { %5166 = vmatmul.msk.bf16.vlgmr.msrb.gmra.mxu1 %vm48_vm0, %v229_v44 }
  0xac   :  { %5179 = vmatmul.msk.bf16.vlgmr.msrb.gmra.mxu2 %vm48_vm0, %v268_v45  ;;  %432 = vmatpush.bf16.msrb.mxu1 %v6303_v43 }
  0xad   :  { %5192 = vmatmul.msk.bf16.vlgmr.msrb.gmra.mxu3 %vm48_vm0, %v307_v46  ;;  %620 = vmatpush.bf16.msrb.mxu2 %v6313_v17 }
  0xae   :  { %658 = vmatpush.bf16.msrb.mxu3 %v6315_v18 }
  0xb0   :  { %433 = vmatpush.bf16.msrb.mxu1 %v6302_v47 }
  0xb1   :  { %621 = vmatpush.bf16.msrb.mxu2 %v6312_v27 }
  0xb2   :  { %659 = vmatpush.bf16.msrb.mxu3 %v6314_v29 }
  0xb4   :  { %434 = vmatpush.bf16.msrb.mxu1 %v6301_v48 }
  0xb8   :  { %435 = vmatpush.bf16.msrb.mxu1 %v6300_v49 }
  0xbb   :  { %5205 = vmatmul.msk.bf16.vlgmr.msra.gmra.mxu1 %vm48_vm0, %v346_v52 }
  0xbc   :  { %582 = vmatpush.bf16.msra.mxu1 %v6311_v13 }
  0xc0   :  { %583 = vmatpush.bf16.msra.mxu1 %v6310_v22 }
  0xcb   :  { %5224 = vmatmul.msk.bf16.vlgmr.msrb.gmra.mxu1 %vm52_vm3, %v392_v55 }
 0x118   :  { %v154_v56 = vpop.f32.mrf.mxu1 }
 0x11f   :  { %v183_v57 = vpop.f32.mrf.mxu2 }
 0x120   :  { %v220_v58 = vpop.f32.mrf.mxu3  ;;  %v156_v59 = vpop.f32.mrf.mxu1  ;;  %v184_v1 = vadd.f32 %v183_v57, %v154_v56  ;;  %v631_v56 = vld [vmem:[#allocation2 + $0xd] sm:$0x1] }
 0x122   :  { %v225_v5 = vadd.f32 %v220_v58, %v184_v1  ;;  %v669_v58 = vld [vmem:[#allocation2 + $0xe] sm:$0x1] }
 0x127   :  { %v185_v62 = vpop.f32.mrf.mxu2 }
 0x128   :  { %v259_v63 = vpop.f32.mrf.mxu1  ;;  %v222_v0 = vpop.f32.mrf.mxu3  ;;  %v186_v10 = vadd.f32 %v185_v62, %v156_v59 }
 0x129   :  { %v264_v8 = vadd.f32 %v259_v63, %v225_v5 }
 0x12a   :  { %v226_v14 = vadd.f32 %v222_v0, %v186_v10 }
 0x12f   :  { %v298_v6 = vpop.f32.mrf.mxu2 }
 0x130   :  { %v261_v7 = vpop.f32.mrf.mxu1  ;;  %v303_v11 = vadd.f32 %v298_v6, %v264_v8  ;;  %v337_v12 = vpop.f32.mrf.mxu3 }
 0x131   :  { %v265_v23 = vadd.f32 %v261_v7, %v226_v14  ;;  %v6511_v8 = vpop.eup %6510 }
 0x132   :  { %v342_v15 = vadd.f32 %v337_v12, %v303_v11  ;;  %v724_v14 = vmul.f32 64.0, %v6511_v8  ;;  %vm728_vm6 = vweird.f32 %v6511_v8 }
 0x137   :  { %v300_v19 = vpop.f32.mrf.mxu2 }
 0x138   :  { %v376_v20 = vpop.f32.mrf.mxu1  ;;  %v304_v25 = vadd.f32 %v300_v19, %v265_v23  ;;  %v339_v30 = vpop.f32.mrf.mxu3 }
 0x139   :  { %v381_v24 = vadd.f32 %v376_v20, %v342_v15  ;;  %v725_v20 = vsub.f32 1.0, %v724_v14 }
 0x13a   :  { %v343_v31 = vadd.f32 %v339_v30, %v304_v25 }
 0x13b   :  { %v384_v26 = vadd.f32 %v6759_v16, %v381_v24  ;;  %v726_v27 = vmul.f32 %v6511_v8, %v725_v20 }
 0x13d   :  { %386 = vst.msk [vmem:[#allocation4] sm:$0xff] %vm52_vm3, %v384_v26  ;;  %v727_v32 = vadd.f32 %v6511_v8, %v726_v27 }
 0x140   :  { %v378_v33 = vpop.f32.mrf.mxu1 }
 0x141   :  { %v382_v34 = vadd.f32 %v378_v33, %v343_v31 }
 0x143   :  { %v385_v35 = vadd.f32 %v6759_v16, %v382_v34 }
 0x144   :  { %v6785_v36 = vld [vmem:[#allocation4] sm:$0xff] }
 0x145   :  { %388 = vst.msk [vmem:[#allocation4 + $0x8] sm:$0x1] %vm387_vm5, %v385_v35  ;;  %v713_v37 = vsel %vm52_vm3, %v6785_v36, 0.0 }
 0x146   :  { %714 = vadd.xlane.f32.xlu0 %v713_v37  ;;  %v6806_v37 = vsel %vm728_vm6, %v6511_v8, %v727_v32 }
 0x148   :  { %v437_v38 = vpop.f32.mrf.mxu1 }
 0x149   :  { %v438_v39 = vadd.f32 %v437_v38, %v6697_v21 }
 0x14b   :  { %442 = vst.msk [vmem:[#allocation2 + $0x3] sm:$0xff] %vm48_vm0, %v438_v39 }
 0x150   :  { %v439_v40 = vpop.f32.mrf.mxu1 }
 0x151   :  { %v440_v41 = vadd.f32 %v439_v40, %v6697_v21 }
 0x152   :  { %v451_v42 = vld [vmem:[#allocation2 + $0x1] sm:$0xff]  ;;  %v452_v43 = vld [vmem:[#allocation2 + $0x9] sm:$0x1]  ;;  %v517_v49 = vld [vmem:[#allocation2 + $0xa] sm:$0x1] }
 0x153   :  { %v444_v44 = vld [vmem:[#allocation2] sm:$0xff]  ;;  %443 = vst.msk [vmem:[#allocation2 + $0xb] sm:$0x1] %vm113_vm4, %v440_v41  ;;  %v453_v45 = vpack.c.bf16 %v452_v43, %v451_v42  ;;  %v445_v46 = vld [vmem:[#allocation2 + $0x8] sm:$0x1] }
 0x154   :  { %v516_v47 = vld [vmem:[#allocation2 + $0x2] sm:$0xff]  ;;  %v446_v48 = vpack.c.bf16 %v445_v46, %v444_v44 }
 0x155   :  { %5237 = vmatmul.msk.bf16.vlgmr.msra.gmra.mxu2 %vm48_vm0, %v453_v45  ;;  %v518_v50 = vpack.c.bf16 %v517_v49, %v516_v47  ;;  %v554_v51 = vld [vmem:[#allocation2 + $0x3] sm:$0xff] }
 0x156   :  { %5246 = vmatmul.msk.bf16.vlgmr.msra.gmra.mxu3 %vm48_vm0, %v446_v48 }
 0x157   :  { %5259 = vmatmul.msk.bf16.vlgmr.msrb.gmra.mxu0 %vm48_vm0, %v518_v50 }
 0x15a   :  { %v555_v52 = vld [vmem:[#allocation2 + $0xb] sm:$0x1] }
 0x15b   :  { %v556_v21 = vpack.c.bf16 %v555_v52, %v554_v51  ;;  %v592_v53 = vld [vmem:[#allocation2 + $0x4] sm:$0xff] }
 0x15c   :  { %v630_v55 = vld [vmem:[#allocation2 + $0x5] sm:$0xff]  ;;  %v594_v59 = vpack.c.bf16 %v593_v54, %v592_v53 }
 0x15d   :  { %5272 = vmatmul.msk.bf16.vlgmr.msra.gmra.mxu1 %vm48_vm0, %v556_v21  ;;  %v668_v57 = vld [vmem:[#allocation2 + $0x6] sm:$0xff]  ;;  %v632_v60 = vpack.c.bf16 %v631_v56, %v630_v55 }
 0x15e   :  { %v670_v61 = vpack.c.bf16 %v669_v58, %v668_v57 }
 0x165   :  { %5285 = vmatmul.msk.bf16.vlgmr.msrb.gmra.mxu2 %vm48_vm0, %v594_v59 }
 0x166   :  { %5298 = vmatmul.msk.bf16.vlgmr.msrb.gmra.mxu3 %vm48_vm0, %v632_v60 }
 0x167   :  { %5311 = vmatmul.msk.bf16.vlgmr.msra.gmra.mxu0 %vm48_vm0, %v670_v61  ;;  %v6496_v61 = vld [vmem:[%s8719_s8 + $0x1] ss:$0 sm:$0xff] }
 0x1b9   :  { %v715_v38 = vpop.xlane.xlu0 %714 }
 0x1ba   :  { %v730_v39 = vmul.f32 %v6806_v37, %v715_v38 }
 0x1bc   :  { %v733_v41 = vsub.f32 %v6785_v36, %v730_v39 }
 0x1be   :  { %v736_v43 = vmul.f32 %v733_v41, %v733_v41 }
 0x1d4   :  { %v547_v62 = vpop.f32.mrf.mxu0 }
 0x1d8   :  { %v482_v63 = vpop.f32.mrf.mxu2 }
 0x1d9   :  { %v511_v0 = vpop.f32.mrf.mxu3 }
 0x1da   :  { %v512_v1 = vadd.f32 %v511_v0, %v482_v63  ;;  %v585_v7 = vpop.f32.mrf.mxu1  ;;  %v6497_v63 = vld [vmem:[%s8719_s8 + $0x2] ss:$0 sm:$0xff] }
 0x1dc   :  { %v549_v2 = vpop.f32.mrf.mxu0  ;;  %v552_v6 = vadd.f32 %v547_v62, %v512_v1 }
 0x1de   :  { %v590_v9 = vadd.f32 %v585_v7, %v552_v6 }
 0x1e0   :  { %v484_v3 = vpop.f32.mrf.mxu2 }
 0x1e1   :  { %v513_v5 = vpop.f32.mrf.mxu3 }
 0x1e2   :  { %v514_v10 = vadd.f32 %v513_v5, %v484_v3  ;;  %v587_v22 = vpop.f32.mrf.mxu1 }
 0x1e4   :  { %v699_v15 = vpop.f32.mrf.mxu0  ;;  %v553_v17 = vadd.f32 %v549_v2, %v514_v10 }
 0x1e6   :  { %v591_v23 = vadd.f32 %v587_v22, %v553_v17 }
 0x1e8   :  { %v623_v11 = vpop.f32.mrf.mxu2 }
 0x1e9   :  { %v628_v12 = vadd.f32 %v623_v11, %v590_v9  ;;  %v661_v13 = vpop.f32.mrf.mxu3 }
 0x1eb   :  { %v666_v18 = vadd.f32 %v661_v13, %v628_v12 }
 0x1ec   :  { %v701_v30 = vpop.f32.mrf.mxu0 }
 0x1ed   :  { %v704_v19 = vadd.f32 %v699_v15, %v666_v18 }
 0x1ef   :  { %v706_v24 = vadd.f32 %v6759_v16, %v704_v19 }
 0x1f0   :  { %v625_v25 = vpop.f32.mrf.mxu2 }
 0x1f1   :  { %708 = vst.msk [vmem:[#allocation4 + $0x9] sm:$0xff] %vm52_vm3, %v706_v24  ;;  %v629_v26 = vadd.f32 %v625_v25, %v591_v23  ;;  %v663_v28 = vpop.f32.mrf.mxu3  ;;  %v804_v25 = vld [vmem:[%s8720_s3] sm:$0x7f] }
 0x1f3   :  { %v667_v29 = vadd.f32 %v663_v28, %v629_v26 }
 0x1f5   :  { %v705_v31 = vadd.f32 %v701_v30, %v667_v29  ;;  %v6839_v29 = vperm.slane %v804_v25, 0  ;;  %v6841_v30 = vperm.slane %v804_v25, 1 }
 0x1f7   :  { %v707_v33 = vadd.f32 %v6759_v16, %v705_v31  ;;  %v739_v16 = vsel %vm52_vm3, %v736_v43, 0.0 }
 0x1f8   :  { %v711_v34 = vld [vmem:[#allocation4 + $0x8] sm:$0xff] }
 0x1f9   :  { %709 = vst.msk [vmem:[#allocation4 + $0x11] sm:$0x1] %vm387_vm5, %v707_v33  ;;  %v716_v35 = vsel %vm52_vm3, %v711_v34, 0.0 }
 0x1fa   :  { %717 = vadd.xlane.f32.xlu0 %v716_v35 }
 0x200   :  { %v712_v40 = vld [vmem:[#allocation4 + $0x10] sm:$0x3] }
 0x201   :  { %v720_v42 = vsel %vm719_vm7, %v712_v40, 0.0 }
 0x202   :  { %721 = vadd.xlane.f32.xlu1 %v720_v42  ;;  %v6848_v42 = vperm.slane %v804_v25, 2 }
 0x20a   :  { %740 = vadd.xlane.f32.xlu1 %v739_v16 }
 0x26d   :  { %v718_v44 = vpop.xlane.xlu0 %717 }
 0x26e   :  { %v731_v45 = vmul.f32 %v6806_v37, %v718_v44 }
 0x270   :  { %v734_v46 = vsub.f32 %v711_v34, %v731_v45 }
 0x272   :  { %v737_v47 = vmul.f32 %v734_v46, %v734_v46 }
 0x274   :  { %v742_v48 = vsel %vm52_vm3, %v737_v47, 0.0 }
 0x275   :  { %v722_v49 = vpop.xlane.xlu1 %721  ;;  %743 = vadd.xlane.f32.xlu2 %v742_v48  ;;  %v6857_v48 = vperm.slane %v804_v25, 3 }
 0x276   :  { %v732_v50 = vmul.f32 %v6806_v37, %v722_v49 }
 0x278   :  { %v6815_v51 = vsub.f32 %v712_v40, %v732_v50 }
 0x27a   :  { %v738_v36 = vmul.f32 %v6815_v51, %v6815_v51 }
 0x27c   :  { %v745_v52 = vsel %vm719_vm7, %v738_v36, 0.0 }
 0x27d   :  { %v741_v21 = vpop.xlane.xlu1 %740  ;;  %746 = vadd.xlane.f32.xlu2 %v745_v52  ;;  %v838_v52 = vld [vmem:[#allocation3 + $0xc] sm:$0x1] }
 0x27e   :  { %v748_v53 = vmul.f32 %v741_v21, %v6806_v37  ;;  %v6860_v21 = vperm.slane %v804_v25, 4 }
 0x280   :  { %v751_v54 = vadd.f32 1e-06, %v748_v53 }
 0x282   :  { %6512 = vrsqrt.f32 %v751_v54  ;;  %vm760_vm9 = vweird.f32 %v751_v54 }
 0x288   :  { %v6513_v55 = vpop.eup %6512 }
 0x289   :  { %v755_v56 = vmul.f32 %v6513_v55, %v751_v54  ;;  %vm761_vm8 = vweird.f32 %v6513_v55 }
 0x28a   :  { %vm762_vm10 = vmor %vm760_vm9, %vm761_vm8 }
 0x28b   :  { %v756_v57 = vmul.f32 %v6513_v55, %v755_v56  ;;  %v6863_v56 = vperm.slane %v804_v25, 5 }
 0x28d   :  { %v757_v58 = vmul.f32 0.5, %v756_v57 }
 0x28f   :  { %v758_v59 = vsub.f32 1.5, %v757_v58  ;;  %v841_v58 = vmul.f32 %v6860_v21, %v838_v52  ;;  %v901_v52 = vld [vmem:[#allocation3 + $0xe] sm:$0x1] }
 0x291   :  { %v759_v60 = vmul.f32 %v6513_v55, %v758_v59  ;;  %v6867_v59 = vperm.slane %v804_v25, 6 }
 0x293   :  { %v763_v62 = vsel %vm762_vm10, %v6513_v55, %v759_v60  ;;  %v845_v55 = vld [vmem:[#allocation3 + $0xd] sm:$0x1] }
 0x294   :  { %v784_v0 = vmul.f32 %v763_v62, %v733_v41 }
 0x296   :  { %v788_v1 = vmul.f32 %v6496_v61, %v784_v0 }
 0x298   :  { %v6827_v2 = vadd.f32 %v6497_v63, %v788_v1 }
 0x29a   :  { %801 = vst.msk [vmem:[#allocation4] sm:$0xff] %vm52_vm3, %v6827_v2 }
 0x2a1   :  { %v805_v3 = vld [vmem:[#allocation4] sm:$0xff] }
 0x2a2   :  { %807 = vst.msk [vmem:[#allocation3 + $0x3] sm:$0xff] %vm52_vm3, %v805_v3 }
 0x2a9   :  { %v809_v31 = vld [vmem:[#allocation3] sm:$0xff]  ;;  %v810_v40 = vld [vmem:[#allocation3 + $0x8] sm:$0x1]  ;;  %v817_v41 = vld [vmem:[#allocation3 + $0x9] sm:$0x1] }
 0x2aa   :  { %v816_v32 = vld [vmem:[#allocation3 + $0x1] sm:$0xff]  ;;  %v812_v38 = vmul.f32 %v6839_v29, %v809_v31  ;;  %v813_v45 = vmul.f32 %v6839_v29, %v810_v40 }
 0x2ab   :  { %v819_v39 = vmul.f32 %v6841_v30, %v816_v32  ;;  %v823_v16 = vld [vmem:[#allocation3 + $0x2] sm:$0xff] }
 0x2ac   :  { %v826_v49 = vmul.f32 %v6848_v42, %v823_v16  ;;  %v830_v50 = vld [vmem:[#allocation3 + $0x3] sm:$0xff] }
 0x2ad   :  { %v821_v47 = vadd.f32 %v819_v39, %v812_v38  ;;  %v833_v57 = vmul.f32 %v6857_v48, %v830_v50  ;;  %v889_v38 = vld [vmem:[#allocation3 + $0xc] sm:$0x1] }
 0x2ae   :  { %v891_v50 = vmul.f32 %v889_v38, %v6860_v21  ;;  %v6318_v38 = vld [vmem:[%s8721_s4] sm:$0xff] }
 0x2af   :  { %v828_v53 = vadd.f32 %v826_v49, %v821_v47 }
 0x2e8   :  { %v744_v4 = vpop.xlane.xlu2 %743 }
 0x2e9   :  { %v749_v5 = vmul.f32 %v744_v4, %v6806_v37 }
 0x2eb   :  { %v752_v6 = vadd.f32 1e-06, %v749_v5  ;;  %v835_v5 = vadd.f32 %v833_v57, %v828_v53 }
 0x2ed   :  { %6514 = vrsqrt.f32 %v752_v6  ;;  %vm770_vm12 = vweird.f32 %v752_v6 }
 0x2f0   :  { %v747_v7 = vpop.xlane.xlu2 %746 }
 0x2f1   :  { %v750_v8 = vmul.f32 %v747_v7, %v6806_v37  ;;  %v852_v7 = vld [vmem:[#allocation3 + $0xe] sm:$0x1] }
 0x2f3   :  { %v6515_v9 = vpop.eup %6514  ;;  %v753_v10 = vadd.f32 1e-06, %v750_v8  ;;  %v848_v8 = vmul.f32 %v6863_v56, %v845_v55 }
 0x2f4   :  { %v765_v11 = vmul.f32 %v6515_v9, %v752_v6  ;;  %vm771_vm11 = vweird.f32 %v6515_v9 }
 0x2f5   :  { %6516 = vrsqrt.f32 %v753_v10  ;;  %vm772_vm13 = vmor %vm770_vm12, %vm771_vm11  ;;  %vm780_vm15 = vweird.f32 %v753_v10 }
 0x2f6   :  { %v766_v12 = vmul.f32 %v6515_v9, %v765_v11 }
 0x2f8   :  { %v767_v13 = vmul.f32 0.5, %v766_v12  ;;  %v855_v12 = vmul.f32 %v6867_v59, %v852_v7 }
 0x2fa   :  { %v768_v14 = vsub.f32 1.5, %v767_v13 }
 0x2fb   :  { %v6517_v15 = vpop.eup %6516 }
 0x2fc   :  { %v769_v17 = vmul.f32 %v6515_v9, %v768_v14  ;;  %v775_v18 = vmul.f32 %v6517_v15, %v753_v10  ;;  %vm781_vm14 = vweird.f32 %v6517_v15 }
 0x2fd   :  { %vm782_vm0 = vmor %vm780_vm15, %vm781_vm14 }
 0x2fe   :  { %v773_v19 = vsel %vm772_vm13, %v6515_v9, %v769_v17  ;;  %v776_v20 = vmul.f32 %v6517_v15, %v775_v18 }
 0x2ff   :  { %v785_v22 = vmul.f32 %v773_v19, %v734_v46  ;;  %v820_v46 = vmul.f32 %v6841_v30, %v817_v41  ;;  %v795_v19 = vld [vmem:[%s8719_s8 + $0x5] sm:$0x1] }
 0x300   :  { %v777_v23 = vmul.f32 0.5, %v776_v20 }
 0x301   :  { %v789_v24 = vmul.f32 %v6496_v61, %v785_v22  ;;  %v822_v36 = vadd.f32 %v820_v46, %v813_v45  ;;  %v895_v46 = vld [vmem:[#allocation3 + $0xd] sm:$0x1] }
 0x302   :  { %v778_v26 = vsub.f32 1.5, %v777_v23  ;;  %v897_v57 = vmul.f32 %v895_v46, %v6863_v56 }
 0x303   :  { %v6837_v27 = vadd.f32 %v6497_v63, %v789_v24 }
 0x304   :  { %v779_v28 = vmul.f32 %v6517_v15, %v778_v26 }
 0x305   :  { %802 = vst.msk [vmem:[#allocation4 + $0x8] sm:$0xff] %vm52_vm3, %v6837_v27 }
 0x306   :  { %v783_v33 = vsel %vm782_vm0, %v6517_v15, %v779_v28 }
 0x307   :  { %v786_v34 = vmul.f32 %v783_v33, %v6815_v51  ;;  %v824_v51 = vld [vmem:[#allocation3 + $0xa] sm:$0x1] }
 0x308   :  { %v827_v54 = vmul.f32 %v6848_v42, %v824_v51 }
 0x309   :  { %v790_v35 = vmul.f32 %v6496_v61, %v786_v34 }
 0x30b   :  { %v6850_v43 = vadd.f32 %v6497_v63, %v790_v35  ;;  %v829_v63 = vadd.f32 %v827_v54, %v822_v36 }
 0x30c   :  { %v806_v44 = vld [vmem:[#allocation4 + $0x8] sm:$0x1] }
 0x30d   :  { %808 = vst.msk [vmem:[#allocation3 + $0xb] sm:$0x1] %vm387_vm5, %v806_v44 }
 0x30e   :  { %803 = vst.msk [vmem:[#allocation4 + $0x10] sm:$0x3] %vm719_vm7, %v6850_v43 }
 0x314   :  { %v831_v60 = vld [vmem:[#allocation3 + $0xb] sm:$0x1] }
 0x315   :  { %v837_v61 = vld [vmem:[#allocation3 + $0x4] sm:$0xff]  ;;  %v834_v0 = vmul.f32 %v6857_v48, %v831_v60  ;;  %v860_v3 = vld [vmem:[#allocation4 + $0x9] sm:$0xff]  ;;  %v861_v4 = vld [vmem:[#allocation4 + $0x11] sm:$0x1] }
 0x316   :  { %v844_v62 = vld [vmem:[#allocation3 + $0x5] sm:$0xff]  ;;  %v840_v6 = vmul.f32 %v6860_v21, %v837_v61 }
 0x317   :  { %v851_v1 = vld [vmem:[#allocation3 + $0x6] sm:$0xff]  ;;  %v836_v9 = vadd.f32 %v834_v0, %v829_v63  ;;  %v847_v11 = vmul.f32 %v6863_v56, %v844_v62  ;;  %v903_v63 = vmul.f32 %v901_v52, %v6867_v59 }
 0x318   :  { %862 = vst.msk [vmem:[#allocation3 + $0x3] sm:$0xff] %vm52_vm3, %v860_v3  ;;  %v842_v10 = vadd.f32 %v840_v6, %v835_v5  ;;  %v854_v15 = vmul.f32 %v6867_v59, %v851_v1 }
 0x319   :  { %863 = vst.msk [vmem:[#allocation3 + $0xb] sm:$0x1] %vm387_vm5, %v861_v4  ;;  %v843_v13 = vadd.f32 %v841_v58, %v836_v9 }
 0x31a   :  { %v849_v14 = vadd.f32 %v847_v11, %v842_v10 }
 0x31b   :  { %v850_v17 = vadd.f32 %v848_v8, %v843_v13 }
 0x31c   :  { %v856_v18 = vadd.f32 %v854_v15, %v849_v14 }
 0x31d   :  { %v857_v20 = vadd.f32 %v855_v12, %v850_v17 }
 0x31e   :  { %858 = vst.msk [vmem:[#allocation4] sm:$0xff] %vm52_vm3, %v856_v18 }
 0x31f   :  { %v864_v22 = vld [vmem:[#allocation3] sm:$0xff]  ;;  %v865_v23 = vld [vmem:[#allocation3 + $0x8] sm:$0x1]  ;;  %v871_v28 = vld [vmem:[#allocation3 + $0x9] sm:$0x1] }
 0x320   :  { %v870_v24 = vld [vmem:[#allocation3 + $0x1] sm:$0xff]  ;;  %v866_v25 = vmul.f32 %v864_v22, %v6839_v29  ;;  %v867_v26 = vmul.f32 %v865_v23, %v6839_v29  ;;  %v877_v33 = vld [vmem:[#allocation3 + $0xa] sm:$0x1]  ;;  %859 = vst.msk [vmem:[#allocation4 + $0x8] sm:$0x1] %vm387_vm5, %v857_v20  ;;  %v873_v34 = vmul.f32 %v871_v28, %v6841_v30  ;;  %v911_v29 = vperm.slane %v795_v19, 0 }
 0x321   :  { %v872_v31 = vmul.f32 %v870_v24, %v6841_v30  ;;  %v876_v32 = vld [vmem:[#allocation3 + $0x2] sm:$0xff]  ;;  %v883_v41 = vld [vmem:[#allocation3 + $0xb] sm:$0x1]  ;;  %v879_v44 = vmul.f32 %v877_v33, %v6848_v42 }
 0x322   :  { %v882_v35 = vld [vmem:[#allocation3 + $0x3] sm:$0xff]  ;;  %v878_v40 = vmul.f32 %v876_v32, %v6848_v42  ;;  %v875_v16 = vadd.f32 %v873_v34, %v867_v26  ;;  %v885_v30 = vmul.f32 %v883_v41, %v6857_v48 }
 0x323   :  { %v874_v39 = vadd.f32 %v872_v31, %v866_v25  ;;  %v888_v45 = vld [vmem:[#allocation3 + $0x4] sm:$0xff]  ;;  %v884_v49 = vmul.f32 %v882_v35, %v6857_v48  ;;  %v6319_v35 = vld [vmem:[%s8721_s4 + $0x8] sm:$0xff] }
 0x324   :  { %v881_v51 = vadd.f32 %v879_v44, %v875_v16  ;;  %v894_v36 = vld [vmem:[#allocation3 + $0x5] sm:$0xff]  ;;  %v890_v54 = vmul.f32 %v888_v45, %v6860_v21 }
 0x325   :  { %v880_v47 = vadd.f32 %v878_v40, %v874_v39  ;;  %v908_v55 = vld [vmem:[#allocation4] sm:$0xff]  ;;  %v900_v58 = vld [vmem:[#allocation3 + $0x6] sm:$0xff]  ;;  %v896_v62 = vmul.f32 %v894_v36, %v6863_v56 }
 0x326   :  { %v887_v42 = vadd.f32 %v885_v30, %v881_v51  ;;  %v912_v60 = vadd.f32 %v911_v29, %v908_v55  ;;  %v902_v3 = vmul.f32 %v900_v58, %v6867_v59  ;;  %v6321_v31 = vld [vmem:[%s8721_s4 + $0x18] sm:$0xff]  ;;  %v6320_v34 = vld [vmem:[%s8721_s4 + $0x10] sm:$0xff] }
 0x327   :  { %v886_v53 = vadd.f32 %v884_v49, %v880_v47  ;;  %1034 = vmatpush.bf16.msrb.mxu1 %v6321_v31 }
 0x328   :  { %v893_v0 = vadd.f32 %v891_v50, %v887_v42  ;;  %v915_v1 = vsel %vm52_vm3, %v912_v60, 0.0 }
 0x329   :  { %v892_v61 = vadd.f32 %v890_v54, %v886_v53  ;;  %916 = vadd.xlane.f32.xlu0 %v915_v1 }
 0x32a   :  { %v899_v4 = vadd.f32 %v897_v57, %v893_v0 }
 0x32b   :  { %v898_v48 = vadd.f32 %v896_v62, %v892_v61  ;;  %1035 = vmatpush.bf16.msrb.mxu1 %v6320_v34  ;;  %v6498_v61 = vld [vmem:[%s8719_s8 + $0x6] ss:$0 sm:$0xff] }
 0x32c   :  { %v905_v5 = vadd.f32 %v903_v63, %v899_v4 }
 0x32d   :  { %v904_v21 = vadd.f32 %v902_v3, %v898_v48  ;;  %v6499_v48 = vld [vmem:[%s8719_s8 + $0x7] ss:$0 sm:$0xff] }
 0x32e   :  { %907 = vst.msk [vmem:[#allocation4 + $0x11] sm:$0x1] %vm387_vm5, %v905_v5 }
 0x32f   :  { %906 = vst.msk [vmem:[#allocation4 + $0x9] sm:$0xff] %vm52_vm3, %v904_v21  ;;  %1036 = vmatpush.bf16.msrb.mxu1 %v6319_v35 }
 0x333   :  { %1037 = vmatpush.bf16.msrb.mxu1 %v6318_v38 }
 0x336   :  { %v909_v6 = vld [vmem:[#allocation4 + $0x8] sm:$0xff]  ;;  %v910_v7 = vld [vmem:[#allocation4 + $0x10] sm:$0x3] }
 0x337   :  { %v913_v8 = vadd.f32 %v911_v29, %v909_v6  ;;  %v914_v56 = vadd.f32 %v911_v29, %v910_v7 }
 0x339   :  { %v918_v9 = vsel %vm52_vm3, %v913_v8, 0.0  ;;  %v921_v10 = vsel %vm719_vm7, %v914_v56, 0.0 }
 0x33a   :  { %919 = vadd.xlane.f32.xlu1 %v918_v9  ;;  %922 = vadd.xlane.f32.xlu2 %v921_v10 }
 0x39c   :  { %v917_v11 = vpop.xlane.xlu0 %916 }
 0x39d   :  { %v924_v59 = vmul.f32 %v917_v11, %v6806_v37 }
 0x39f   :  { %v927_v12 = vsub.f32 %v912_v60, %v924_v59 }
 0x3a1   :  { %v930_v13 = vmul.f32 %v927_v12, %v927_v12 }
 0x3a3   :  { %v933_v14 = vsel %vm52_vm3, %v930_v13, 0.0  ;;  %v6328_v13 = vld [vmem:[%s8722_s5 + $0x30] sm:$0xff] }
 0x3a4   :  { %934 = vadd.xlane.f32.xlu0 %v933_v14  ;;  %v6327_v14 = vld [vmem:[%s8722_s5 + $0x28] sm:$0xff] }
 0x3ad   :  { %v920_v15 = vpop.xlane.xlu1 %919  ;;  %v923_v17 = vpop.xlane.xlu2 %922 }
 0x3ae   :  { %v925_v18 = vmul.f32 %v920_v15, %v6806_v37  ;;  %v926_v19 = vmul.f32 %v923_v17, %v6806_v37  ;;  %v6326_v15 = vld [vmem:[%s8722_s5 + $0x20] sm:$0xff]  ;;  %v6325_v17 = vld [vmem:[%s8722_s5 + $0x18] sm:$0xff] }
 0x3b0   :  { %v928_v20 = vsub.f32 %v913_v8, %v925_v18  ;;  %v6905_v22 = vsub.f32 %v914_v56, %v926_v19  ;;  %v6324_v18 = vld [vmem:[%s8722_s5 + $0x10] sm:$0xff]  ;;  %v6500_v19 = vld [vmem:[%s8716_s9] ss:$0 sm:$0xff] }
 0x3b2   :  { %v931_v23 = vmul.f32 %v928_v20, %v928_v20  ;;  %v932_v24 = vmul.f32 %v6905_v22, %v6905_v22 }
 0x3b4   :  { %v936_v25 = vsel %vm52_vm3, %v931_v23, 0.0  ;;  %v939_v26 = vsel %vm719_vm7, %v932_v24, 0.0  ;;  %v6322_v23 = vld [vmem:[%s8722_s5] sm:$0xff] }
 0x3b5   :  { %937 = vadd.xlane.f32.xlu1 %v936_v25  ;;  %940 = vadd.xlane.f32.xlu2 %v939_v26 }
 0x417   :  { %v935_v28 = vpop.xlane.xlu0 %934 }
 0x418   :  { %v942_v32 = vmul.f32 %v935_v28, %v6806_v37 }
 0x41a   :  { %v945_v33 = vadd.f32 1e-06, %v942_v32 }
 0x41c   :  { %6518 = vrsqrt.f32 %v945_v33  ;;  %vm954_vm2 = vweird.f32 %v945_v33 }
 0x422   :  { %v6519_v39 = vpop.eup %6518 }
 0x423   :  { %v949_v40 = vmul.f32 %v6519_v39, %v945_v33  ;;  %vm955_vm1 = vweird.f32 %v6519_v39 }
 0x424   :  { %vm956_vm4 = vmor %vm954_vm2, %vm955_vm1 }
 0x425   :  { %v950_v41 = vmul.f32 %v6519_v39, %v949_v40 }
 0x427   :  { %v951_v47 = vmul.f32 0.5, %v950_v41 }
 0x428   :  { %v938_v16 = vpop.xlane.xlu1 %937  ;;  %v941_v44 = vpop.xlane.xlu2 %940 }
 0x429   :  { %v943_v45 = vmul.f32 %v938_v16, %v6806_v37  ;;  %v944_v29 = vmul.f32 %v941_v44, %v6806_v37  ;;  %v952_v50 = vsub.f32 1.5, %v951_v47 }
 0x42b   :  { %v946_v46 = vadd.f32 1e-06, %v943_v45  ;;  %v947_v49 = vadd.f32 1e-06, %v944_v29  ;;  %v953_v36 = vmul.f32 %v6519_v39, %v952_v50 }
 0x42d   :  { %6520 = vrsqrt.f32 %v946_v46  ;;  %v957_v57 = vsel %vm956_vm4, %v6519_v39, %v953_v36  ;;  %vm964_vm8 = vweird.f32 %v946_v46  ;;  %vm974_vm11 = vweird.f32 %v947_v49 }
 0x42e   :  { %6522 = vrsqrt.f32 %v947_v49  ;;  %v978_v62 = vmul.f32 %v957_v57, %v927_v12  ;;  %v6329_v12 = vld [vmem:[%s8722_s5 + $0x38] sm:$0xff] }
 0x42f   :  { %1142 = vmatpush.bf16.msra.mxu2 %v6329_v12 }
 0x430   :  { %v982_v3 = vmul.f32 %v6498_v61, %v978_v62 }
 0x432   :  { %v986_v6 = vadd.f32 %v6499_v48, %v982_v3 }
 0x433   :  { %v6521_v51 = vpop.eup %6520  ;;  %1143 = vmatpush.bf16.msra.mxu2 %v6328_v13 }
 0x434   :  { %v6523_v30 = vpop.eup %6522  ;;  %v959_v52 = vmul.f32 %v6521_v51, %v946_v46  ;;  %vm965_vm6 = vweird.f32 %v6521_v51 }
 0x435   :  { %v969_v53 = vmul.f32 %v6523_v30, %v947_v49  ;;  %vm966_vm9 = vmor %vm964_vm8, %vm965_vm6  ;;  %vm975_vm10 = vweird.f32 %v6523_v30 }
 0x436   :  { %v960_v54 = vmul.f32 %v6521_v51, %v959_v52  ;;  %vm976_vm12 = vmor %vm974_vm11, %vm975_vm10 }
 0x437   :  { %v970_v55 = vmul.f32 %v6523_v30, %v969_v53  ;;  %1144 = vmatpush.bf16.msra.mxu2 %v6327_v14 }
 0x438   :  { %v961_v42 = vmul.f32 0.5, %v960_v54 }
 0x439   :  { %v971_v58 = vmul.f32 0.5, %v970_v55 }
 0x43a   :  { %v962_v60 = vsub.f32 1.5, %v961_v42 }
 0x43b   :  { %v972_v0 = vsub.f32 1.5, %v971_v58  ;;  %1145 = vmatpush.bf16.msra.mxu2 %v6326_v15 }
 0x43c   :  { %v963_v63 = vmul.f32 %v6521_v51, %v962_v60 }
 0x43d   :  { %v973_v5 = vmul.f32 %v6523_v30, %v972_v0  ;;  %v6501_v0 = vld [vmem:[%s8719_s8 + $0x8] ss:$0 sm:$0xff] }
 0x43e   :  { %v967_v1 = vsel %vm966_vm9, %v6521_v51, %v963_v63 }
 0x43f   :  { %v979_v4 = vmul.f32 %v967_v1, %v928_v20  ;;  %v977_v56 = vsel %vm976_vm12, %v6523_v30, %v973_v5  ;;  %1146 = vmatpush.bf16.msra.mxu2 %v6325_v17  ;;  %v6323_v20 = vld [vmem:[%s8722_s5 + $0x8] sm:$0xff] }
 0x440   :  { %v980_v9 = vmul.f32 %v977_v56, %v6905_v22  ;;  %v6502_v1 = vld [vmem:[%s8719_s8 + $0x9] ss:$0 sm:$0xff] }
 0x441   :  { %v983_v21 = vmul.f32 %v6498_v61, %v979_v4 }
 0x442   :  { %v984_v10 = vmul.f32 %v6498_v61, %v980_v9 }
 0x443   :  { %v987_v7 = vadd.f32 %v6499_v48, %v983_v21  ;;  %1147 = vmatpush.bf16.msra.mxu2 %v6324_v18 }
 0x444   :  { %v988_v11 = vadd.f32 %v6499_v48, %v984_v10 }
 0x445   :  { %v989_v8 = vpack.c.bf16 %v987_v7, %v986_v6 }
 0x446   :  { %v990_v59 = vpack.c.bf16 %v988_v11, %v988_v11 }
 0x447   :  { %5328 = vmatmul.msk.bf16.vlgmr.msrb.gmra.mxu1 %vm52_vm3, %v989_v8  ;;  %1148 = vmatpush.bf16.msra.mxu2 %v6323_v20 }
 0x44b   :  { %1149 = vmatpush.bf16.msra.mxu2 %v6322_v23 }
 0x457   :  { %5329 = vmatmul.msk.bf16.gmra.mxu1 %vm52_vm3, %v990_v59 }
 0x4c4   :  { %v1039_v22 = vpop.f32.mrf.mxu1 }
 0x4c5   :  { %v1040_v24 = vadd.f32 %v6500_v19, %v1039_v22 }
 0x4c7   :  { %v1048_v25 = vmul.f32 %v1040_v24, %v1040_v24 }
 0x4c9   :  { %v1051_v26 = vmul.f32 %v1048_v25, %v1040_v24 }
 0x4cb   :  { %v1054_v28 = vmul.f32 0.044715, %v1051_v26 }
 0x4cc   :  { %v1041_v31 = vpop.f32.mrf.mxu1 }
 0x4cd   :  { %v1057_v32 = vadd.f32 %v1054_v28, %v1040_v24  ;;  %v1042_v33 = vadd.f32 %v6500_v19, %v1041_v31 }
 0x4cf   :  { %v1060_v34 = vmul.f32 0.7978846, %v1057_v32  ;;  %v1049_v35 = vmul.f32 %v1042_v33, %v1042_v33 }
 0x4d1   :  { %v1052_v38 = vmul.f32 %v1049_v35, %v1042_v33  ;;  %6524 = vtanh.f32 %v1060_v34 }
 0x4d3   :  { %v1055_v39 = vmul.f32 0.044715, %v1052_v38 }
 0x4d4   :  { %v1044_v40 = vpop.f32.mrf.mxu1 }
 0x4d5   :  { %v1058_v41 = vadd.f32 %v1055_v39, %v1042_v33  ;;  %v1045_v16 = vadd.f32 %v6500_v19, %v1044_v40  ;;  %v1218_v40 = vld [vmem:[#allocation3 + $0xd] sm:$0x1] }
 0x4d7   :  { %v1061_v44 = vmul.f32 0.7978846, %v1058_v41  ;;  %v1050_v45 = vmul.f32 %v1045_v16, %v1045_v16  ;;  %v6525_v29 = vpop.eup %6524 }
 0x4d8   :  { %v1066_v49 = vadd.f32 1.0, %v6525_v29 }
 0x4d9   :  { %6526 = vtanh.f32 %v1061_v44  ;;  %v1053_v46 = vmul.f32 %v1050_v45, %v1045_v16 }
 0x4da   :  { %v1069_v52 = vmul.f32 0.5, %v1066_v49 }
 0x4db   :  { %v1056_v47 = vmul.f32 0.044715, %v1053_v46 }
 0x4dc   :  { %v1046_v50 = vpop.f32.mrf.mxu1  ;;  %v1072_v55 = vmul.f32 %v1069_v52, %v1040_v24 }
 0x4dd   :  { %v1059_v51 = vadd.f32 %v1056_v47, %v1045_v16 }
 0x4df   :  { %v6527_v30 = vpop.eup %6526  ;;  %v1062_v36 = vmul.f32 0.7978846, %v1059_v51 }
 0x4e0   :  { %v1067_v53 = vadd.f32 1.0, %v6527_v30 }
 0x4e1   :  { %6528 = vtanh.f32 %v1062_v36 }
 0x4e2   :  { %v1070_v54 = vmul.f32 0.5, %v1067_v53 }
 0x4e4   :  { %v1073_v57 = vmul.f32 %v1070_v54, %v1042_v33  ;;  %v1211_v33 = vld [vmem:[#allocation3 + $0xc] sm:$0x1] }
 0x4e6   :  { %v1075_v42 = vpack.c.bf16 %v1073_v57, %v1072_v55  ;;  %v1225_v55 = vld [vmem:[#allocation3 + $0xe] sm:$0x1] }
 0x4e7   :  { %v6529_v58 = vpop.eup %6528 }
 0x4e8   :  { %1150 = vmatmul.bf16.vlgmr.msra.gmra.mxu2 %v1075_v42  ;;  %v1068_v60 = vadd.f32 1.0, %v6529_v58 }
 0x4ea   :  { %v1071_v61 = vmul.f32 0.5, %v1068_v60 }
 0x4ec   :  { %v1074_v62 = vmul.f32 %v1071_v61, %v1045_v16 }
 0x4ee   :  { %v1076_v63 = vpack.c.bf16 %v1074_v62, %v1074_v62 }
 0x4f8   :  { %1155 = vmatmul.bf16.gmra.mxu2 %v1076_v63 }
 0x56b   :  { %v1151_v48 = vpop.f32.mrf.mxu2 }
 0x56c   :  { %v1152_v3 = vadd.f32 %v6501_v0, %v1151_v48 }
 0x56e   :  { %v1161_v4 = vmul.f32 %v6502_v1, %v1152_v3  ;;  %v1167_v3 = vld [vmem:[%s8719_s8 + $0xa] sm:$0x1] }
 0x570   :  { %v6969_v21 = vadd.f32 %v1161_v4, %v6827_v2  ;;  %v5362_v2 = vld [vmem:[%s8720_s3 + $0x8] sm:$0x7f] }
 0x571   :  { %v1184_v59 = vperm.slane %v5362_v2, 0  ;;  %v6982_v12 = vperm.slane %v5362_v2, 1  ;;  %v6987_v14 = vperm.slane %v5362_v2, 2  ;;  %v6993_v24 = vperm.slane %v5362_v2, 3 }
 0x572   :  { %1173 = vst.msk [vmem:[#allocation4] sm:$0xff] %vm52_vm3, %v6969_v21  ;;  %v6996_v34 = vperm.slane %v5362_v2, 4  ;;  %v7000_v41 = vperm.slane %v5362_v2, 5  ;;  %v7004_v46 = vperm.slane %v5362_v2, 6 }
 0x573   :  { %v1153_v5 = vpop.f32.mrf.mxu2 }
 0x574   :  { %v1154_v6 = vadd.f32 %v6501_v0, %v1153_v5  ;;  %v1214_v29 = vmul.f32 %v6996_v34, %v1211_v33  ;;  %v1221_v42 = vmul.f32 %v7000_v41, %v1218_v40  ;;  %v1228_v62 = vmul.f32 %v7004_v46, %v1225_v55 }
 0x576   :  { %v1162_v7 = vmul.f32 %v6502_v1, %v1154_v6 }
 0x578   :  { %v6974_v8 = vadd.f32 %v1162_v7, %v6837_v27 }
 0x579   :  { %v1178_v56 = vld [vmem:[#allocation4] sm:$0xff] }
 0x57a   :  { %1174 = vst.msk [vmem:[#allocation4 + $0x8] sm:$0xff] %vm52_vm3, %v6974_v8 }
 0x57b   :  { %1180 = vst.msk [vmem:[#allocation3 + $0x3] sm:$0xff] %vm52_vm3, %v1178_v56  ;;  %v1156_v9 = vpop.f32.mrf.mxu2 }
 0x57c   :  { %v1157_v10 = vadd.f32 %v6501_v0, %v1156_v9 }
 0x57e   :  { %v1163_v11 = vmul.f32 %v6502_v1, %v1157_v10 }
 0x580   :  { %v6985_v13 = vadd.f32 %v1163_v11, %v6850_v43 }
 0x581   :  { %v1179_v27 = vld [vmem:[#allocation4 + $0x8] sm:$0x1] }
 0x582   :  { %1181 = vst.msk [vmem:[#allocation3 + $0xb] sm:$0x1] %vm387_vm5, %v1179_v27  ;;  %v1183_v15 = vld [vmem:[#allocation3 + $0x8] sm:$0x1]  ;;  %v1190_v17 = vld [vmem:[#allocation3 + $0x9] sm:$0x1] }
 0x583   :  { %v1186_v18 = vmul.f32 %v1184_v59, %v1183_v15  ;;  %v1193_v19 = vmul.f32 %v6982_v12, %v1190_v17  ;;  %1175 = vst.msk [vmem:[#allocation4 + $0x10] sm:$0x3] %vm719_vm7, %v6985_v13  ;;  %v1158_v20 = vpop.f32.mrf.mxu2  ;;  %v1182_v22 = vld [vmem:[#allocation3] sm:$0xff]  ;;  %v1197_v28 = vld [vmem:[#allocation3 + $0xa] sm:$0x1] }
 0x584   :  { %v1189_v23 = vld [vmem:[#allocation3 + $0x1] sm:$0xff]  ;;  %v1185_v43 = vmul.f32 %v1184_v59, %v1182_v22  ;;  %v1200_v39 = vmul.f32 %v6987_v14, %v1197_v28 }
 0x585   :  { %v1192_v25 = vmul.f32 %v6982_v12, %v1189_v23  ;;  %v1196_v26 = vld [vmem:[#allocation3 + $0x2] sm:$0xff]  ;;  %v1195_v32 = vadd.f32 %v1193_v19, %v1186_v18  ;;  %v1262_v18 = vld [vmem:[#allocation3 + $0xc] sm:$0x1]  ;;  %v1284_v23 = vperm.slane %v1167_v3, 0 }
 0x586   :  { %v1203_v31 = vld [vmem:[#allocation3 + $0x3] sm:$0xff]  ;;  %v1199_v38 = vmul.f32 %v6987_v14, %v1196_v26  ;;  %v1268_v26 = vld [vmem:[#allocation3 + $0xd] sm:$0x1] }
 0x587   :  { %v1194_v35 = vadd.f32 %v1192_v25, %v1185_v43  ;;  %v1206_v44 = vmul.f32 %v6993_v24, %v1203_v31  ;;  %v1202_v50 = vadd.f32 %v1200_v39, %v1195_v32  ;;  %v1264_v32 = vmul.f32 %v1262_v18, %v6996_v34  ;;  %v6330_v18 = vld [vmem:[%s8721_s4 + $0x20] sm:$0xff] }
 0x589   :  { %v1201_v16 = vadd.f32 %v1199_v38, %v1194_v35  ;;  %v1204_v45 = vld [vmem:[#allocation3 + $0xb] sm:$0x1]  ;;  %v1274_v38 = vld [vmem:[#allocation3 + $0xe] sm:$0x1] }
 0x58a   :  { %v1210_v47 = vld [vmem:[#allocation3 + $0x4] sm:$0xff]  ;;  %v1207_v51 = vmul.f32 %v6993_v24, %v1204_v45  ;;  %v1233_v53 = vld [vmem:[#allocation4 + $0x9] sm:$0xff]  ;;  %v1234_v54 = vld [vmem:[#allocation4 + $0x11] sm:$0x1] }
 0x58b   :  { %v1217_v49 = vld [vmem:[#allocation3 + $0x5] sm:$0xff]  ;;  %v1208_v30 = vadd.f32 %v1206_v44, %v1201_v16  ;;  %v1213_v36 = vmul.f32 %v6996_v34, %v1210_v47  ;;  %v1270_v44 = vmul.f32 %v1268_v26, %v7000_v41 }
 0x58c   :  { %v1224_v52 = vld [vmem:[#allocation3 + $0x6] sm:$0xff]  ;;  %v1209_v57 = vadd.f32 %v1207_v51, %v1202_v50  ;;  %v1220_v60 = vmul.f32 %v7000_v41, %v1217_v49  ;;  %v1276_v50 = vmul.f32 %v1274_v38, %v7004_v46 }
 0x58d   :  { %1235 = vst.msk [vmem:[#allocation3 + $0x3] sm:$0xff] %vm52_vm3, %v1233_v53  ;;  %v1215_v58 = vadd.f32 %v1213_v36, %v1208_v30  ;;  %v1227_v0 = vmul.f32 %v7004_v46, %v1224_v52 }
 0x58e   :  { %1236 = vst.msk [vmem:[#allocation3 + $0xb] sm:$0x1] %vm387_vm5, %v1234_v54  ;;  %v1216_v61 = vadd.f32 %v1214_v29, %v1209_v57 }
 0x58f   :  { %v1222_v63 = vadd.f32 %v1220_v60, %v1215_v58 }
 0x590   :  { %v1223_v1 = vadd.f32 %v1221_v42, %v1216_v61 }
 0x591   :  { %v1229_v48 = vadd.f32 %v1227_v0, %v1222_v63 }
 0x592   :  { %v1230_v4 = vadd.f32 %v1228_v62, %v1223_v1 }
 0x593   :  { %1231 = vst.msk [vmem:[#allocation4] sm:$0xff] %vm52_vm3, %v1229_v48 }
 0x594   :  { %v1237_v5 = vld [vmem:[#allocation3] sm:$0xff]  ;;  %v1238_v6 = vld [vmem:[#allocation3 + $0x8] sm:$0x1]  ;;  %v1244_v2 = vld [vmem:[#allocation3 + $0x9] sm:$0x1] }
 0x595   :  { %v1243_v7 = vld [vmem:[#allocation3 + $0x1] sm:$0xff]  ;;  %v1239_v56 = vmul.f32 %v1237_v5, %v1184_v59  ;;  %v1240_v9 = vmul.f32 %v1238_v6, %v1184_v59  ;;  %v1250_v27 = vld [vmem:[#allocation3 + $0xa] sm:$0x1]  ;;  %1232 = vst.msk [vmem:[#allocation4 + $0x8] sm:$0x1] %vm387_vm5, %v1230_v4  ;;  %v1246_v15 = vmul.f32 %v1244_v2, %v6982_v12 }
 0x596   :  { %v1245_v10 = vmul.f32 %v1243_v7, %v6982_v12  ;;  %v1249_v11 = vld [vmem:[#allocation3 + $0x2] sm:$0xff]  ;;  %v1256_v22 = vld [vmem:[#allocation3 + $0xb] sm:$0x1]  ;;  %v1252_v25 = vmul.f32 %v1250_v27, %v6987_v14 }
 0x597   :  { %v1255_v17 = vld [vmem:[#allocation3 + $0x3] sm:$0xff]  ;;  %v1251_v20 = vmul.f32 %v1249_v11, %v6987_v14  ;;  %v1248_v43 = vadd.f32 %v1246_v15, %v1240_v9  ;;  %v1258_v12 = vmul.f32 %v1256_v22, %v6993_v24 }
 0x598   :  { %v1247_v19 = vadd.f32 %v1245_v10, %v1239_v56  ;;  %v1261_v59 = vld [vmem:[#allocation3 + $0x4] sm:$0xff]  ;;  %v1257_v31 = vmul.f32 %v1255_v17, %v6993_v24  ;;  %v6331_v17 = vld [vmem:[%s8721_s4 + $0x28] sm:$0xff] }
 0x599   :  { %v1254_v33 = vadd.f32 %v1252_v25, %v1248_v43  ;;  %v1267_v35 = vld [vmem:[#allocation3 + $0x5] sm:$0xff]  ;;  %v1263_v16 = vmul.f32 %v1261_v59, %v6996_v34 }
 0x59a   :  { %v1253_v28 = vadd.f32 %v1251_v20, %v1247_v19  ;;  %v1281_v39 = vld [vmem:[#allocation4] sm:$0xff]  ;;  %v1273_v29 = vld [vmem:[#allocation3 + $0x6] sm:$0xff]  ;;  %v1269_v49 = vmul.f32 %v1267_v35, %v7000_v41 }
 0x59b   :  { %v1285_v45 = vadd.f32 %v1284_v23, %v1281_v39  ;;  %v1260_v14 = vadd.f32 %v1258_v12, %v1254_v33  ;;  %v1275_v36 = vmul.f32 %v1273_v29, %v7004_v46  ;;  %v6333_v10 = vld [vmem:[%s8721_s4 + $0x38] sm:$0xff]  ;;  %v6332_v15 = vld [vmem:[%s8721_s4 + $0x30] sm:$0xff] }
 0x59c   :  { %v1259_v40 = vadd.f32 %v1257_v31, %v1253_v28  ;;  %1408 = vmatpush.bf16.msra.mxu3 %v6333_v10 }
 0x59d   :  { %v1288_v51 = vsel %vm52_vm3, %v1285_v45, 0.0  ;;  %v1266_v30 = vadd.f32 %v1264_v32, %v1260_v14 }
 0x59e   :  { %v1265_v47 = vadd.f32 %v1263_v16, %v1259_v40  ;;  %1289 = vadd.xlane.f32.xlu0 %v1288_v51 }
 0x59f   :  { %v1272_v52 = vadd.f32 %v1270_v44, %v1266_v30 }
 0x5a0   :  { %v1271_v24 = vadd.f32 %v1269_v49, %v1265_v47  ;;  %1409 = vmatpush.bf16.msra.mxu3 %v6332_v15  ;;  %v6503_v47 = vld [vmem:[%s8719_s8 + $0xb] ss:$0 sm:$0xff] }
 0x5a1   :  { %v1278_v34 = vadd.f32 %v1276_v50, %v1272_v52 }
 0x5a2   :  { %v1277_v53 = vadd.f32 %v1275_v36, %v1271_v24  ;;  %v6504_v24 = vld [vmem:[%s8719_s8 + $0xc] ss:$0 sm:$0xff] }
 0x5a3   :  { %1280 = vst.msk [vmem:[#allocation4 + $0x11] sm:$0x1] %vm387_vm5, %v1278_v34 }
 0x5a4   :  { %1279 = vst.msk [vmem:[#allocation4 + $0x9] sm:$0xff] %vm52_vm3, %v1277_v53  ;;  %1410 = vmatpush.bf16.msra.mxu3 %v6331_v17 }
 0x5a8   :  { %1411 = vmatpush.bf16.msra.mxu3 %v6330_v18 }
 0x5ab   :  { %v1282_v54 = vld [vmem:[#allocation4 + $0x8] sm:$0xff]  ;;  %v1283_v55 = vld [vmem:[#allocation4 + $0x10] sm:$0x3] }
 0x5ac   :  { %v1286_v57 = vadd.f32 %v1284_v23, %v1282_v54  ;;  %v1287_v41 = vadd.f32 %v1284_v23, %v1283_v55 }
 0x5ae   :  { %v1291_v42 = vsel %vm52_vm3, %v1286_v57, 0.0  ;;  %v1294_v58 = vsel %vm719_vm7, %v1287_v41, 0.0 }
 0x5af   :  { %1292 = vadd.xlane.f32.xlu1 %v1291_v42  ;;  %1295 = vadd.xlane.f32.xlu2 %v1294_v58 }
 0x611   :  { %v1290_v60 = vpop.xlane.xlu0 %1289 }
 0x612   :  { %v1297_v46 = vmul.f32 %v1290_v60, %v6806_v37 }
 0x614   :  { %v1300_v61 = vsub.f32 %v1285_v45, %v1297_v46 }
 0x616   :  { %v1303_v62 = vmul.f32 %v1300_v61, %v1300_v61 }
 0x618   :  { %v1306_v63 = vsel %vm52_vm3, %v1303_v62, 0.0  ;;  %v6340_v62 = vld [vmem:[%s8722_s5 + $0x70] sm:$0xff] }
 0x619   :  { %1307 = vadd.xlane.f32.xlu0 %v1306_v63  ;;  %v6339_v63 = vld [vmem:[%s8722_s5 + $0x68] sm:$0xff] }
 0x622   :  { %v1293_v0 = vpop.xlane.xlu1 %1292  ;;  %v1296_v1 = vpop.xlane.xlu2 %1295 }
 0x623   :  { %v1298_v48 = vmul.f32 %v1293_v0, %v6806_v37  ;;  %v1299_v3 = vmul.f32 %v1296_v1, %v6806_v37  ;;  %v6338_v0 = vld [vmem:[%s8722_s5 + $0x60] sm:$0xff]  ;;  %v6337_v1 = vld [vmem:[%s8722_s5 + $0x58] sm:$0xff] }
 0x625   :  { %v1301_v4 = vsub.f32 %v1286_v57, %v1298_v48  ;;  %v7040_v5 = vsub.f32 %v1287_v41, %v1299_v3  ;;  %v6336_v48 = vld [vmem:[%s8722_s5 + $0x50] sm:$0xff]  ;;  %v6505_v3 = vld [vmem:[%s8716_s9 + $0x1] ss:$0 sm:$0xff] }
 0x627   :  { %v1304_v6 = vmul.f32 %v1301_v4, %v1301_v4  ;;  %v1305_v7 = vmul.f32 %v7040_v5, %v7040_v5 }
 0x629   :  { %v1309_v56 = vsel %vm52_vm3, %v1304_v6, 0.0  ;;  %v1312_v9 = vsel %vm719_vm7, %v1305_v7, 0.0  ;;  %v6334_v6 = vld [vmem:[%s8722_s5 + $0x40] sm:$0xff] }
 0x62a   :  { %1310 = vadd.xlane.f32.xlu1 %v1309_v56  ;;  %1313 = vadd.xlane.f32.xlu2 %v1312_v9 }
 0x68c   :  { %v1308_v2 = vpop.xlane.xlu0 %1307 }
 0x68d   :  { %v1315_v11 = vmul.f32 %v1308_v2, %v6806_v37 }
 0x68f   :  { %v1318_v27 = vadd.f32 1e-06, %v1315_v11 }
 0x691   :  { %6530 = vrsqrt.f32 %v1318_v27  ;;  %vm1327_vm14 = vweird.f32 %v1318_v27 }
 0x697   :  { %v6531_v19 = vpop.eup %6530 }
 0x698   :  { %v1322_v20 = vmul.f32 %v6531_v19, %v1318_v27  ;;  %vm1328_vm13 = vweird.f32 %v6531_v19 }
 0x699   :  { %vm1329_vm15 = vmor %vm1327_vm14, %vm1328_vm13 }
 0x69a   :  { %v1323_v22 = vmul.f32 %v6531_v19, %v1322_v20 }
 0x69c   :  { %v1324_v28 = vmul.f32 0.5, %v1323_v22 }
 0x69d   :  { %v1311_v23 = vpop.xlane.xlu1 %1310  ;;  %v1314_v43 = vpop.xlane.xlu2 %1313 }
 0x69e   :  { %v1316_v25 = vmul.f32 %v1311_v23, %v6806_v37  ;;  %v1317_v59 = vmul.f32 %v1314_v43, %v6806_v37  ;;  %v1325_v32 = vsub.f32 1.5, %v1324_v28 }
 0x6a0   :  { %v1319_v26 = vadd.f32 1e-06, %v1316_v25  ;;  %v1320_v31 = vadd.f32 1e-06, %v1317_v59  ;;  %v1326_v35 = vmul.f32 %v6531_v19, %v1325_v32 }
 0x6a2   :  { %6532 = vrsqrt.f32 %v1319_v26  ;;  %v1330_v44 = vsel %vm1329_vm15, %v6531_v19, %v1326_v35  ;;  %vm1337_vm1 = vweird.f32 %v1319_v26  ;;  %vm1347_vm6 = vweird.f32 %v1320_v31 }
 0x6a3   :  { %6534 = vrsqrt.f32 %v1320_v31  ;;  %v1351_v49 = vmul.f32 %v1330_v44, %v1300_v61  ;;  %v6341_v61 = vld [vmem:[%s8722_s5 + $0x78] sm:$0xff] }
 0x6a4   :  { %1517 = vmatpush.bf16.msrb.mxu0 %v6341_v61 }
 0x6a5   :  { %v1355_v36 = vmul.f32 %v6503_v47, %v1351_v49 }
 0x6a7   :  { %v1359_v54 = vadd.f32 %v6504_v24, %v1355_v36 }
 0x6a8   :  { %v6533_v33 = vpop.eup %6532  ;;  %1518 = vmatpush.bf16.msrb.mxu0 %v6340_v62 }
 0x6a9   :  { %v6535_v12 = vpop.eup %6534  ;;  %v1332_v38 = vmul.f32 %v6533_v33, %v1319_v26  ;;  %vm1338_vm0 = vweird.f32 %v6533_v33 }
 0x6aa   :  { %v1342_v39 = vmul.f32 %v6535_v12, %v1320_v31  ;;  %vm1339_vm2 = vmor %vm1337_vm1, %vm1338_vm0  ;;  %vm1348_vm4 = vweird.f32 %v6535_v12 }
 0x6ab   :  { %v1333_v40 = vmul.f32 %v6533_v33, %v1332_v38  ;;  %vm1349_vm8 = vmor %vm1347_vm6, %vm1348_vm4 }
 0x6ac   :  { %v1343_v16 = vmul.f32 %v6535_v12, %v1342_v39  ;;  %1519 = vmatpush.bf16.msrb.mxu0 %v6339_v63 }
 0x6ad   :  { %v1334_v45 = vmul.f32 0.5, %v1333_v40 }
 0x6ae   :  { %v1344_v14 = vmul.f32 0.5, %v1343_v16 }
 0x6af   :  { %v1335_v29 = vsub.f32 1.5, %v1334_v45 }
 0x6b0   :  { %v1345_v51 = vsub.f32 1.5, %v1344_v14  ;;  %1520 = vmatpush.bf16.msrb.mxu0 %v6338_v0 }
 0x6b1   :  { %v1336_v50 = vmul.f32 %v6533_v33, %v1335_v29 }
 0x6b2   :  { %v1346_v34 = vmul.f32 %v6535_v12, %v1345_v51  ;;  %v6506_v51 = vld [vmem:[%s8719_s8 + $0xd] ss:$0 sm:$0xff] }
 0x6b3   :  { %v1340_v30 = vsel %vm1339_vm2, %v6533_v33, %v1336_v50 }
 0x6b4   :  { %v1352_v52 = vmul.f32 %v1340_v30, %v1301_v4  ;;  %v1350_v41 = vsel %vm1349_vm8, %v6535_v12, %v1346_v34  ;;  %1521 = vmatpush.bf16.msrb.mxu0 %v6337_v1  ;;  %v6335_v4 = vld [vmem:[%s8722_s5 + $0x48] sm:$0xff] }
 0x6b5   :  { %v1353_v42 = vmul.f32 %v1350_v41, %v7040_v5  ;;  %v6507_v30 = vld [vmem:[%s8719_s8 + $0xe] ss:$0 sm:$0xff] }
 0x6b6   :  { %v1356_v53 = vmul.f32 %v6503_v47, %v1352_v52 }
 0x6b7   :  { %v1357_v58 = vmul.f32 %v6503_v47, %v1353_v42 }
 0x6b8   :  { %v1360_v55 = vadd.f32 %v6504_v24, %v1356_v53  ;;  %1522 = vmatpush.bf16.msrb.mxu0 %v6336_v48 }
 0x6b9   :  { %v1361_v60 = vadd.f32 %v6504_v24, %v1357_v58 }
 0x6ba   :  { %v1362_v57 = vpack.c.bf16 %v1360_v55, %v1359_v54 }
 0x6bb   :  { %v1363_v46 = vpack.c.bf16 %v1361_v60, %v1361_v60 }
 0x6bc   :  { %5387 = vmatmul.msk.bf16.vlgmr.msra.gmra.mxu3 %vm52_vm3, %v1362_v57  ;;  %1523 = vmatpush.bf16.msrb.mxu0 %v6335_v4 }
 0x6c0   :  { %1524 = vmatpush.bf16.msrb.mxu0 %v6334_v6 }
 0x6cc   :  { %5388 = vmatmul.msk.bf16.gmra.mxu3 %vm52_vm3, %v1363_v46 }
 0x73f   :  { %v1413_v5 = vpop.f32.mrf.mxu3 }
 0x740   :  { %v1414_v7 = vadd.f32 %v6505_v3, %v1413_v5 }
 0x742   :  { %v1422_v56 = vmul.f32 %v1414_v7, %v1414_v7 }
 0x744   :  { %v1425_v9 = vmul.f32 %v1422_v56, %v1414_v7 }
 0x746   :  { %v1428_v2 = vmul.f32 0.044715, %v1425_v9 }
 0x747   :  { %v1415_v10 = vpop.f32.mrf.mxu3 }
 0x748   :  { %v1431_v11 = vadd.f32 %v1428_v2, %v1414_v7  ;;  %v1416_v27 = vadd.f32 %v6505_v3, %v1415_v10 }
 0x74a   :  { %v1434_v15 = vmul.f32 0.7978846, %v1431_v11  ;;  %v1423_v17 = vmul.f32 %v1416_v27, %v1416_v27  ;;  %v5495_v11 = vld [vmem:[%s8723_s6 + $0x68] sm:$0xf] }
 0x74c   :  { %v1426_v18 = vmul.f32 %v1423_v17, %v1416_v27  ;;  %6536 = vtanh.f32 %v1434_v15  ;;  %v6355_v15 = vld [vmem:[%s8723_s6 + $0x6c] sm:$0xf] }
 0x74e   :  { %v1429_v19 = vmul.f32 0.044715, %v1426_v18  ;;  %v5497_v18 = vld [vmem:[%s8723_s6 + $0x78] sm:$0xf0] }
 0x74f   :  { %v1418_v20 = vpop.f32.mrf.mxu3 }
 0x750   :  { %v1432_v22 = vadd.f32 %v1429_v19, %v1416_v27  ;;  %v1419_v23 = vadd.f32 %v6505_v3, %v1418_v20  ;;  %v5487_v19 = vld [vmem:[%s8723_s6 + $0x60] sm:$0xf]  ;;  %v6356_v20 = vld [vmem:[%s8723_s6 + $0x6c] sm:$0xf0] }
 0x752   :  { %v1435_v43 = vmul.f32 0.7978846, %v1432_v22  ;;  %v1424_v25 = vmul.f32 %v1419_v23, %v1419_v23  ;;  %v6537_v59 = vpop.eup %6536  ;;  %v5500_v22 = vor.u32 %v6355_v15, %v5497_v18 }
 0x753   :  { %v1440_v31 = vadd.f32 1.0, %v6537_v59 }
 0x754   :  { %6538 = vtanh.f32 %v1435_v43  ;;  %v1427_v26 = vmul.f32 %v1424_v25, %v1419_v23  ;;  %v6354_v43 = vld [vmem:[%s8723_s6 + $0x64] sm:$0xf]  ;;  %v5489_v25 = vld [vmem:[%s8723_s6 + $0x70] sm:$0xf0]  ;;  %1788 = vmatpush.bf16.msra.mxu0 %v5500_v22 }
 0x755   :  { %v1443_v38 = vmul.f32 0.5, %v1440_v31  ;;  %v5492_v59 = vor.u32 %v6354_v43, %v5489_v25  ;;  %v6351_v31 = vld [vmem:[%s8723_s6 + $0x4c] sm:$0xf]  ;;  %v6508_v25 = vld [vmem:[%s8719_s8 + $0x3] ss:$0 sm:$0xff] }
 0x756   :  { %v1430_v28 = vmul.f32 0.044715, %v1427_v26  ;;  %v5479_v26 = vld [vmem:[%s8723_s6 + $0x48] sm:$0xf] }
 0x757   :  { %v1420_v32 = vpop.f32.mrf.mxu3  ;;  %v1446_v16 = vmul.f32 %v1443_v38, %v1414_v7  ;;  %1752 = vmatpush.bf16.msrb.mxu3 %v5492_v59 }
 0x758   :  { %v1433_v33 = vadd.f32 %v1430_v28, %v1419_v23  ;;  %v6353_v28 = vld [vmem:[%s8723_s6 + $0x54] sm:$0xf0] }
 0x759   :  { %v5480_v32 = vor.u32 %v6353_v28, %v5479_v26 }
 0x75a   :  { %v6539_v12 = vpop.eup %6538  ;;  %v1436_v35 = vmul.f32 0.7978846, %v1433_v33  ;;  %v5481_v33 = vld [vmem:[%s8723_s6 + $0x58] sm:$0xf0] }
 0x75b   :  { %v1441_v39 = vadd.f32 1.0, %v6539_v12  ;;  %v5471_v12 = vld [vmem:[%s8723_s6 + $0x40] sm:$0xf]  ;;  %v5484_v38 = vor.u32 %v6351_v31, %v5481_v33 }
 0x75c   :  { %6540 = vtanh.f32 %v1436_v35  ;;  %v6352_v35 = vld [vmem:[%s8723_s6 + $0x4c] sm:$0xf0] }
 0x75d   :  { %v1444_v40 = vmul.f32 0.5, %v1441_v39  ;;  %v5472_v39 = vor.u32 %v6352_v35, %v5471_v12  ;;  %1789 = vmatpush.bf16.msra.mxu0 %v5484_v38 }
 0x75f   :  { %v1447_v44 = vmul.f32 %v1444_v40, %v1416_v27  ;;  %v6357_v27 = vld [vmem:[%s8723_s6 + $0x74] sm:$0xf0]  ;;  %v6350_v40 = vld [vmem:[%s8723_s6 + $0x44] sm:$0xf] }
 0x760   :  { %v5496_v17 = vor.u32 %v6357_v27, %v5495_v11 }
 0x761   :  { %v1449_v45 = vpack.c.bf16 %v1447_v44, %v1446_v16  ;;  %v5473_v16 = vld [vmem:[%s8723_s6 + $0x50] sm:$0xf0] }
 0x762   :  { %v6541_v14 = vpop.eup %6540  ;;  %1770 = vmatpush.bf16.msrb.mxu2 %v5496_v17  ;;  %v5476_v44 = vor.u32 %v6350_v40, %v5473_v16 }
 0x763   :  { %1525 = vmatmul.bf16.vlgmr.msrb.gmra.mxu0 %v1449_v45  ;;  %v1442_v29 = vadd.f32 1.0, %v6541_v14  ;;  %v5463_v14 = vld [vmem:[%s8723_s6 + $0x28] sm:$0xf] }
 0x764   :  { %1753 = vmatpush.bf16.msrb.mxu3 %v5476_v44 }
 0x765   :  { %v1445_v47 = vmul.f32 0.5, %v1442_v29  ;;  %v6349_v29 = vld [vmem:[%s8723_s6 + $0x34] sm:$0xf0] }
 0x766   :  { %1771 = vmatpush.bf16.msrb.mxu2 %v5480_v32  ;;  %v6509_v32 = vld [vmem:[%s8719_s8 + $0x4] ss:$0 sm:$0xff] }
 0x767   :  { %v1448_v49 = vmul.f32 %v1445_v47, %v1419_v23  ;;  %v5488_v23 = vor.u32 %v6356_v20, %v5487_v19  ;;  %v6347_v47 = vld [vmem:[%s8723_s6 + $0x2c] sm:$0xf] }
 0x769   :  { %v1450_v50 = vpack.c.bf16 %v1448_v49, %v1448_v49  ;;  %1734 = vmatpush.bf16.msra.mxu1 %v5488_v23 }
 0x76d   :  { %1735 = vmatpush.bf16.msra.mxu1 %v5472_v39 }
 0x773   :  { %1530 = vmatmul.bf16.gmra.mxu0 %v1450_v50  ;;  %v5464_v50 = vor.u32 %v6349_v29, %v5463_v14 }
 0x775   :  { %1772 = vmatpush.bf16.msrb.mxu2 %v5464_v50 }
 0x7e0   :  { %v1526_v24 = vpop.f32.mrf.mxu0 }
 0x7e1   :  { %v1527_v36 = vadd.f32 %v6506_v51, %v1526_v24  ;;  %v6348_v24 = vld [vmem:[%s8723_s6 + $0x2c] sm:$0xf0] }
 0x7e3   :  { %v1536_v52 = vmul.f32 %v6507_v30, %v1527_v36 }
 0x7e5   :  { %v1539_v53 = vadd.f32 %v1536_v52, %v6969_v21 }
 0x7e7   :  { %v1542_v34 = vsel %vm52_vm3, %v1539_v53, 0.0 }
 0x7e8   :  { %v1528_v54 = vpop.f32.mrf.mxu0  ;;  %1543 = vadd.xlane.f32.xlu0 %v1542_v34  ;;  %v5457_v34 = vld [vmem:[%s8723_s6 + $0x30] sm:$0xf0] }
 0x7e9   :  { %v1529_v55 = vadd.f32 %v6506_v51, %v1528_v54 }
 0x7eb   :  { %v1537_v57 = vmul.f32 %v6507_v30, %v1529_v55 }
 0x7ed   :  { %v1540_v41 = vadd.f32 %v1537_v57, %v6974_v8  ;;  %v5447_v57 = vld [vmem:[%s8723_s6 + $0x8] sm:$0xf] }
 0x7ef   :  { %v1545_v42 = vsel %vm52_vm3, %v1540_v41, 0.0 }
 0x7f0   :  { %v1531_v58 = vpop.f32.mrf.mxu0  ;;  %1546 = vadd.xlane.f32.xlu1 %v1545_v42  ;;  %v6343_v42 = vld [vmem:[%s8723_s6 + $0xc] sm:$0xf] }
 0x7f1   :  { %v1532_v60 = vadd.f32 %v6506_v51, %v1531_v58  ;;  %v5465_v51 = vld [vmem:[%s8723_s6 + $0x38] sm:$0xf0] }
 0x7f2   :  { %v5468_v36 = vor.u32 %v6347_v47, %v5465_v51 }
 0x7f3   :  { %v1538_v46 = vmul.f32 %v6507_v30, %v1532_v60  ;;  %v5455_v30 = vld [vmem:[%s8723_s6 + $0x20] sm:$0xf]  ;;  %v5449_v60 = vld [vmem:[%s8723_s6 + $0x18] sm:$0xf0] }
 0x7f4   :  { %v5456_v52 = vor.u32 %v6348_v24, %v5455_v30  ;;  %1790 = vmatpush.bf16.msra.mxu0 %v5468_v36 }
 0x7f5   :  { %v1541_v61 = vadd.f32 %v1538_v46, %v6985_v13  ;;  %v5439_v46 = vld [vmem:[%s8723_s6] sm:$0xf] }
 0x7f6   :  { %1736 = vmatpush.bf16.msra.mxu1 %v5456_v52 }
 0x7f7   :  { %v1548_v62 = vsel %vm719_vm7, %v1541_v61, 0.0 }
 0x7f8   :  { %v1533_v63 = vpop.f32.mrf.mxu0  ;;  %1549 = vadd.xlane.f32.xlu2 %v1548_v62  ;;  %v5452_v62 = vor.u32 %v6343_v42, %v5449_v60 }
 0x7fa   :  { %1791 = vmatpush.bf16.msra.mxu0 %v5452_v62 }
 0x85b   :  { %v1544_v21 = vpop.xlane.xlu0 %1543 }
 0x85c   :  { %v1551_v0 = vmul.f32 %v1544_v21, %v6806_v37  ;;  %v6342_v21 = vld [vmem:[%s8723_s6 + $0x4] sm:$0xf] }
 0x85e   :  { %v7110_v1 = vsub.f32 %v1539_v53, %v1551_v0  ;;  %v6346_v53 = vld [vmem:[%s8723_s6 + $0x24] sm:$0xf]  ;;  %v5441_v0 = vld [vmem:[%s8723_s6 + $0x10] sm:$0xf0] }
 0x85f   :  { %v5460_v55 = vor.u32 %v6346_v53, %v5457_v34 }
 0x860   :  { %v1557_v8 = vmul.f32 %v7110_v1, %v7110_v1 }
 0x861   :  { %1754 = vmatpush.bf16.msrb.mxu3 %v5460_v55 }
 0x862   :  { %v1560_v48 = vsel %vm52_vm3, %v1557_v8, 0.0  ;;  %v5444_v8 = vor.u32 %v6342_v21, %v5441_v0 }
 0x863   :  { %v1547_v3 = vpop.xlane.xlu1 %1546  ;;  %1561 = vadd.xlane.f32.xlu0 %v1560_v48 }
 0x864   :  { %v1552_v4 = vmul.f32 %v1547_v3, %v6806_v37 }
 0x865   :  { %1755 = vmatpush.bf16.msrb.mxu3 %v5444_v8 }
 0x866   :  { %v7116_v5 = vsub.f32 %v1540_v41, %v1552_v4  ;;  %v6345_v41 = vld [vmem:[%s8723_s6 + $0x14] sm:$0xf0] }
 0x867   :  { %v5448_v58 = vor.u32 %v6345_v41, %v5447_v57 }
 0x868   :  { %v1558_v13 = vmul.f32 %v7116_v5, %v7116_v5 }
 0x869   :  { %1773 = vmatpush.bf16.msrb.mxu2 %v5448_v58 }
 0x86a   :  { %v1563_v6 = vsel %vm52_vm3, %v1558_v13, 0.0 }
 0x86b   :  { %v1550_v7 = vpop.xlane.xlu2 %1549  ;;  %1564 = vadd.xlane.f32.xlu1 %v1563_v6 }
 0x86c   :  { %v1553_v56 = vmul.f32 %v1550_v7, %v6806_v37 }
 0x86e   :  { %v7122_v9 = vsub.f32 %v1541_v61, %v1553_v56  ;;  %v6344_v61 = vld [vmem:[%s8723_s6 + $0xc] sm:$0xf0] }
 0x86f   :  { %v5440_v63 = vor.u32 %v6344_v61, %v5439_v46 }
 0x870   :  { %v1559_v2 = vmul.f32 %v7122_v9, %v7122_v9 }
 0x871   :  { %1737 = vmatpush.bf16.msra.mxu1 %v5440_v63 }
 0x872   :  { %v1566_v10 = vsel %vm719_vm7, %v1559_v2, 0.0 }
 0x873   :  { %1567 = vadd.xlane.f32.xlu2 %v1566_v10 }
 0x8d6   :  { %v1562_v45 = vpop.xlane.xlu0 %1561 }
 0x8d7   :  { %v1569_v49 = vmul.f32 %v1562_v45, %v6806_v37 }
 0x8d9   :  { %v1572_v54 = vadd.f32 1e-06, %v1569_v49  ;;  %v7246_v49 = vld [vmem:[%s8724_s10] sm:$0xf] }
 0x8da   :  { %v7249_v50 = vperm.slane %v7246_v49, 3  ;;  %v7257_v36 = vperm.slane %v7246_v49, 2 }
 0x8db   :  { %6542 = vrsqrt.f32 %v1572_v54  ;;  %vm1581_vm10 = vweird.f32 %v1572_v54 }
 0x8de   :  { %v1565_v48 = vpop.xlane.xlu1 %1564 }
 0x8df   :  { %v1570_v3 = vmul.f32 %v1565_v48, %v6806_v37 }
 0x8e1   :  { %v6543_v4 = vpop.eup %6542  ;;  %v1573_v13 = vadd.f32 1e-06, %v1570_v3  ;;  %v8742_v3 = vmov 683565275  }
 0x8e2   :  { %v1576_v6 = vmul.f32 %v6543_v4, %v1572_v54  ;;  %vm1582_vm9 = vweird.f32 %v6543_v4 }
 0x8e3   :  { %6544 = vrsqrt.f32 %v1573_v13  ;;  %vm1583_vm11 = vmor %vm1581_vm10, %vm1582_vm9  ;;  %vm1591_vm13 = vweird.f32 %v1573_v13 }
 0x8e4   :  { %v1577_v7 = vmul.f32 %v6543_v4, %v1576_v6 }
 0x8e6   :  { %v1578_v56 = vmul.f32 0.5, %v1577_v7  ;;  %v1568_v2 = vpop.xlane.xlu2 %1567  ;;  %v8735_v7 = vmov 2131351028  }
 0x8e7   :  { %v1571_v10 = vmul.f32 %v1568_v2, %v6806_v37 }
 0x8e8   :  { %v1579_v11 = vsub.f32 1.5, %v1578_v56 }
 0x8e9   :  { %v6545_v27 = vpop.eup %6544  ;;  %v1574_v15 = vadd.f32 1e-06, %v1571_v10 }
 0x8ea   :  { %v1580_v17 = vmul.f32 %v6543_v4, %v1579_v11  ;;  %v1586_v18 = vmul.f32 %v6545_v27, %v1573_v13  ;;  %vm1592_vm12 = vweird.f32 %v6545_v27  ;;  %v8737_v13 = vmov 2475754826  }
 0x8eb   :  { %6546 = vrsqrt.f32 %v1574_v15  ;;  %vm1593_vm14 = vmor %vm1591_vm13, %vm1592_vm12  ;;  %vm1601_vm0 = vweird.f32 %v1574_v15 }
 0x8ec   :  { %v1587_v19 = vmul.f32 %v6545_v27, %v1586_v18  ;;  %v1584_v20 = vsel %vm1583_vm11, %v6543_v4, %v1580_v17  ;;  %v8731_v18 = vmov 920167782  }
 0x8ed   :  { %v1605_v37 = vmul.f32 %v1584_v20, %v7110_v1 }
 0x8ee   :  { %v1588_v22 = vmul.f32 0.5, %v1587_v19 }
 0x8ef   :  { %v1609_v33 = vmul.f32 %v6508_v25, %v1605_v37 }
 0x8f0   :  { %v1589_v23 = vsub.f32 1.5, %v1588_v22  ;;  %v8730_v22 = vmov 1326507024  }
 0x8f1   :  { %v6547_v43 = vpop.eup %6546  ;;  %v1613_v40 = vadd.f32 %v6509_v32, %v1609_v33 }
 0x8f2   :  { %v1590_v59 = vmul.f32 %v6545_v27, %v1589_v23  ;;  %v1596_v26 = vmul.f32 %v6547_v43, %v1574_v15  ;;  %vm1602_vm15 = vweird.f32 %v6547_v43 }
 0x8f3   :  { %vm1603_vm1 = vmor %vm1601_vm0, %vm1602_vm15 }
 0x8f4   :  { %v1594_v28 = vsel %vm1593_vm14, %v6545_v27, %v1590_v59  ;;  %v1597_v31 = vmul.f32 %v6547_v43, %v1596_v26  ;;  %v8733_v27 = vmov 2102212464  }
 0x8f5   :  { %v1606_v12 = vmul.f32 %v1594_v28, %v7116_v5 }
 0x8f6   :  { %v1598_v35 = vmul.f32 0.5, %v1597_v31 }
 0x8f7   :  { %v1610_v38 = vmul.f32 %v6508_v25, %v1606_v12 }
 0x8f8   :  { %v1599_v39 = vsub.f32 1.5, %v1598_v35 }
 0x8f9   :  { %v1614_v16 = vadd.f32 %v6509_v32, %v1610_v38 }
 0x8fa   :  { %v1600_v1 = vmul.f32 %v6547_v43, %v1599_v39 }
 0x8fb   :  { %v1616_v44 = vpack.c.bf16 %v1614_v16, %v1613_v40 }
 0x8fc   :  { %v1604_v45 = vsel %vm1603_vm1, %v6547_v43, %v1600_v1 }
 0x8fd   :  { %5501 = vmatmul.msk.bf16.vlgmr.msra.gmra.mxu1 %vm52_vm3, %v1616_v44  ;;  %5503 = vmatmul.msk.bf16.vlgmr.msrb.gmra.mxu3 %vm52_vm3, %v1616_v44  ;;  %v1607_v5 = vmul.f32 %v1604_v45, %v7122_v9 }
 0x8fe   :  { %5505 = vmatmul.msk.bf16.vlgmr.msrb.gmra.mxu2 %vm52_vm3, %v1616_v44  ;;  %5507 = vmatmul.msk.bf16.vlgmr.msra.gmra.mxu0 %vm52_vm3, %v1616_v44 }
 0x8ff   :  { %v1611_v14 = vmul.f32 %v6508_v25, %v1607_v5 }
 0x901   :  { %v1615_v29 = vadd.f32 %v6509_v32, %v1611_v14 }
 0x903   :  { %v1617_v47 = vpack.c.bf16 %v1615_v29, %v1615_v29 }
 0x90d   :  { %5502 = vmatmul.msk.bf16.gmra.mxu1 %vm52_vm3, %v1617_v47  ;;  %5504 = vmatmul.msk.bf16.gmra.mxu3 %vm52_vm3, %v1617_v47 }
 0x90e   :  { %5506 = vmatmul.msk.bf16.gmra.mxu2 %vm52_vm3, %v1617_v47  ;;  %5508 = vmatmul.msk.bf16.gmra.mxu0 %vm52_vm3, %v1617_v47 }
 0x97b   :  { %v1793_v9 = vpop.f32.mrf.mxu0 }
 0x97c   :  { %v7252_v51 = vadd.f32 %v1793_v9, %v7249_v50 }
 0x97e   :  { %v1974_v30 = vand.u32 2147483647, %v7252_v51  ;;  %v1977_v24 = vand.u32 2139095040, %v7252_v51 }
 0x980   :  { %v1978_v52 = vshrl.u32 %v1977_v24, 23  ;;  %v1981_v53 = vand.u32 8388607, %v1974_v30 }
 0x981   :  { %v1775_v34 = vpop.f32.mrf.mxu2 }
 0x982   :  { %v5512_v54 = vadd.s32 4294967169, %v1978_v52  ;;  %v1982_v55 = vor.u32 8388608, %v1981_v53  ;;  %v7262_v57 = vadd.f32 %v1775_v34, %v7257_v36 }
 0x984   :  { %v1984_v41 = vadd.s32 1, %v5512_v54  ;;  %v1820_v42 = vand.u32 2147483647, %v7262_v57  ;;  %v1823_v58 = vand.u32 2139095040, %v7262_v57  ;;  %v7266_v60 = vshll.u32 %v1982_v55, 8 }
 0x986   :  { %vm1985_vm2 = vcmp.gt.s32.totalorder %v1984_v41, 0  ;;  %v1824_v61 = vshrl.u32 %v1823_v58, 23  ;;  %v1827_v62 = vand.u32 8388607, %v1820_v42  ;;  %v2023_v8 = vand.u32 65535, %v7266_v60 }
 0x987   :  { %v1986_v46 = vsel %vm1985_vm2, %v1984_v41, 0  ;;  %v2024_v5 = vshrl.u32 %v7266_v60, 16 }
 0x988   :  { %v1988_v63 = vand.u32 31, %v1986_v46  ;;  %v1987_v21 = vshrl.u32 %v1986_v46, 5  ;;  %v5509_v48 = vadd.s32 4294967169, %v1824_v61  ;;  %v1828_v2 = vor.u32 8388608, %v1827_v62 }
 0x98a   :  { %v1989_v0 = vsub.s32 32, %v1988_v63  ;;  %v1991_v4 = vshll.u32 %v8742_v3, %v1988_v63  ;;  %v1994_v6 = vshll.u32 %v8737_v13, %v1988_v63  ;;  %v1997_v56 = vshll.u32 %v8735_v7, %v1988_v63 }
 0x98b   :  { %v2000_v17 = vshll.u32 %v8733_v27, %v1988_v63  ;;  %v2003_v20 = vshll.u32 %v8731_v18, %v1988_v63  ;;  %vm2006_vm4 = vcmp.lt.s32.totalorder %v1987_v21, 1  ;;  %v1830_v59 = vadd.s32 1, %v5509_v48 }
 0x98c   :  { %v1992_v10 = vshrl.u32 %v8737_v13, %v1989_v0  ;;  %v1995_v11 = vshrl.u32 %v8735_v7, %v1989_v0  ;;  %v1998_v15 = vshrl.u32 %v8733_v27, %v1989_v0  ;;  %v2001_v19 = vshrl.u32 %v8731_v18, %v1989_v0 }
 0x98d   :  { %v2004_v23 = vshrl.u32 %v8730_v22, %v1989_v0  ;;  %vm2007_vm6 = vcmp.lt.s32.totalorder %v1987_v21, 2  ;;  %vm2009_vm8 = vcmp.lt.s32.totalorder %v1987_v21, 4  ;;  %v1990_v31 = vshrl.u32 %v8742_v3, %v1989_v0 }
 0x98e   :  { %v1993_v43 = vor.u32 %v1992_v10, %v1991_v4  ;;  %v1996_v25 = vor.u32 %v1995_v11, %v1994_v6  ;;  %v1999_v37 = vor.u32 %v1998_v15, %v1997_v56  ;;  %v2002_v26 = vor.u32 %v2001_v19, %v2000_v17 }
 0x98f   :  { %v2005_v28 = vor.u32 %v2004_v23, %v2003_v20  ;;  %vm2008_vm9 = vcmp.lt.s32.totalorder %v1987_v21, 3  ;;  %vm1831_vm10 = vcmp.gt.s32.totalorder %v1830_v59, 0  ;;  %v7291_v53 = vshll.u32 %v1828_v2, 8 }
 0x990   :  { %v2011_v32 = vsel %vm2009_vm8, %v1999_v37, 2102212464  ;;  %v2014_v33 = vsel %vm2006_vm4, %v1993_v43, %v1996_v25  ;;  %v2018_v12 = vsel %vm2006_vm4, %v1996_v25, %v1999_v37  ;;  %v2015_v35 = vsel %vm2009_vm8, %v2002_v26, 920167782 }
 0x991   :  { %v2019_v38 = vsel %vm2009_vm8, %v2005_v28, 1326507024  ;;  %v2010_v39 = vsel %vm2006_vm4, %v1990_v31, %v1993_v43  ;;  %v2012_v40 = vsel %vm2008_vm9, %v1996_v25, %v2011_v32  ;;  %v2016_v16 = vsel %vm2008_vm9, %v1999_v37, %v2015_v35 }
 0x992   :  { %v2020_v1 = vsel %vm2008_vm9, %v2002_v26, %v2019_v38  ;;  %v2017_v44 = vsel %vm2007_vm6, %v2014_v33, %v2016_v16  ;;  %v1832_v14 = vsel %vm1831_vm10, %v1830_v59, 0  ;;  %v7289_v52 = vsel %vm2007_vm6, %v2010_v39, %v2012_v40 }
 0x993   :  { %v2021_v45 = vsel %vm2007_vm6, %v2018_v12, %v2020_v1  ;;  %v2047_v9 = vand.u32 65535, %v2017_v44  ;;  %v2048_v24 = vshrl.u32 %v2017_v44, 16  ;;  %v7293_v55 = vshrl.u32 %v1832_v14, 5 }
 0x994   :  { %v2025_v29 = vand.u32 65535, %v2021_v45  ;;  %v2026_v47 = vshrl.u32 %v2021_v45, 16  ;;  %v1834_v41 = vand.u32 31, %v1832_v14  ;;  %v8739_v17 = vmov 0  }
 0x995   :  { %v2050_v61 = vmul.u32 %v2048_v24, %v2023_v8  ;;  %v2051_v62 = vmul.u32 %v2047_v9, %v2024_v5  ;;  %v2049_v48 = vmul.u32 %v2047_v9, %v2023_v8  ;;  %v2052_v4 = vmul.u32 %v2048_v24, %v2024_v5 }
 0x996   :  { %v2028_v34 = vmul.u32 %v2026_v47, %v2023_v8  ;;  %v2029_v54 = vmul.u32 %v2025_v29, %v2024_v5  ;;  %v2027_v58 = vmul.u32 %v2025_v29, %v2023_v8  ;;  %v2030_v46 = vmul.u32 %v2026_v47, %v2024_v5  ;;  %v1795_v47 = vpop.f32.mrf.mxu0 }
 0x997   :  { %v2053_v21 = vshll.u32 %v2050_v61, 16  ;;  %v2054_v10 = vshrl.u32 %v2050_v61, 16  ;;  %v2055_v11 = vshll.u32 %v2051_v62, 16  ;;  %v7295_v15 = vsub.s32 32, %v1834_v41 }
 0x998   :  { %v2031_v63 = vshll.u32 %v2028_v34, 16  ;;  %v2032_v0 = vshrl.u32 %v2028_v34, 16  ;;  %v2033_v6 = vshll.u32 %v2029_v54, 16  ;;  %v2034_v56 = vshrl.u32 %v2029_v54, 16 }
 0x999   :  { %v2056_v20 = vshrl.u32 %v2051_v62, 16  ;;  %vm2057_vm12 = vc.u32 %v2049_v48, %v2053_v21  ;;  %v2059_v23 = vadd.s32 %v2053_v21, %v2049_v48  ;;  %v1837_v25 = vshll.u32 %v8742_v3, %v1834_v41 }
 0x99a   :  { %vm2035_vm11 = vc.u32 %v2027_v58, %v2031_v63  ;;  %v2037_v2 = vadd.s32 %v2031_v63, %v2027_v58  ;;  %v2058_v8 = vsel %vm2057_vm12, 1, %v8739_v17  ;;  %v1840_v26 = vshll.u32 %v8737_v13, %v1834_v41 }
 0x99b   :  { %v2036_v19 = vsel %vm2035_vm11, 1, %v8739_v17  ;;  %v2060_v59 = vadd.s32 %v2058_v8, %v2052_v4  ;;  %vm2061_vm14 = vc.u32 %v2059_v23, %v2055_v11  ;;  %v1838_v32 = vshrl.u32 %v8737_v13, %v7295_v15 }
 0x99c   :  { %v2038_v43 = vadd.s32 %v2036_v19, %v2030_v46  ;;  %vm2039_vm13 = vc.u32 %v2037_v2, %v2033_v6  ;;  %v2062_v31 = vsel %vm2061_vm14, 1, %v8739_v17  ;;  %v1841_v33 = vshrl.u32 %v8735_v7, %v7295_v15 }
 0x99d   :  { %v2040_v37 = vsel %vm2039_vm13, 1, %v8739_v17  ;;  %v2064_v12 = vadd.s32 %v2062_v31, %v2060_v59  ;;  %v1843_v35 = vshll.u32 %v8735_v7, %v1834_v41  ;;  %v1844_v38 = vshrl.u32 %v8733_v27, %v7295_v15 }
 0x99e   :  { %v2042_v28 = vadd.s32 %v2040_v37, %v2038_v43  ;;  %v1846_v39 = vshll.u32 %v8733_v27, %v1834_v41  ;;  %v7311_v16 = vor.u32 %v1838_v32, %v1837_v25  ;;  %v7313_v1 = vor.u32 %v1841_v33, %v1840_v26 }
 0x99f   :  { %v1847_v44 = vshrl.u32 %v8731_v18, %v7295_v15  ;;  %v2065_v45 = vadd.s32 %v2064_v12, %v2054_v10  ;;  %v7317_v5 = vor.u32 %v1844_v38, %v1843_v35  ;;  %v1849_v14 = vshll.u32 %v8731_v18, %v1834_v41 }
 0x9a0   :  { %v2043_v40 = vadd.s32 %v2042_v28, %v2032_v0  ;;  %v1850_v29 = vshrl.u32 %v8730_v22, %v7295_v15  ;;  %v7324_v24 = vadd.s32 %v2059_v23, %v2055_v11  ;;  %vm1852_vm15 = vcmp.lt.s32.totalorder %v7293_v55, 1 }
 0x9a1   :  { %v1848_v34 = vor.u32 %v1847_v44, %v1846_v39  ;;  %v2066_v54 = vadd.s32 %v2065_v45, %v2056_v20  ;;  %vm1855_vm0 = vcmp.lt.s32.totalorder %v7293_v55, 4  ;;  %v1860_v41 = vsel %vm1852_vm15, %v7311_v16, %v7313_v1 }
 0x9a2   :  { %v7322_v9 = vadd.s32 %v2043_v40, %v2034_v56  ;;  %v1851_v58 = vor.u32 %v1850_v29, %v1849_v14  ;;  %vm1854_vm2 = vcmp.lt.s32.totalorder %v7293_v55, 3  ;;  %v7338_v61 = vadd.f32 %v1795_v47, %v7249_v50 }
 0x9a3   :  { %v1861_v46 = vsel %vm1855_vm0, %v1848_v34, 920167782  ;;  %v2070_v62 = vadd.s32 1, %v2066_v54  ;;  %vm1853_vm4 = vcmp.lt.s32.totalorder %v7293_v55, 2  ;;  %v1864_v0 = vsel %vm1852_vm15, %v7313_v1, %v7317_v5 }
 0x9a4   :  { %vm2069_vm1 = vc.u32 %v7322_v9, %v7324_v24  ;;  %v1862_v63 = vsel %vm1854_vm2, %v7317_v5, %v1861_v46  ;;  %v2067_v48 = vmul.u32 %v7266_v60, %v7289_v52  ;;  %v1865_v6 = vsel %vm1855_vm0, %v1851_v58, 1326507024 }
 0x9a5   :  { %v1863_v4 = vsel %vm1853_vm4, %v1860_v41, %v1862_v63  ;;  %v1869_v56 = vand.u32 65535, %v7291_v53  ;;  %v2071_v21 = vsel %vm2069_vm1, %v2070_v62, %v2066_v54  ;;  %v1866_v10 = vsel %vm1854_vm2, %v1848_v34, %v1865_v6 }
 0x9a6   :  { %v1893_v2 = vand.u32 65535, %v1863_v4  ;;  %v1894_v11 = vshrl.u32 %v1863_v4, 16  ;;  %v2072_v19 = vadd.s32 %v2071_v21, %v2067_v48  ;;  %v1867_v20 = vsel %vm1853_vm4, %v1864_v0, %v1866_v10 }
 0x9a7   :  { %v1870_v60 = vshrl.u32 %v7291_v53, 16  ;;  %v1871_v52 = vand.u32 65535, %v1867_v20  ;;  %v1872_v23 = vshrl.u32 %v1867_v20, 16  ;;  %v2285_v8 = vand.u32 2139095040, %v7338_v61 }
 0x9a8   :  { %v1896_v43 = vmul.u32 %v1894_v11, %v1869_v56  ;;  %v2073_v25 = vadd.s32 536870912, %v2072_v19  ;;  %v1895_v31 = vmul.u32 %v1893_v2, %v1869_v56  ;;  %v1857_v4 = vsel %vm1855_vm0, %v7317_v5, 2102212464 }
 0x9a9   :  { %v1897_v37 = vmul.u32 %v1893_v2, %v1870_v60  ;;  %v1874_v59 = vmul.u32 %v1872_v23, %v1869_v56  ;;  %v1875_v26 = vmul.u32 %v1871_v52, %v1870_v60  ;;  %v1898_v32 = vmul.u32 %v1894_v11, %v1870_v60 }
 0x9aa   :  { %v7361_v28 = vshrl.u32 %v2073_v25, 30  ;;  %v1899_v33 = vshll.u32 %v1896_v43, 16  ;;  %v1873_v12 = vmul.u32 %v1871_v52, %v1869_v56  ;;  %v1876_v35 = vmul.u32 %v1872_v23, %v1870_v60  ;;  %v7378_v25 = vpop.f32.mrf.mxu1 }
 0x9ab   :  { %v1877_v38 = vshll.u32 %v1874_v59, 16  ;;  %v2286_v39 = vshrl.u32 %v2285_v8, 23  ;;  %v1879_v44 = vshll.u32 %v1875_v26, 16  ;;  %v1901_v45 = vshll.u32 %v1897_v37, 16 }
 0x9ac   :  { %v2075_v40 = vshll.u32 %v7361_v28, 30  ;;  %vm1903_vm6 = vc.u32 %v1895_v31, %v1899_v33  ;;  %v1905_v47 = vadd.s32 %v1899_v33, %v1895_v31  ;;  %v1900_v6 = vshrl.u32 %v1896_v43, 16 }
 0x9ad   :  { %vm1881_vm8 = vc.u32 %v1873_v12, %v1877_v38  ;;  %v1883_v14 = vadd.s32 %v1877_v38, %v1873_v12  ;;  %v1904_v29 = vsel %vm1903_vm6, 1, %v8739_v17  ;;  %v5518_v0 = vadd.s32 4294967169, %v2286_v39 }
 0x9ae   :  { %v7365_v34 = vsub.s32 %v2072_v19, %v2075_v40  ;;  %v1882_v54 = vsel %vm1881_vm8, 1, %v8739_v17  ;;  %v1906_v41 = vadd.s32 %v1904_v29, %v1898_v32  ;;  %vm1907_vm10 = vc.u32 %v1905_v47, %v1901_v45 }
 0x9af   :  { %v1884_v58 = vadd.s32 %v1882_v54, %v1876_v35  ;;  %vm1885_vm9 = vc.u32 %v1883_v14, %v1879_v44  ;;  %v1908_v63 = vsel %vm1907_vm10, 1, %v8739_v17  ;;  %v1878_v21 = vshrl.u32 %v1874_v59, 16 }
 0x9b0   :  { %vm2077_vm11 = vcmp.lt.s32.totalorder %v7365_v34, 0  ;;  %v2078_v46 = vsub.s32 0, %v7365_v34  ;;  %v1886_v62 = vsel %vm1885_vm9, 1, %v8739_v17  ;;  %v1910_v2 = vadd.s32 %v1908_v63, %v1906_v41 }
 0x9b1   :  { %v1888_v10 = vadd.s32 %v1886_v62, %v1884_v58  ;;  %v1836_v11 = vshrl.u32 %v8742_v3, %v7295_v15  ;;  %v1880_v19 = vshrl.u32 %v1875_v26, 16  ;;  %v1902_v20 = vshrl.u32 %v1897_v37, 16 }
 0x9b2   :  { %v2079_v48 = vsel %vm2077_vm11, %v2078_v46, %v7365_v34  ;;  %v1911_v23 = vadd.s32 %v1910_v2, %v1900_v6  ;;  %v2292_v8 = vadd.s32 1, %v5518_v0  ;;  %v1858_v43 = vsel %vm1854_vm2, %v7313_v1, %v1857_v4  ;;  %v7410_v46 = vpop.f32.mrf.mxu1 }
 0x9b3   :  { %v2080_v56 = vclz %v2079_v48  ;;  %v1889_v52 = vadd.s32 %v1888_v10, %v1878_v21  ;;  %v1856_v5 = vsel %vm1852_vm15, %v1836_v11, %v7311_v16  ;;  %v7388_v26 = vadd.s32 %v1905_v47, %v1901_v45 }
 0x9b4   :  { %v1912_v15 = vadd.s32 %v1911_v23, %v1902_v20  ;;  %vm2293_vm13 = vcmp.gt.s32.totalorder %v2292_v8, 0  ;;  %v1859_v33 = vsel %vm1853_vm4, %v1856_v5, %v1858_v43  ;;  %v2282_v12 = vand.u32 2147483647, %v7338_v61 }
 0x9b5   :  { %v5513_v60 = vadd.s32 4294967294, %v2080_v56  ;;  %v7386_v59 = vadd.s32 %v1889_v52, %v1880_v19  ;;  %v2294_v31 = vsel %vm2293_vm13, %v2292_v8, 0  ;;  %v1913_v39 = vmul.u32 %v7291_v53, %v1859_v33 }
 0x9b6   :  { %v1916_v16 = vadd.s32 1, %v1912_v15  ;;  %v2296_v1 = vand.u32 31, %v2294_v31  ;;  %v2068_v45 = vadd.s32 %v7324_v24, %v7322_v9  ;;  %v2289_v29 = vand.u32 8388607, %v2282_v12 }
 0x9b7   :  { %vm5514_vm12 = vcmp.lt.s32.totalorder %v5513_v60, 0  ;;  %vm1915_vm14 = vc.u32 %v7386_v59, %v7388_v26  ;;  %v7402_v47 = vshrl.u32 %v2294_v31, 5  ;;  %vm1976_vm4 = vcmp.lt.s32.totalorder %v7252_v51, 0 }
 0x9b8   :  { %v2083_v37 = vsel %vm5514_vm12, 0, %v5513_v60  ;;  %v1917_v40 = vsel %vm1915_vm14, %v1916_v16, %v1912_v15  ;;  %v7396_v44 = vsub.s32 32, %v2296_v1  ;;  %v2299_v9 = vshll.u32 %v8742_v3, %v2296_v1 }
 0x9b9   :  { %v2088_v32 = vsub.s32 4294967266, %v2083_v37  ;;  %v2084_v35 = vsub.s32 32, %v2083_v37  ;;  %v1918_v55 = vadd.s32 %v1917_v40, %v1913_v39  ;;  %v2302_v24 = vshll.u32 %v8737_v13, %v2296_v1  ;;  %v7460_v39 = vpop.f32.mrf.mxu0 }
 0x9ba   :  { %v2300_v58 = vshrl.u32 %v8737_v13, %v7396_v44  ;;  %v2303_v53 = vshrl.u32 %v8735_v7, %v7396_v44  ;;  %v2306_v41 = vshrl.u32 %v8733_v27, %v7396_v44  ;;  %v2308_v62 = vshll.u32 %v8733_v27, %v2296_v1 }
 0x9bb   :  { %v2089_v38 = vadd.s32 127, %v2088_v32  ;;  %v2086_v54 = vshrl.u32 %v2068_v45, %v2084_v35  ;;  %v2309_v63 = vshrl.u32 %v8731_v18, %v7396_v44  ;;  %v2305_v48 = vshll.u32 %v8735_v7, %v2296_v1 }
 0x9bc   :  { %v2311_v4 = vshll.u32 %v8731_v18, %v2296_v1  ;;  %v2312_v6 = vshrl.u32 %v8730_v22, %v7396_v44  ;;  %v2085_v56 = vshll.u32 %v7365_v34, %v2083_v37  ;;  %v1919_v21 = vadd.s32 536870912, %v1918_v55 }
 0x9bd   :  { %v2090_v14 = vshll.u32 %v2089_v38, 23  ;;  %v2290_v10 = vor.u32 8388608, %v2289_v29  ;;  %v2310_v2 = vor.u32 %v2309_v63, %v2308_v62  ;;  %v7422_v11 = vor.u32 %v2300_v58, %v2299_v9  ;;  %v7458_v38 = vpop.f32.mrf.mxu1 }
 0x9be   :  { %v7424_v19 = vor.u32 %v2303_v53, %v2302_v24  ;;  %v7426_v20 = vor.u32 %v2306_v41, %v2305_v48  ;;  %v2313_v60 = vor.u32 %v2312_v6, %v2311_v4  ;;  %v2087_v52 = vor.u32 %v2086_v54, %v2085_v56  ;;  %8746 = vst [vmem:[#allocation7_spill] sm:$0xff] %v7458_v38 }
 0x9bf   :  { %v2091_v0 = vor.u32 4788187, %v2090_v14  ;;  %vm2317_vm15 = vcmp.lt.s32.totalorder %v7402_v47, 4  ;;  %vm2314_vm0 = vcmp.lt.s32.totalorder %v7402_v47, 1  ;;  %v7434_v5 = vshll.u32 %v2290_v10, 8 }
 0x9c0   :  { %v2323_v8 = vsel %vm2317_vm15, %v2310_v2, 920167782  ;;  %v2327_v34 = vsel %vm2317_vm15, %v2313_v60, 1326507024  ;;  %v7436_v43 = vshrl.u32 %v1919_v21, 30  ;;  %vm2316_vm1 = vcmp.lt.s32.totalorder %v7402_v47, 3 }
 0x9c1   :  { %v2092_v23 = vand.u32 2147483647, %v2091_v0  ;;  %v2322_v15 = vsel %vm2314_vm0, %v7422_v11, %v7424_v19  ;;  %v2326_v37 = vsel %vm2314_vm0, %v7424_v19, %v7426_v20  ;;  %v2324_v31 = vsel %vm2316_vm1, %v7426_v20, %v2323_v8  ;;  %v1800_v10 = vpop.f32.mrf.mxu0 }
 0x9c2   :  { %v2094_v32 = vcvt.s32.f32 %v2087_v52  ;;  %vm2315_vm2 = vcmp.lt.s32.totalorder %v7402_v47, 2  ;;  %v2328_v33 = vsel %vm2316_vm1, %v2310_v2, %v2327_v34  ;;  %v2331_v35 = vand.u32 65535, %v7434_v5 }
 0x9c3   :  { %v2325_v16 = vsel %vm2315_vm2, %v2322_v15, %v2324_v31  ;;  %v2329_v1 = vsel %vm2315_vm2, %v2326_v37, %v2328_v33  ;;  %v1921_v45 = vshll.u32 %v7436_v43, 30  ;;  %v2332_v54 = vshrl.u32 %v7434_v5, 16 }
 0x9c4   :  { %v2095_v40 = vmul.f32 %v2094_v32, %v2092_v23  ;;  %v2333_v14 = vand.u32 65535, %v2329_v1  ;;  %v2334_v29 = vshrl.u32 %v2329_v1, 16  ;;  %v2356_v53 = vshrl.u32 %v2325_v16, 16 }
 0x9c5   :  { %v7464_v24 = vsub.s32 %v1918_v55, %v1921_v45  ;;  %v2355_v0 = vand.u32 65535, %v2325_v16  ;;  %v1746_v21 = vpop.f32.mrf.mxu1  ;;  %v7468_v2 = vperm.slane %v7246_v49, 0  ;;  %vm7477_vm10 = vcmp.le.f32.partialorder %v1974_v30, 0.7853982 }
 0x9c6   :  { %v2336_v58 = vmul.u32 %v2334_v29, %v2331_v35  ;;  %v2337_v41 = vmul.u32 %v2333_v14, %v2332_v54  ;;  %v2096_v9 = vxor.u32 2147483648, %v2095_v40  ;;  %v2335_v63 = vmul.u32 %v2333_v14, %v2331_v35 }
 0x9c7   :  { %v2358_v48 = vmul.u32 %v2356_v53, %v2331_v35  ;;  %v2338_v4 = vmul.u32 %v2334_v29, %v2332_v54  ;;  %8747 = vst [vmem:[#allocation8_spill] sm:$0xff] %v7468_v2  ;;  %v1924_v55 = vsub.s32 0, %v7464_v24  ;;  %vm1923_vm8 = vcmp.lt.s32.totalorder %v7464_v24, 0 }
 0x9c8   :  { %v2339_v62 = vshll.u32 %v2336_v58, 16  ;;  %v2341_v6 = vshll.u32 %v2337_v41, 16  ;;  %v2097_v60 = vsel %vm1976_vm4, %v2096_v9, %v2095_v40  ;;  %v2359_v8 = vmul.u32 %v2355_v0, %v2332_v54 }
 0x9c9   :  { %v2361_v37 = vshll.u32 %v2358_v48, 16  ;;  %v7485_v31 = vsel %vm7477_vm10, %v7252_v51, %v2097_v60  ;;  %v2357_v33 = vmul.u32 %v2355_v0, %v2331_v35  ;;  %v1740_v16 = vadd.f32 %v7378_v25, %v7468_v2 }
 0x9ca   :  { %vm2343_vm6 = vc.u32 %v2335_v63, %v2339_v62  ;;  %v2345_v56 = vadd.s32 %v2339_v62, %v2335_v63  ;;  %v1925_v1 = vsel %vm1923_vm8, %v1924_v55, %v7464_v24  ;;  %v2340_v40 = vshrl.u32 %v2336_v58, 16  ;;  %v1777_v55 = vpop.f32.mrf.mxu2 }
 0x9cb   :  { %v2344_v52 = vsel %vm2343_vm6, 1, %v8739_v17  ;;  %v2360_v30 = vmul.u32 %v2356_v53, %v2332_v54  ;;  %v2363_v45 = vshll.u32 %v2359_v8, 16  ;;  %vm2365_vm11 = vc.u32 %v2357_v33, %v2361_v37  ;;  %v1757_v54 = vpop.f32.mrf.mxu3 }
 0x9cc   :  { %v2346_v23 = vadd.s32 %v2344_v52, %v2338_v4  ;;  %vm2347_vm9 = vc.u32 %v2345_v56, %v2341_v6  ;;  %v2367_v14 = vadd.s32 %v2361_v37, %v2357_v33  ;;  %v7492_v29 = vmul.f32 %v7485_v31, %v7485_v31 }
 0x9cd   :  { %v2348_v15 = vsel %vm2347_vm9, 1, %v8739_v17  ;;  %v7495_v9 = vperm.slane %v7246_v49, 1  ;;  %v2366_v35 = vsel %vm2365_vm11, 1, %v8739_v17  ;;  %v1926_v63 = vclz %v1925_v1 }
 0x9ce   :  { %v2350_v32 = vadd.s32 %v2348_v15, %v2346_v23  ;;  %v2319_v25 = vsel %vm2317_vm15, %v7426_v20, 2102212464  ;;  %v2368_v58 = vadd.s32 %v2366_v35, %v2360_v30  ;;  %vm2369_vm12 = vc.u32 %v2367_v14, %v2363_v45 }
 0x9cf   :  { %v2298_v53 = vshrl.u32 %v8742_v3, %v7396_v44  ;;  %v2342_v0 = vshrl.u32 %v2337_v41, 16  ;;  %v2370_v4 = vsel %vm2369_vm12, 1, %v8739_v17  ;;  %v1802_v6 = vmin.f32 %v1740_v16, 4.6051702 }
 0x9d0   :  { %v2351_v62 = vadd.s32 %v2350_v32, %v2340_v40  ;;  %v2362_v49 = vshrl.u32 %v2358_v48, 16  ;;  %v2372_v56 = vadd.s32 %v2370_v4, %v2368_v58  ;;  %v2110_v21 = vmul.f32 -0.00019511016, %v7492_v29 }
 0x9d1   :  { %v2318_v10 = vsel %vm2314_vm0, %v2298_v53, %v7422_v11  ;;  %v2320_v20 = vsel %vm2316_vm1, %v7424_v19, %v2319_v25  ;;  %v1758_v44 = vadd.f32 %v1757_v54, %v7495_v9  ;;  %v5510_v41 = vadd.s32 4294967294, %v1926_v63 }
 0x9d2   :  { %v7511_v60 = vadd.s32 %v2351_v62, %v2342_v0  ;;  %v2364_v52 = vshrl.u32 %v2359_v8, 16  ;;  %v2373_v23 = vadd.s32 %v2372_v56, %v2362_v49  ;;  %v7514_v48 = vadd.s32 %v2367_v14, %v2363_v45 }
 0x9d3   :  { %v2103_v15 = vmul.f32 -0.001358992, %v7492_v29  ;;  %v2321_v37 = vsel %vm2315_vm2, %v2318_v10, %v2320_v20  ;;  %v7520_v32 = vadd.f32 %v1777_v55, %v7257_v36  ;;  %v1808_v19 = vmul.f32 1.442695, %v1802_v6  ;;  %v7530_v25 = vpop.f32.mrf.mxu3 }
 0x9d4   :  { %v2374_v11 = vadd.s32 %v2373_v23, %v2364_v52  ;;  %v2111_v33 = vadd.f32 0.008332121, %v2110_v21  ;;  %vm2377_vm13 = vc.u32 %v7511_v60, %v7514_v48  ;;  %v1803_v16 = vmin.f32 %v1758_v44, 4.6051702 }
 0x9d5   :  { %vm5511_vm14 = vcmp.lt.s32.totalorder %v5510_v41, 0  ;;  %v1742_v8 = vadd.f32 %v7410_v46, %v7468_v2  ;;  %v2375_v40 = vmul.u32 %v7434_v5, %v2321_v37  ;;  %v2131_v47 = vand.u32 2139095040, %v7520_v32 }
 0x9d6   :  { %v2378_v1 = vadd.s32 1, %v2374_v11  ;;  %v2098_v30 = vsub.s32 4, %v7361_v28  ;;  %v2104_v45 = vadd.f32 0.041655596, %v2103_v15  ;;  %v2112_v62 = vmul.f32 %v2111_v33, %v7492_v29 }
 0x9d7   :  { %v1929_v35 = vsel %vm5511_vm14, 0, %v5510_v41  ;;  %v2132_v58 = vshrl.u32 %v2131_v47, 23  ;;  %6548 = vpow2.f32 %v1808_v19  ;;  %v1810_v54 = vmul.f32 1.442695, %v1803_v16 }
 0x9d8   :  { %v2379_v14 = vsel %vm2377_vm13, %v2378_v1, %v2374_v11  ;;  %v1804_v53 = vmin.f32 %v1742_v8, 4.6051702  ;;  %v7534_v46 = vadd.f32 %v7460_v39, %v7249_v50  ;;  %vm1822_vm15 = vcmp.lt.s32.totalorder %v7262_v57, 0 }
 0x9d9   :  { %v2380_v63 = vadd.s32 %v2379_v14, %v2375_v40  ;;  %v1944_v5 = vsub.s32 4, %v7436_v43  ;;  %v5515_v4 = vadd.s32 4294967169, %v2132_v58  ;;  %v2099_v6 = vsel %vm1976_vm4, %v2098_v30, %v7361_v28 }
 0x9da   :  { %v2105_v49 = vmul.f32 %v2104_v45, %v7492_v29  ;;  %v1930_v56 = vsub.s32 32, %v1929_v35  ;;  %v1934_v21 = vsub.s32 4294967266, %v1929_v35  ;;  %v2113_v10 = vadd.f32 -0.16666654, %v2112_v62 }
 0x9db   :  { %v2381_v0 = vadd.s32 536870912, %v2380_v63  ;;  %v8728_v50 = vand.u32 2147483647, %v7520_v32  ;;  %v2138_v39 = vadd.s32 1, %v5515_v4  ;;  %6550 = vpow2.f32 %v1810_v54  ;;  %v7576_v45 = vpop.f32.mrf.mxu3 }
 0x9dc   :  { %v1914_v55 = vadd.s32 %v7388_v26, %v7386_v59  ;;  %v1812_v44 = vmul.f32 1.442695, %v1804_v53  ;;  %v2593_v41 = vand.u32 2139095040, %v7534_v46  ;;  %v2101_v28 = vsel %vm7477_vm10, 0, %v2099_v6 }
 0x9dd   :  { %v7542_v20 = vshrl.u32 %v2381_v0, 30  ;;  %v1945_v52 = vsel %vm1822_vm15, %v1944_v5, %v7436_v43  ;;  %vm2139_vm0 = vcmp.gt.s32.totalorder %v2138_v39, 0  ;;  %v7554_v15 = vpop.eup %6548  ;;  %v2106_v37 = vadd.f32 -0.4999988, %v2105_v49 }
 0x9de   :  { %8750 = vst [vmem:[#allocation9_spill] sm:$0xff] %v7554_v15  ;;  %v1932_v11 = vshrl.u32 %v1914_v55, %v1930_v56  ;;  %v7556_v19 = vadd.s32 127, %v1934_v21  ;;  %v2140_v59 = vsel %vm2139_vm0, %v2138_v39, 0  ;;  %v2114_v26 = vmul.f32 %v2113_v10, %v7492_v29 }
 0x9df   :  { %v2383_v23 = vshll.u32 %v7542_v20, 30  ;;  %v2135_v34 = vand.u32 8388607, %v8728_v50  ;;  %v2142_v16 = vand.u32 31, %v2140_v59  ;;  %vm7565_vm1 = vcmp.le.f32.partialorder %v1820_v42, 0.7853982 }
 0x9e0   :  { %v1931_v8 = vshll.u32 %v7464_v24, %v1929_v35  ;;  %6552 = vpow2.f32 %v1812_v44  ;;  %v2594_v1 = vshrl.u32 %v2593_v41, 23  ;;  %v7570_v40 = vand.u32 3, %v2101_v28 }
 0x9e1   :  { %v7559_v33 = vsub.s32 %v2380_v63, %v2383_v23  ;;  %v7572_v47 = vadd.s32 3, %v2101_v28  ;;  %v7578_v14 = vpop.eup %6550  ;;  %v7581_v42 = vmul.f32 %v2106_v37, %v7492_v29  ;;  %v7587_v24 = vsel %vm7565_vm1, 0, %v1945_v52 }
 0x9e2   :  { %v7583_v62 = vor.u32 %v1932_v11, %v1931_v8  ;;  %v2143_v35 = vsub.s32 32, %v2142_v16  ;;  %v7589_v63 = vadd.f32 1.0, %v2114_v26  ;;  %v1936_v58 = vshll.u32 %v7556_v19, 23 }
 0x9e3   :  { %vm2385_vm2 = vcmp.lt.s32.totalorder %v7559_v33, 0  ;;  %v2386_v30 = vsub.s32 0, %v7559_v33  ;;  %v2136_v53 = vor.u32 8388608, %v2135_v34  ;;  %v5524_v4 = vadd.s32 4294967169, %v2594_v1  ;;  %v1764_v1 = vpop.f32.mrf.mxu3 }
 0x9e4   :  { %v2146_v0 = vshrl.u32 %v8737_v13, %v2143_v35  ;;  %v2149_v29 = vshrl.u32 %v8735_v7, %v2143_v35  ;;  %v7595_v6 = vshrl.u32 %v2140_v59, 5  ;;  %v2145_v49 = vshll.u32 %v8742_v3, %v2142_v16 }
 0x9e5   :  { %v2387_v54 = vsel %vm2385_vm2, %v2386_v30, %v7559_v33  ;;  %v2148_v56 = vshll.u32 %v8737_v13, %v2142_v16  ;;  %v2152_v21 = vshrl.u32 %v8733_v27, %v2143_v35  ;;  %v2151_v55 = vshll.u32 %v8735_v7, %v2142_v16 }
 0x9e6   :  { %v2388_v5 = vclz %v2387_v54  ;;  %v7600_v10 = vpop.eup %6552  ;;  %v2154_v44 = vshll.u32 %v8733_v27, %v2142_v16  ;;  %v2155_v41 = vshrl.u32 %v8731_v18, %v2143_v35  ;;  %v2376_v28 = vadd.s32 %v7514_v48, %v7511_v60 }
 0x9e7   :  { %8753 = vst [vmem:[#allocation10_spill] sm:$0xff] %v7600_v10  ;;  %v7607_v52 = vor.u32 %v2146_v0, %v2145_v49  ;;  %v7609_v23 = vor.u32 %v2149_v29, %v2148_v56  ;;  %v2157_v37 = vshll.u32 %v8731_v18, %v2142_v16  ;;  %v2153_v11 = vor.u32 %v2152_v21, %v2151_v55 }
 0x9e8   :  { %v5519_v39 = vadd.s32 4294967294, %v2388_v5  ;;  %v2156_v19 = vor.u32 %v2155_v41, %v2154_v44  ;;  %v2158_v59 = vshrl.u32 %v8730_v22, %v2143_v35  ;;  %vm2160_vm6 = vcmp.lt.s32.totalorder %v7595_v6, 1 }
 0x9e9   :  { %v7614_v34 = vshll.u32 %v2136_v53, 8  ;;  %v2600_v8 = vadd.s32 1, %v5524_v4  ;;  %vm2163_vm8 = vcmp.lt.s32.totalorder %v7595_v6, 4  ;;  %vm2161_vm9 = vcmp.lt.s32.totalorder %v7595_v6, 2 }
 0x9ea   :  { %vm5520_vm4 = vcmp.lt.s32.totalorder %v5519_v39, 0  ;;  %v2159_v48 = vor.u32 %v2158_v59, %v2157_v37  ;;  %vm2162_vm10 = vcmp.lt.s32.totalorder %v7595_v6, 3  ;;  %v2168_v16 = vsel %vm2160_vm6, %v7607_v52, %v7609_v23 }
 0x9eb   :  { %v2391_v26 = vsel %vm5520_vm4, 0, %v5519_v39  ;;  %v2169_v54 = vsel %vm2163_vm8, %v2156_v19, 920167782  ;;  %v1937_v4 = vor.u32 4788187, %v1936_v58  ;;  %v2172_v56 = vsel %vm2160_vm6, %v7609_v23, %v2153_v11 }
 0x9ec   :  { %v2392_v30 = vsub.s32 32, %v2391_v26  ;;  %v2396_v60 = vsub.s32 4294967266, %v2391_v26  ;;  %v2393_v53 = vshll.u32 %v7559_v33, %v2391_v26  ;;  %v2170_v29 = vsel %vm2162_vm10, %v2153_v11, %v2169_v54 }
 0x9ed   :  { %v2171_v49 = vsel %vm2161_vm9, %v2168_v16, %v2170_v29  ;;  %v2173_v21 = vsel %vm2163_vm8, %v2159_v48, 1326507024  ;;  %v2177_v58 = vand.u32 65535, %v7614_v34  ;;  %vm2601_vm11 = vcmp.gt.s32.totalorder %v2600_v8, 0 }
 0x9ee   :  { %v2394_v5 = vshrl.u32 %v2376_v28, %v2392_v30  ;;  %v2397_v0 = vadd.s32 127, %v2396_v60  ;;  %v2174_v33 = vsel %vm2162_vm10, %v2156_v19, %v2173_v21  ;;  %v2201_v44 = vand.u32 65535, %v2171_v49 }
 0x9ef   :  { %v2175_v41 = vsel %vm2161_vm9, %v2172_v56, %v2174_v33  ;;  %v2178_v28 = vshrl.u32 %v7614_v34, 16  ;;  %v2202_v37 = vshrl.u32 %v2171_v49, 16  ;;  %v1938_v30 = vand.u32 2147483647, %v1937_v4 }
 0x9f0   :  { %v2395_v39 = vor.u32 %v2394_v5, %v2393_v53  ;;  %v2398_v55 = vshll.u32 %v2397_v0, 23  ;;  %v2179_v26 = vand.u32 65535, %v2175_v41  ;;  %v2180_v1 = vshrl.u32 %v2175_v41, 16  ;;  %v7645_v41 = vpop.f32.mrf.mxu2 }
 0x9f1   :  { %v2144_v60 = vshrl.u32 %v8742_v3, %v2143_v35  ;;  %v2204_v48 = vmul.u32 %v2202_v37, %v2177_v58  ;;  %v2205_v16 = vmul.u32 %v2201_v44, %v2178_v28  ;;  %vm2284_vm12 = vcmp.lt.s32.totalorder %v7338_v61, 0 }
 0x9f2   :  { %v2399_v59 = vor.u32 4788187, %v2398_v55  ;;  %v2402_v54 = vcvt.s32.f32 %v2395_v39  ;;  %v2182_v53 = vmul.u32 %v2180_v1, %v2177_v58  ;;  %v2183_v5 = vmul.u32 %v2179_v26, %v2178_v28 }
 0x9f3   :  { %v2165_v0 = vsel %vm2163_vm8, %v2153_v11, 2102212464  ;;  %v2203_v29 = vmul.u32 %v2201_v44, %v2177_v58  ;;  %v2207_v49 = vshll.u32 %v2204_v48, 16  ;;  %v2602_v56 = vsel %vm2601_vm11, %v2600_v8, 0 }
 0x9f4   :  { %v2400_v19 = vand.u32 2147483647, %v2399_v59  ;;  %v2181_v55 = vmul.u32 %v2179_v26, %v2177_v58  ;;  %v2185_v33 = vshll.u32 %v2182_v53, 16  ;;  %v2206_v4 = vmul.u32 %v2202_v37, %v2178_v28 }
 0x9f5   :  { %vm7649_vm13 = vcmp.le.f32.partialorder %v2282_v12, 0.7853982  ;;  %v2184_v39 = vmul.u32 %v2180_v1, %v2178_v28  ;;  %v2209_v59 = vshll.u32 %v2205_v16, 16  ;;  %vm2211_vm14 = vc.u32 %v2203_v29, %v2207_v49 }
 0x9f6   :  { %v2403_v21 = vmul.f32 %v2402_v54, %v2400_v19  ;;  %v2213_v50 = vadd.s32 %v2207_v49, %v2203_v29  ;;  %v2187_v11 = vshll.u32 %v2183_v5, 16  ;;  %vm2189_vm0 = vc.u32 %v2181_v55, %v2185_v33 }
 0x9f7   :  { %v2191_v44 = vadd.s32 %v2185_v33, %v2181_v55  ;;  %v2212_v8 = vsel %vm2211_vm14, 1, %v8739_v17  ;;  %v2190_v37 = vsel %vm2189_vm0, 1, %v8739_v17  ;;  %v1940_v19 = vcvt.s32.f32 %v7583_v62 }
 0x9f8   :  { %v2404_v58 = vxor.u32 2147483648, %v2403_v21  ;;  %v2214_v26 = vadd.s32 %v2212_v8, %v2206_v4  ;;  %vm2215_vm2 = vc.u32 %v2213_v50, %v2209_v59  ;;  %v2192_v12 = vadd.s32 %v2190_v37, %v2184_v39 }
 0x9f9   :  { %vm2193_vm4 = vc.u32 %v2191_v44, %v2187_v11  ;;  %v2216_v54 = vsel %vm2215_vm2, 1, %v8739_v17  ;;  %v2164_v28 = vsel %vm2160_vm6, %v2144_v60, %v7607_v52  ;;  %v2208_v29 = vshrl.u32 %v2204_v48, 16 }
 0x9fa   :  { %v2194_v1 = vsel %vm2193_vm4, 1, %v8739_v17  ;;  %v2218_v49 = vadd.s32 %v2216_v54, %v2214_v26  ;;  %v2166_v55 = vsel %vm2162_vm10, %v7609_v23, %v2165_v0  ;;  %v2186_v33 = vshrl.u32 %v2182_v53, 16  ;;  %v1782_v26 = vpop.f32.mrf.mxu2 }
 0x9fb   :  { %v2196_v4 = vadd.s32 %v2194_v1, %v2192_v12  ;;  %v2604_v8 = vand.u32 31, %v2602_v56  ;;  %v1941_v62 = vmul.f32 %v1940_v19, %v1938_v30  ;;  %v2405_v39 = vsel %vm2284_vm12, %v2404_v58, %v2403_v21 }
 0x9fc   :  { %v2210_v11 = vshrl.u32 %v2205_v16, 16  ;;  %v2219_v44 = vadd.s32 %v2218_v49, %v2208_v29  ;;  %v7667_v37 = vand.u32 3, %v7572_v47  ;;  %v2188_v52 = vshrl.u32 %v2183_v5, 16 }
 0x9fd   :  { %v2197_v60 = vadd.s32 %v2196_v4, %v2186_v33  ;;  %v7669_v48 = vsub.s32 32, %v2604_v8  ;;  %v7673_v23 = vadd.f32 %v7530_v25, %v7495_v9  ;;  %v2167_v30 = vsel %vm2161_vm9, %v2164_v28, %v2166_v55 }
 0x9fe   :  { %v2220_v53 = vadd.s32 %v2219_v44, %v2210_v11  ;;  %v8729_v0 = vand.u32 2147483647, %v7534_v46  ;;  %v2898_v16 = vadd.s32 3, %v7587_v24  ;;  %v7682_v47 = vsel %vm7649_vm13, %v7338_v61, %v2405_v39 }
 0x9ff   :  { %v7684_v5 = vadd.s32 %v2197_v60, %v2188_v52  ;;  %v7686_v21 = vadd.s32 %v2213_v50, %v2209_v59  ;;  %v7690_v25 = vmul.f32 %v7589_v63, %v7485_v31  ;;  %v7693_v6 = vadd.f32 1.0, %v7581_v42 }
 0xa00   :  { %v1942_v58 = vxor.u32 2147483648, %v1941_v62  ;;  %v2224_v19 = vadd.s32 1, %v2220_v53  ;;  %v2221_v12 = vmul.u32 %v7614_v34, %v2167_v30  ;;  %v2611_v54 = vshrl.u32 %v8735_v7, %v7669_v48 }
 0xa01   :  { %vm2223_vm6 = vc.u32 %v7684_v5, %v7686_v21  ;;  %v2614_v50 = vshrl.u32 %v8733_v27, %v7669_v48  ;;  %v7704_v31 = vmul.f32 %v7682_v47, %v7682_v47  ;;  %v2597_v42 = vand.u32 8388607, %v8729_v0 }
 0xa02   :  { %v2225_v63 = vsel %vm2223_vm6, %v2224_v19, %v2220_v53  ;;  %v7708_v59 = vshrl.u32 %v2602_v56, 5  ;;  %v2608_v28 = vshrl.u32 %v8737_v13, %v7669_v48  ;;  %v2610_v1 = vshll.u32 %v8737_v13, %v2604_v8 }
 0xa03   :  { %v2226_v34 = vadd.s32 %v2225_v63, %v2221_v12  ;;  %v2613_v29 = vshll.u32 %v8735_v7, %v2604_v8  ;;  %v2616_v49 = vshll.u32 %v8733_v27, %v2604_v8  ;;  %v2617_v55 = vshrl.u32 %v8731_v18, %v7669_v48 }
 0xa04   :  { %v2619_v33 = vshll.u32 %v8731_v18, %v2604_v8  ;;  %v2620_v4 = vshrl.u32 %v8730_v22, %v7669_v48  ;;  %v2607_v39 = vshll.u32 %v8742_v3, %v2604_v8  ;;  %v7721_v11 = vor.u32 %v2611_v54, %v2610_v1 }
 0xa05   :  { %v2227_v56 = vadd.s32 536870912, %v2226_v34  ;;  %v2615_v44 = vor.u32 %v2614_v50, %v2613_v29  ;;  %vm2120_vm8 = vcmp.eq.s32.totalorder %v7570_v40, 0  ;;  %v1943_v52 = vsel %vm1822_vm15, %v1942_v58, %v1941_v62 }
 0xa06   :  { %v2598_v60 = vor.u32 8388608, %v2597_v42  ;;  %v2618_v26 = vor.u32 %v2617_v55, %v2616_v49  ;;  %v2621_v30 = vor.u32 %v2620_v4, %v2619_v33  ;;  %vm3056_vm9 = vcmp.eq.s32.totalorder %v7667_v37, 0 }
 0xa07   :  { %v2418_v53 = vmul.f32 -0.00019511016, %v7704_v31  ;;  %v7728_v19 = vshrl.u32 %v2227_v56, 30  ;;  %v7730_v12 = vor.u32 %v2608_v28, %v2607_v39  ;;  %vm2625_vm10 = vcmp.lt.s32.totalorder %v7708_v59, 4 }
 0xa08   :  { %v2121_v8 = vxor.u32 2147483648, %v7690_v25  ;;  %vm2622_vm11 = vcmp.lt.s32.totalorder %v7708_v59, 1  ;;  %v2631_v62 = vsel %vm2625_vm10, %v2618_v26, 920167782  ;;  %v2635_v58 = vsel %vm2625_vm10, %v2621_v30, 1326507024 }
 0xa09   :  { %v7742_v54 = vsel %vm7565_vm1, %v7262_v57, %v1943_v52  ;;  %v2229_v50 = vshll.u32 %v7728_v19, 30  ;;  %vm2624_vm15 = vcmp.lt.s32.totalorder %v7708_v59, 3  ;;  %v2634_v63 = vsel %vm2622_vm11, %v7721_v11, %v2615_v44 }
 0xa0a   :  { %v2411_v42 = vmul.f32 -0.001358992, %v7704_v31  ;;  %vm2623_vm14 = vcmp.lt.s32.totalorder %v7708_v59, 2  ;;  %v2636_v28 = vsel %vm2624_vm15, %v2618_v26, %v2635_v58  ;;  %v7753_v1 = vshll.u32 %v2598_v60, 8 }
 0xa0b   :  { %v2419_v43 = vadd.f32 0.008332121, %v2418_v53  ;;  %v7755_v29 = vsub.s32 %v2226_v34, %v2229_v50  ;;  %v2630_v49 = vsel %vm2622_vm11, %v7730_v12, %v7721_v11  ;;  %v2632_v55 = vsel %vm2624_vm15, %v2615_v44, %v2631_v62 }
 0xa0c   :  { %v7765_v33 = vmul.f32 %v7742_v54, %v7742_v54  ;;  %v2406_v4 = vsub.s32 4, %v7542_v20  ;;  %v2637_v34 = vsel %vm2623_vm14, %v2634_v63, %v2636_v28  ;;  %v7772_v39 = vand.u32 3, %v7587_v24 }
 0xa0d   :  { %v7774_v52 = vand.u32 3, %v2898_v16  ;;  %vm2231_vm1 = vcmp.lt.s32.totalorder %v7755_v29, 0  ;;  %v2232_v60 = vsub.s32 0, %v7755_v29  ;;  %v2412_v30 = vadd.f32 0.041655596, %v2411_v42 }
 0xa0e   :  { %v2633_v53 = vsel %vm2623_vm14, %v2630_v49, %v2632_v55  ;;  %v2641_v62 = vand.u32 65535, %v2637_v34  ;;  %v7784_v58 = vsel %vm2120_vm8, %v7693_v6, %v2121_v8  ;;  %v2420_v24 = vmul.f32 %v2419_v43, %v7704_v31 }
 0xa0f   :  { %v2233_v16 = vsel %vm2231_vm1, %v2232_v60, %v7755_v29  ;;  %v2640_v50 = vshrl.u32 %v7753_v1, 16  ;;  %v7792_v63 = vsel %vm3056_vm9, %v7693_v6, %v2121_v8  ;;  %v7795_v42 = vmul.f32 -0.00019511016, %v7765_v33 }
 0xa10   :  { %v7800_v28 = vsel %vm2284_vm12, %v2406_v4, %v7542_v20  ;;  %v2234_v49 = vclz %v2233_v16  ;;  %v2639_v43 = vand.u32 65535, %v7753_v1  ;;  %v2642_v55 = vshrl.u32 %v2637_v34, 16 }
 0xa11   :  { %v2645_v60 = vmul.u32 %v2641_v62, %v2640_v50  ;;  %v2663_v0 = vand.u32 65535, %v2633_v53  ;;  %v2413_v22 = vmul.f32 %v2412_v30, %v7704_v31  ;;  %v2606_v8 = vshrl.u32 %v8742_v3, %v7669_v48 }
 0xa12   :  { %v5516_v18 = vadd.s32 4294967294, %v2234_v49  ;;  %v2664_v27 = vshrl.u32 %v2633_v53, 16  ;;  %v2421_v7 = vadd.f32 -0.16666654, %v2420_v24  ;;  %v2222_v13 = vadd.s32 %v7686_v21, %v7684_v5 }
 0xa13   :  { %v2627_v20 = vsel %vm2625_vm10, %v2615_v44, 2102212464  ;;  %v2644_v4 = vmul.u32 %v2642_v55, %v2639_v43  ;;  %v2643_v16 = vmul.u32 %v2641_v62, %v2639_v43  ;;  %v2667_v56 = vmul.u32 %v2663_v0, %v2640_v50 }
 0xa14   :  { %vm5517_vm12 = vcmp.lt.s32.totalorder %v5516_v18, 0  ;;  %v2666_v34 = vmul.u32 %v2664_v27, %v2639_v43  ;;  %v2646_v17 = vmul.u32 %v2642_v55, %v2640_v50  ;;  %v2649_v49 = vshll.u32 %v2645_v60, 16 }
 0xa15   :  { %v2237_v26 = vsel %vm5517_vm12, 0, %v5516_v18  ;;  %v2647_v30 = vshll.u32 %v2644_v4, 16  ;;  %v2665_v48 = vmul.u32 %v2663_v0, %v2639_v43  ;;  %v2668_v21 = vmul.u32 %v2664_v27, %v2640_v50 }
 0xa16   :  { %v2238_v38 = vsub.s32 32, %v2237_v26  ;;  %v2242_v2 = vsub.s32 4294967266, %v2237_v26  ;;  %v2669_v53 = vshll.u32 %v2666_v34, 16  ;;  %v2239_v24 = vshll.u32 %v7755_v29, %v2237_v26 }
 0xa17   :  { %vm2651_vm0 = vc.u32 %v2643_v16, %v2647_v30  ;;  %v2653_v5 = vadd.s32 %v2647_v30, %v2643_v16  ;;  %v8756_v10 = vmov 0   ;;  %v2671_v62 = vshll.u32 %v2667_v56, 16 }
 0xa18   :  { %v2240_v3 = vshrl.u32 %v2222_v13, %v2238_v38  ;;  %v2243_v44 = vadd.s32 127, %v2242_v2  ;;  %v2652_v15 = vsel %vm2651_vm0, 1, %v8756_v10  ;;  %vm2123_vm2 = vcmp.eq.s32.totalorder %v7570_v40, 2 }
 0xa19   :  { %vm3059_vm4 = vcmp.eq.s32.totalorder %v7667_v37, 2  ;;  %v2654_v18 = vadd.s32 %v2652_v15, %v2646_v17  ;;  %vm2655_vm6 = vc.u32 %v2653_v5, %v2649_v49  ;;  %vm2673_vm8 = vc.u32 %v2665_v48, %v2669_v53 }
 0xa1a   :  { %v2675_v55 = vadd.s32 %v2669_v53, %v2665_v48  ;;  %vm2119_vm9 = vcmp.lt.s32.totalorder %v7570_v40, 2  ;;  %vm3055_vm10 = vcmp.lt.s32.totalorder %v7667_v37, 2  ;;  %v2241_v0 = vor.u32 %v2240_v3, %v2239_v24 }
 0xa1b   :  { %v2244_v29 = vshll.u32 %v2243_v44, 23  ;;  %v2656_v13 = vsel %vm2655_vm6, 1, %v8756_v10  ;;  %v2674_v27 = vsel %vm2673_vm8, 1, %v8756_v10  ;;  %v2648_v38 = vshrl.u32 %v2644_v4, 16 }
 0xa1c   :  { %v2658_v2 = vadd.s32 %v2656_v13, %v2654_v18  ;;  %v2676_v26 = vadd.s32 %v2674_v27, %v2668_v21  ;;  %vm2677_vm1 = vc.u32 %v2675_v55, %v2671_v62  ;;  %v2414_v50 = vadd.f32 -0.4999988, %v2413_v22 }
 0xa1d   :  { %v2245_v43 = vor.u32 4788187, %v2244_v29  ;;  %v2650_v17 = vshrl.u32 %v2645_v60, 16  ;;  %v2678_v15 = vsel %vm2677_vm1, 1, %v8756_v10  ;;  %vm2117_vm12 = vweird.f32 %v7252_v51 }
 0xa1e   :  { %v2659_v16 = vadd.s32 %v2658_v2, %v2648_v38  ;;  %v2670_v30 = vshrl.u32 %v2666_v34, 16  ;;  %v2680_v49 = vadd.s32 %v2678_v15, %v2676_v26  ;;  %v7822_v3 = vadd.f32 %v7645_v41, %v7257_v36 }
 0xa1f   :  { %v2246_v48 = vand.u32 2147483647, %v2245_v43  ;;  %v2248_v53 = vcvt.s32.f32 %v2241_v0  ;;  %v2626_v4 = vsel %vm2622_vm11, %v2606_v8, %v7730_v12  ;;  %v2628_v22 = vsel %vm2624_vm15, %v7721_v11, %v2627_v20 }
 0xa20   :  { %v1957_v60 = vadd.f32 0.008332121, %v7795_v42  ;;  %v7831_v24 = vadd.s32 %v2659_v16, %v2650_v17  ;;  %v2672_v34 = vshrl.u32 %v2667_v56, 16  ;;  %v2681_v5 = vadd.s32 %v2680_v49, %v2670_v30 }
 0xa21   :  { %v2409_v36 = vsel %vm7649_vm13, 0, %v7800_v28  ;;  %v2249_v41 = vmul.f32 %v2248_v53, %v2246_v48  ;;  %v7836_v21 = vadd.s32 %v2675_v55, %v2671_v62  ;;  %v2439_v44 = vand.u32 2139095040, %v7822_v3 }
 0xa22   :  { %v2422_v12 = vmul.f32 %v2421_v7, %v7704_v31  ;;  %v2415_v8 = vmul.f32 %v2414_v50, %v7704_v31  ;;  %v2629_v11 = vsel %vm2623_vm14, %v2626_v4, %v2628_v22  ;;  %v2682_v42 = vadd.s32 %v2681_v5, %v2672_v34 }
 0xa23   :  { %v8757_v56 = vxor.u32 2147483648, %v7693_v6  ;;  %vm2685_vm13 = vc.u32 %v7831_v24, %v7836_v21  ;;  %v2440_v7 = vshrl.u32 %v2439_v44, 23  ;;  %v1958_v62 = vmul.f32 %v1957_v60, %v7765_v33 }
 0xa24   :  { %v2686_v18 = vadd.s32 1, %v2682_v42  ;;  %v3363_v55 = vadd.s32 3, %v2409_v36  ;;  %v2250_v6 = vxor.u32 2147483648, %v2249_v41  ;;  %v2683_v0 = vmul.u32 %v7753_v1, %v2629_v11 }
 0xa25   :  { %v2125_v35 = vsel %vm2123_vm2, %v8757_v56, %v7690_v25  ;;  %v8758_v28 = vmov %v8757_v56  ;;  %v2423_v29 = vadd.f32 1.0, %v2422_v12  ;;  %v8759_v13 = vmin.f32 %v7673_v23, 4.6051702 }
 0xa26   :  { %v3061_v20 = vsel %vm3059_vm4, %v8758_v28, %v7690_v25  ;;  %v2126_v31 = vsel %vm2119_vm9, %v7784_v58, %v2125_v35  ;;  %v5521_v25 = vadd.s32 4294967169, %v2440_v7  ;;  %v7865_v38 = vadd.f32 1.0, %v2415_v8 }
 0xa27   :  { %v3062_v59 = vsel %vm3055_vm10, %v7792_v63, %v3061_v20  ;;  %v1814_v27 = vmul.f32 1.442695, %v8759_v13  ;;  %v2687_v40 = vsel %vm2685_vm13, %v2686_v18, %v2682_v42  ;;  %v7869_v58 = vsel %vm2117_vm12, nan, %v2126_v31 }
 0xa28   :  { %v2688_v37 = vadd.s32 %v2687_v40, %v2683_v0  ;;  %v2436_v63 = vand.u32 2147483647, %v7822_v3  ;;  %v2446_v2 = vadd.s32 1, %v5521_v25  ;;  %v7874_v26 = vsel %vm2117_vm12, nan, %v3062_v59 }
 0xa29   :  { %v1959_v1 = vadd.f32 -0.16666654, %v1958_v62  ;;  %v7876_v50 = vand.u32 3, %v2409_v36  ;;  %vm2130_vm11 = vcmp.lt.s32.totalorder %v7520_v32, 0  ;;  %v7879_v23 = vand.u32 3, %v3363_v55 }
 0xa2a   :  { %v2251_v43 = vsel %vm2130_vm11, %v2250_v6, %v2249_v41  ;;  %v2689_v17 = vadd.s32 536870912, %v2688_v37  ;;  %vm2447_vm15 = vcmp.gt.s32.totalorder %v2446_v2, 0  ;;  %v7884_v15 = vmul.f32 %v2423_v29, %v7682_v47 }
 0xa2b   :  { %6554 = vpow2.f32 %v1814_v27  ;;  %v2432_v51 = vxor.u32 2147483648, %v7865_v38  ;;  %v2448_v16 = vsel %vm2447_vm15, %v2446_v2, 0  ;;  %v8760_v30 = vand.u32 2147483647, %v7520_v32 }
 0xa2c   :  { %v7893_v48 = vshrl.u32 %v2689_v17, 30  ;;  %v2443_v53 = vand.u32 8388607, %v2436_v63  ;;  %v2450_v4 = vand.u32 31, %v2448_v16  ;;  %v7898_v22 = vmul.f32 %v1959_v1, %v7765_v33 }
 0xa2d   :  { %vm7889_vm14 = vcmp.le.f32.partialorder %v8760_v30, 0.7853982  ;;  %vm2428_vm0 = vcmp.eq.s32.totalorder %v7876_v50, 0  ;;  %vm2431_vm2 = vcmp.eq.s32.totalorder %v7876_v50, 2  ;;  %vm3369_vm4 = vcmp.eq.s32.totalorder %v7879_v23, 2 }
 0xa2e   :  { %v7905_v47 = vsel %vm7889_vm14, %v7520_v32, %v2251_v43  ;;  %v2252_v60 = vsub.s32 4, %v7728_v19  ;;  %v2691_v34 = vshll.u32 %v7893_v48, 30  ;;  %v7910_v5 = vsub.s32 32, %v2450_v4 }
 0xa2f   :  { %v2429_v36 = vxor.u32 2147483648, %v7884_v15  ;;  %v7914_v41 = vsel %vm2431_vm2, %v2432_v51, %v7884_v15  ;;  %v7917_v44 = vsel %vm3369_vm4, %v2432_v51, %v7884_v15  ;;  %v7921_v12 = vadd.f32 %v7576_v45, %v7495_v9  ;;  %v6364_v15 = vld [vmem:[%s8725_s7 + $0x30] sm:$0xff] }
 0xa30   :  { %v7925_v8 = vmul.f32 %v7905_v47, %v7905_v47  ;;  %v7927_v11 = vsub.s32 %v2688_v37, %v2691_v34  ;;  %v2444_v42 = vor.u32 8388608, %v2443_v53  ;;  %v8763_v56 = vmov 683565275  }
 0xa31   :  { %v2453_v35 = vshll.u32 %v8763_v56, %v2450_v4  ;;  %v7930_v28 = vpop.eup %6554  ;;  %v8764_v20 = vmov 2475754826   ;;  %v8765_v59 = vmov 2131351028   ;;  %v8766_v45 = vmov 2102212464  }
 0xa32   :  { %v2454_v7 = vshrl.u32 %v8764_v20, %v7910_v5  ;;  %v2456_v31 = vshll.u32 %v8764_v20, %v2450_v4  ;;  %v2457_v9 = vshrl.u32 %v8765_v59, %v7910_v5  ;;  %v2460_v62 = vshrl.u32 %v8766_v45, %v7910_v5 }
 0xa33   :  { %vm2693_vm6 = vcmp.lt.s32.totalorder %v7927_v11, 0  ;;  %v2694_v18 = vsub.s32 0, %v7927_v11  ;;  %v7941_v55 = vshrl.u32 %v2448_v16, 5  ;;  %v2459_v6 = vshll.u32 %v8765_v59, %v2450_v4 }
 0xa34   :  { %v7944_v0 = vor.u32 %v2454_v7, %v2453_v35  ;;  %v7946_v25 = vor.u32 %v2457_v9, %v2456_v31  ;;  %v2462_v29 = vshll.u32 %v8766_v45, %v2450_v4  ;;  %v8767_v13 = vmov 920167782  }
 0xa35   :  { %v2463_v27 = vshrl.u32 %v8767_v13, %v7910_v5  ;;  %v2695_v40 = vsel %vm2693_vm6, %v2694_v18, %v7927_v11  ;;  %v2461_v37 = vor.u32 %v2460_v62, %v2459_v6  ;;  %v2465_v2 = vshll.u32 %v8767_v13, %v2450_v4 }
 0xa36   :  { %v8768_v1 = vmov 1326507024   ;;  %v7960_v17 = vsel %vm2428_vm0, %v7865_v38, %v2429_v36  ;;  %v7965_v51 = vsel %vm2130_vm11, %v2252_v60, %v7728_v19  ;;  %v2696_v16 = vclz %v2695_v40 }
 0xa37   :  { %v2466_v43 = vshrl.u32 %v8768_v1, %v7910_v5  ;;  %v2464_v30 = vor.u32 %v2463_v27, %v2462_v29  ;;  %v2264_v53 = vmul.f32 -0.00019511016, %v7925_v8  ;;  %v2684_v4 = vadd.s32 %v7836_v21, %v7831_v24 }
 0xa38   :  { %vm2468_vm8 = vcmp.lt.s32.totalorder %v7941_v55, 1  ;;  %v5525_v35 = vadd.s32 4294967294, %v2696_v16  ;;  %vm2471_vm9 = vcmp.lt.s32.totalorder %v7941_v55, 4  ;;  %v7976_v19 = vshll.u32 %v2444_v42, 8 }
 0xa39   :  { %v2467_v34 = vor.u32 %v2466_v43, %v2465_v2  ;;  %v2476_v20 = vsel %vm2468_vm8, %v7944_v0, %v7946_v25  ;;  %vm2470_vm10 = vcmp.lt.s32.totalorder %v7941_v55, 3  ;;  %v2477_v60 = vsel %vm2471_vm9, %v2464_v30, 920167782 }
 0xa3a   :  { %v2480_v24 = vsel %vm2468_vm8, %v7946_v25, %v2461_v37  ;;  %vm5526_vm1 = vcmp.lt.s32.totalorder %v5525_v35, 0  ;;  %vm2469_vm12 = vcmp.lt.s32.totalorder %v7941_v55, 2  ;;  %v2478_v7 = vsel %vm2470_vm10, %v2461_v37, %v2477_v60  ;;  %v6370_v55 = vld [vmem:[%s8725_s7 + $0x60] sm:$0xff] }
 0xa3b   :  { %v2481_v21 = vsel %vm2471_vm9, %v2467_v34, 1326507024  ;;  %v2265_v31 = vadd.f32 0.008332121, %v2264_v53  ;;  %v2699_v59 = vsel %vm5526_vm1, 0, %v5525_v35  ;;  %v2479_v9 = vsel %vm2469_vm12, %v2476_v20, %v2478_v7  ;;  %v6373_v7 = vld [vmem:[%s8725_s7 + $0x78] sm:$0xff] }
 0xa3c   :  { %v2482_v42 = vsel %vm2470_vm10, %v2464_v30, %v2481_v21  ;;  %v2700_v62 = vsub.s32 32, %v2699_v59  ;;  %v2704_v18 = vsub.s32 4294967266, %v2699_v59  ;;  %v2486_v6 = vshrl.u32 %v7976_v19, 16  ;;  %4005 = vmatpush.bf16.msrb.mxu0 %v6373_v7 }
 0xa3d   :  { %v2483_v45 = vsel %vm2469_vm12, %v2480_v24, %v2482_v42  ;;  %v2485_v13 = vand.u32 65535, %v7976_v19  ;;  %v2509_v40 = vand.u32 65535, %v2479_v9  ;;  %v2510_v2 = vshrl.u32 %v2479_v9, 16 }
 0xa3e   :  { %v2487_v29 = vand.u32 65535, %v2483_v45  ;;  %v2488_v27 = vshrl.u32 %v2483_v45, 16  ;;  %v2701_v1 = vshll.u32 %v7927_v11, %v2699_v59  ;;  %v2702_v43 = vshrl.u32 %v2684_v4, %v2700_v62  ;;  %v6389_v4 = vld [vmem:[%s8725_s7 + $0xf8] sm:$0xff] }
 0xa3f   :  { %v2705_v16 = vadd.s32 127, %v2704_v18  ;;  %v2266_v53 = vmul.f32 %v2265_v31, %v7925_v8  ;;  %v2452_v34 = vshrl.u32 %v8763_v56, %v7910_v5  ;;  %v8003_v20 = vmul.u32 %v2510_v2, %v2485_v13  ;;  %3873 = vmatpush.bf16.msra.mxu3 %v6389_v4 }
 0xa40   :  { %v7998_v30 = vmul.u32 %v2487_v29, %v2486_v6  ;;  %v2490_v35 = vmul.u32 %v2488_v27, %v2485_v13  ;;  %vm3366_vm13 = vcmp.eq.s32.totalorder %v7879_v23, 0  ;;  %v2703_v60 = vor.u32 %v2702_v43, %v2701_v1 }
 0xa41   :  { %v2706_v24 = vshll.u32 %v2705_v16, 23  ;;  %v2473_v21 = vsel %vm2471_vm9, %v2461_v37, 2102212464  ;;  %v2489_v11 = vmul.u32 %v2487_v29, %v2485_v13  ;;  %vm2592_vm11 = vcmp.lt.s32.totalorder %v7534_v46, 0 }
 0xa42   :  { %v2492_v5 = vmul.u32 %v2488_v27, %v2486_v6  ;;  %v2493_v56 = vshll.u32 %v2490_v35, 16  ;;  %v2511_v42 = vmul.u32 %v2509_v40, %v2485_v13  ;;  %v8015_v31 = vmul.u32 %v2509_v40, %v2486_v6 }
 0xa43   :  { %v8769_v59 = vand.u32 2147483647, %v7534_v46  ;;  %v2707_v9 = vor.u32 4788187, %v2706_v24  ;;  %v2495_v45 = vshll.u32 %v7998_v30, 16  ;;  %v2514_v62 = vmul.u32 %v2510_v2, %v2486_v6  ;;  %v6388_v6 = vld [vmem:[%s8725_s7 + $0xf0] sm:$0xff] }
 0xa44   :  { %v2515_v18 = vshll.u32 %v8003_v20, 16  ;;  %v2710_v29 = vcvt.s32.f32 %v2703_v60  ;;  %vm2497_vm0 = vc.u32 %v2489_v11, %v2493_v56  ;;  %v2499_v27 = vadd.s32 %v2493_v56, %v2489_v11  ;;  %v6372_v2 = vld [vmem:[%s8725_s7 + $0x70] sm:$0xff]  ;;  %3874 = vmatpush.bf16.msra.mxu3 %v6388_v6  ;;  %v6365_v56 = vld [vmem:[%s8725_s7 + $0x38] sm:$0xff] }
 0xa45   :  { %vm8019_vm15 = vcmp.le.f32.partialorder %v8769_v59, 0.7853982  ;;  %v2517_v13 = vshll.u32 %v8015_v31, 16  ;;  %vm2427_vm2 = vcmp.lt.s32.totalorder %v7876_v50, 2  ;;  %vm3365_vm4 = vcmp.lt.s32.totalorder %v7879_v23, 2  ;;  %4006 = vmatpush.bf16.msrb.mxu0 %v6372_v2  ;;  %3987 = vmatpush.bf16.msra.mxu2 %v6365_v56  ;;  %v6363_v50 = vld [vmem:[%s8725_s7 + $0x28] sm:$0xff] }
 0xa46   :  { %v2708_v40 = vand.u32 2147483647, %v2707_v9  ;;  %v2498_v1 = vsel %vm2497_vm0, 1, %v8756_v10  ;;  %vm2519_vm6 = vc.u32 %v2511_v42, %v2515_v18  ;;  %v2521_v43 = vadd.s32 %v2515_v18, %v2511_v42  ;;  %v6381_v42 = vld [vmem:[%s8725_s7 + $0xb8] sm:$0xff]  ;;  %v6387_v18 = vld [vmem:[%s8725_s7 + $0xe8] sm:$0xff] }
 0xa47   :  { %v2472_v16 = vsel %vm2468_vm8, %v2452_v34, %v7944_v0  ;;  %v2500_v60 = vadd.s32 %v2498_v1, %v2492_v5  ;;  %vm2501_vm9 = vc.u32 %v2499_v27, %v2495_v45  ;;  %v2520_v24 = vsel %vm2519_vm6, 1, %v8756_v10  ;;  %3855 = vmatpush.bf16.msrb.mxu1 %v6381_v42  ;;  %v6379_v23 = vld [vmem:[%s8725_s7 + $0xa8] sm:$0xff] }
 0xa48   :  { %v2711_v11 = vmul.f32 %v2710_v29, %v2708_v40  ;;  %v2502_v4 = vsel %vm2501_vm9, 1, %v8756_v10  ;;  %v2522_v7 = vadd.s32 %v2520_v24, %v2514_v62  ;;  %vm2523_vm1 = vc.u32 %v2521_v43, %v2517_v13  ;;  %v6371_v29 = vld [vmem:[%s8725_s7 + $0x68] sm:$0xff]  ;;  %3875 = vmatpush.bf16.msra.mxu3 %v6387_v18 }
 0xa49   :  { %v2474_v0 = vsel %vm2470_vm10, %v7946_v25, %v2473_v21  ;;  %v2494_v34 = vshrl.u32 %v2490_v35, 16  ;;  %v2504_v5 = vadd.s32 %v2502_v4, %v2500_v60  ;;  %v2524_v59 = vsel %vm2523_vm1, 1, %v8756_v10  ;;  %4007 = vmatpush.bf16.msrb.mxu0 %v6371_v29  ;;  %3988 = vmatpush.bf16.msra.mxu2 %v6364_v15  ;;  %v6362_v29 = vld [vmem:[%s8725_s7 + $0x20] sm:$0xff] }
 0xa4a   :  { %v2712_v9 = vxor.u32 2147483648, %v2711_v11  ;;  %v2516_v45 = vshrl.u32 %v8003_v20, 16  ;;  %v2526_v62 = vadd.s32 %v2524_v59, %v2522_v7  ;;  %v1949_v25 = vmul.f32 -0.001358992, %v7765_v33 }
 0xa4b   :  { %v3368_v10 = vsel %vm3366_vm13, %v7865_v38, %v2429_v36  ;;  %v2267_v35 = vadd.f32 -0.16666654, %v2266_v53  ;;  %v2496_v20 = vshrl.u32 %v7998_v30, 16  ;;  %v2505_v21 = vadd.s32 %v2504_v5, %v2494_v34  ;;  %v6380_v38 = vld [vmem:[%s8725_s7 + $0xb0] sm:$0xff] }
 0xa4c   :  { %v2713_v27 = vsel %vm2592_vm11, %v2712_v9, %v2711_v11  ;;  %v2518_v40 = vshrl.u32 %v8015_v31, 16  ;;  %v2527_v1 = vadd.s32 %v2526_v62, %v2516_v45  ;;  %v1950_v36 = vadd.f32 0.041655596, %v1949_v25  ;;  %3856 = vmatpush.bf16.msrb.mxu1 %v6380_v38  ;;  %v6386_v11 = vld [vmem:[%s8725_s7 + $0xe0] sm:$0xff] }
 0xa4d   :  { %v8076_v30 = vsel %vm8019_vm15, %v7534_v46, %v2713_v27  ;;  %v2475_v53 = vsel %vm2469_vm12, %v2472_v16, %v2474_v0  ;;  %v8080_v31 = vadd.s32 %v2505_v21, %v2496_v20  ;;  %v8082_v6 = vadd.s32 %v2521_v43, %v2517_v13  ;;  %3876 = vmatpush.bf16.msra.mxu3 %v6386_v11  ;;  %v6378_v25 = vld [vmem:[%s8725_s7 + $0xa0] sm:$0xff] }
 0xa4e   :  { %v2714_v2 = vsub.s32 4, %v7893_v48  ;;  %v8087_v60 = vmul.f32 %v8076_v30, %v8076_v30  ;;  %v2528_v24 = vadd.s32 %v2527_v1, %v2518_v40  ;;  %v1951_v13 = vmul.f32 %v1950_v36, %v7765_v33  ;;  %4008 = vmatpush.bf16.msrb.mxu0 %v6370_v55  ;;  %3989 = vmatpush.bf16.msra.mxu2 %v6363_v50  ;;  %v6361_v36 = vld [vmem:[%s8725_s7 + $0x18] sm:$0xff]  ;;  %v6383_v55 = vld [vmem:[%s8725_s7 + $0xc8] sm:$0xff] }
 0xa4f   :  { %v2434_v43 = vsel %vm2427_vm2, %v7960_v17, %v7914_v41  ;;  %v3372_v16 = vsel %vm3365_vm4, %v3368_v10, %v7917_v44  ;;  %v1807_v4 = vmin.f32 %v7921_v12, 4.6051702  ;;  %vm2531_vm8 = vc.u32 %v8080_v31, %v8082_v6 }
 0xa50   :  { %v2255_v7 = vsel %vm7889_vm14, 0, %v7965_v51  ;;  %v2268_v56 = vmul.f32 %v2267_v35, %v7925_v8  ;;  %v2726_v42 = vmul.f32 -0.00019511016, %v8087_v60  ;;  %v2532_v0 = vadd.s32 1, %v2528_v24  ;;  %3857 = vmatpush.bf16.msrb.mxu1 %v6379_v23 }
 0xa51   :  { %v1961_v41 = vadd.f32 1.0, %v7898_v22  ;;  %vm2425_vm10 = vweird.f32 %v7338_v61  ;;  %v2529_v49 = vmul.u32 %v7976_v19, %v2475_v53  ;;  %v1952_v44 = vadd.f32 -0.4999988, %v1951_v13  ;;  %v6385_v22 = vld [vmem:[%s8725_s7 + $0xd8] sm:$0xff]  ;;  %v6367_v13 = vld [vmem:[%s8725_s7 + $0x48] sm:$0xff] }
 0xa52   :  { %v2435_v12 = vsel %vm2425_vm10, nan, %v2434_v43  ;;  %v2715_v17 = vsel %vm2592_vm11, %v2714_v2, %v7893_v48  ;;  %v2727_v51 = vadd.f32 0.008332121, %v2726_v42  ;;  %v2533_v34 = vsel %vm2531_vm8, %v2532_v0, %v2528_v24  ;;  %v6369_v61 = vld [vmem:[%s8725_s7 + $0x58] sm:$0xff]  ;;  %3877 = vmatpush.bf16.msra.mxu3 %v6385_v22  ;;  %3990 = vmatpush.bf16.msra.mxu2 %v6362_v29  ;;  %v6376_v42 = vld [vmem:[%s8725_s7 + $0x90] sm:$0xff] }
 0xa53   :  { %v3373_v19 = vsel %vm2425_vm10, nan, %v3372_v16  ;;  %v3208_v5 = vadd.s32 3, %v2255_v7  ;;  %v2534_v59 = vadd.s32 %v2533_v34, %v2529_v49  ;;  %v1953_v48 = vmul.f32 %v1952_v44, %v7765_v33  ;;  %4009 = vmatpush.bf16.msrb.mxu0 %v6369_v61  ;;  %v6377_v53 = vld [vmem:[%s8725_s7 + $0x98] sm:$0xff]  ;;  %v6382_v49 = vld [vmem:[%s8725_s7 + $0xc0] sm:$0xff] }
 0xa54   :  { %v8135_v9 = vmul.f32 %v7578_v14, %v7869_v58  ;;  %v2269_v45 = vadd.f32 1.0, %v2268_v56  ;;  %v2728_v62 = vmul.f32 %v2727_v51, %v8087_v60  ;;  %v1818_v18 = vmul.f32 1.442695, %v1807_v4  ;;  %3858 = vmatpush.bf16.msrb.mxu1 %v6378_v25  ;;  %v6360_v56 = vld [vmem:[%s8725_s7 + $0x10] sm:$0xff]  ;;  %v6366_v44 = vld [vmem:[%s8725_s7 + $0x40] sm:$0xff] }
 0xa55   :  { %v8146_v33 = vmul.f32 %v7578_v14, %v7874_v26  ;;  %v8149_v58 = vmul.f32 %v1961_v41, %v7742_v54  ;;  %v2717_v10 = vsel %vm8019_vm15, 0, %v2715_v17  ;;  %v2535_v35 = vadd.s32 536870912, %v2534_v59  ;;  %v6384_v14 = vld [vmem:[%s8725_s7 + $0xd0] sm:$0xff] }
 0xa56   :  { %v8154_v20 = vmul.f32 %v7930_v28, %v2435_v12  ;;  %v8157_v21 = vmul.f32 %v7930_v28, %v3373_v19  ;;  %v8159_v27 = vand.u32 3, %v2255_v7  ;;  %v2729_v40 = vadd.f32 -0.16666654, %v2728_v62  ;;  %v6368_v54 = vld [vmem:[%s8725_s7 + $0x50] sm:$0xff]  ;;  %3878 = vmatpush.bf16.msra.mxu3 %v6384_v14  ;;  %3991 = vmatpush.bf16.msra.mxu2 %v6361_v36 }
 0xa57   :  { %v8167_v26 = vand.u32 3, %v3208_v5  ;;  %v8169_v37 = vshrl.u32 %v2535_v35, 30  ;;  %v1954_v1 = vadd.f32 1.0, %v1953_v48  ;;  %v2257_v28 = vmul.f32 -0.001358992, %v7925_v8  ;;  %4010 = vmatpush.bf16.msrb.mxu0 %v6368_v54  ;;  %v6359_v48 = vld [vmem:[%s8725_s7 + $0x8] sm:$0xff] }
 0xa58   :  { %v8173_v15 = vmul.f32 %v2269_v45, %v7905_v47  ;;  %v3673_v38 = vadd.s32 3, %v2717_v10  ;;  %6556 = vpow2.f32 %v1818_v18  ;;  %vm1963_vm14 = vweird.f32 %v7262_v57  ;;  %3859 = vmatpush.bf16.msrb.mxu1 %v6377_v53  ;;  %v6375_v45 = vld [vmem:[%s8725_s7 + $0x88] sm:$0xff]  ;;  %v6358_v57 = vld [vmem:[%s8725_s7] sm:$0xff]  ;;  %v8772_v54 = vld [vmem:[#allocation9_spill] sm:$0xff] }
 0xa59   :  { %v2730_v2 = vmul.f32 %v2729_v40, %v8087_v60  ;;  %v2537_v24 = vshll.u32 %v8169_v37, 30  ;;  %v2258_v47 = vadd.f32 0.041655596, %v2257_v28  ;;  %v2719_v11 = vmul.f32 -0.001358992, %v8087_v60  ;;  %v6397_v53 = vld [vmem:[%s8725_s7 + $0x138] sm:$0xff] }
 0xa5a   :  { %vm2900_vm12 = vcmp.lt.s32.totalorder %v7774_v52, 2  ;;  %vm2901_vm13 = vcmp.eq.s32.totalorder %v7774_v52, 0  ;;  %vm2904_vm11 = vcmp.eq.s32.totalorder %v7774_v52, 2  ;;  %vm1965_vm15 = vcmp.lt.s32.totalorder %v7772_v39, 2  ;;  %3879 = vmatpush.bf16.msra.mxu3 %v6383_v55  ;;  %3992 = vmatpush.bf16.msra.mxu2 %v6360_v56  ;;  %v6405_v52 = vld [vmem:[%s8725_s7 + $0x178] sm:$0xff] }
 0xa5b   :  { %v8195_v43 = vsub.s32 %v2534_v59, %v2537_v24  ;;  %v1970_v16 = vxor.u32 2147483648, %v1954_v1  ;;  %v2259_v4 = vmul.f32 %v2258_v47, %v7925_v8  ;;  %vm1966_vm0 = vcmp.eq.s32.totalorder %v7772_v39, 0  ;;  %4011 = vmatpush.bf16.msrb.mxu0 %v6367_v13 }
 0xa5c   :  { %v8201_v7 = vadd.s32 %v8082_v6, %v8080_v31  ;;  %vm1969_vm2 = vcmp.eq.s32.totalorder %v7772_v39, 2  ;;  %v2720_v0 = vadd.f32 0.041655596, %v2719_v11  ;;  %v8210_v50 = vand.u32 3, %v3673_v38  ;;  %3860 = vmatpush.bf16.msrb.mxu1 %v6376_v42  ;;  %v6421_v39 = vld [vmem:[%s8725_s7 + $0x1f8] sm:$0xff]  ;;  %v6404_v38 = vld [vmem:[%s8725_s7 + $0x170] sm:$0xff] }
 0xa5d   :  { %v2731_v23 = vadd.f32 1.0, %v2730_v2  ;;  %vm2539_vm4 = vcmp.lt.s32.totalorder %v8195_v43, 0  ;;  %v2540_v31 = vsub.s32 0, %v8195_v43  ;;  %v1967_v6 = vxor.u32 2147483648, %v8149_v58  ;;  %v6413_v2 = vld [vmem:[%s8725_s7 + $0x1b8] sm:$0xff]  ;;  %v6412_v42 = vld [vmem:[%s8725_s7 + $0x1b0] sm:$0xff] }
 0xa5e   :  { %vm3211_vm6 = vcmp.eq.s32.totalorder %v8167_v26, 0  ;;  %v8216_v41 = vpop.eup %6556  ;;  %v2260_v12 = vadd.f32 -0.4999988, %v2259_v4  ;;  %v2906_v17 = vsel %vm2904_vm11, %v1970_v16, %v8149_v58  ;;  %vm3214_vm9 = vcmp.eq.s32.totalorder %v8167_v26, 2  ;;  %3880 = vmatpush.bf16.msra.mxu3 %v6382_v49  ;;  %3993 = vmatpush.bf16.msra.mxu2 %v6359_v48  ;;  %v6419_v49 = vld [vmem:[%s8725_s7 + $0x1e8] sm:$0xff] }
 0xa5f   :  { %v1971_v51 = vsel %vm1969_vm2, %v1970_v16, %v8149_v58  ;;  %vm2274_vm1 = vcmp.eq.s32.totalorder %v8159_v27, 0  ;;  %v8232_v34 = vand.u32 3, %v2717_v10  ;;  %v2541_v22 = vsel %vm2539_vm4, %v2540_v31, %v8195_v43  ;;  %4012 = vmatpush.bf16.msrb.mxu0 %v6366_v44  ;;  %v6403_v44 = vld [vmem:[%s8725_s7 + $0x168] sm:$0xff] }
 0xa60   :  { %v2903_v61 = vsel %vm2901_vm13, %v1954_v1, %v1967_v6  ;;  %vm3210_vm8 = vcmp.lt.s32.totalorder %v8167_v26, 2  ;;  %v1968_v19 = vsel %vm1966_vm0, %v1954_v1, %v1967_v6  ;;  %vm2273_vm10 = vcmp.lt.s32.totalorder %v8159_v27, 2  ;;  %3861 = vmatpush.bf16.msrb.mxu1 %v6375_v45 }
 0xa61   :  { %v2721_v5 = vmul.f32 %v2720_v0, %v8087_v60  ;;  %v2542_v59 = vclz %v2541_v22  ;;  %v2261_v62 = vmul.f32 %v2260_v12, %v7925_v8  ;;  %vm2271_vm13 = vweird.f32 %v7520_v32  ;;  %v8773_v22 = vld [vmem:[#allocation10_spill] sm:$0xff]  ;;  %v6411_v32 = vld [vmem:[%s8725_s7 + $0x1a8] sm:$0xff] }
 0xa62   :  { %v2907_v18 = vsel %vm2900_vm12, %v2903_v61, %v2906_v17  ;;  %v1972_v29 = vsel %vm1965_vm15, %v1968_v19, %v1971_v51  ;;  %v8255_v25 = vmul.f32 %v2731_v23, %v8076_v30  ;;  %v8259_v58 = vpack.c.bf16 %v8157_v21, %v8146_v33  ;;  %4222 = vmatpush.bf16.msrb.mxu3 %v6421_v39  ;;  %v6420_v21 = vld [vmem:[%s8725_s7 + $0x1f0] sm:$0xff] }
 0xa63   :  { %v8263_v10 = vpack.c.bf16 %v8154_v20, %v8135_v9  ;;  %v2908_v8 = vsel %vm1963_vm14, nan, %v2907_v18  ;;  %v5522_v35 = vadd.s32 4294967294, %v2542_v59  ;;  %v2262_v30 = vadd.f32 1.0, %v2261_v62  ;;  %4354 = vmatpush.bf16.msra.mxu0 %v6405_v52  ;;  %v6374_v20 = vld [vmem:[%s8725_s7 + $0x80] sm:$0xff]  ;;  %3994 = vmatpush.bf16.msra.mxu2 %v6358_v57 }
 0xa64   :  { %v1973_v33 = vsel %vm1963_vm14, nan, %v1972_v29  ;;  %vm2277_vm12 = vcmp.eq.s32.totalorder %v8159_v27, 2  ;;  %3881 = vmatmul.bf16.vlgmr.msra.gmra.mxu3 %v8259_v58  ;;  %v2722_v9 = vadd.f32 -0.4999988, %v2721_v5  ;;  %vm3676_vm11 = vcmp.eq.s32.totalorder %v8210_v50, 0  ;;  %3862 = vmatpush.bf16.msrb.mxu1 %v6374_v20  ;;  %v6395_v5 = vld [vmem:[%s8725_s7 + $0x128] sm:$0xff] }
 0xa65   :  { %4013 = vmatmul.bf16.vlgmr.msrb.gmra.mxu0 %v8263_v10  ;;  %vm3679_vm15 = vcmp.eq.s32.totalorder %v8210_v50, 2  ;;  %vm2736_vm0 = vcmp.eq.s32.totalorder %v8232_v34, 0  ;;  %vm5523_vm2 = vcmp.lt.s32.totalorder %v5522_v35, 0  ;;  %v2275_v40 = vxor.u32 2147483648, %v8173_v15  ;;  %v6418_v29 = vld [vmem:[%s8725_s7 + $0x1e0] sm:$0xff] }
 0xa66   :  { %v2278_v14 = vxor.u32 2147483648, %v2262_v30  ;;  %v3684_v1 = vmul.f32 %v8772_v54, %v2908_v8  ;;  %vm3675_vm14 = vcmp.lt.s32.totalorder %v8210_v50, 2  ;;  %v2545_v28 = vsel %vm5523_vm2, 0, %v5522_v35  ;;  %4223 = vmatpush.bf16.msrb.mxu3 %v6420_v21  ;;  %v6402_v8 = vld [vmem:[%s8725_s7 + $0x160] sm:$0xff]  ;;  %v6401_v50 = vld [vmem:[%s8725_s7 + $0x158] sm:$0xff] }
 0xa67   :  { %v2744_v36 = vmul.f32 %v8772_v54, %v1973_v33  ;;  %v2723_v24 = vmul.f32 %v2722_v9, %v8087_v60  ;;  %v2737_v47 = vxor.u32 2147483648, %v8255_v25  ;;  %v2546_v11 = vsub.s32 32, %v2545_v28  ;;  %4336 = vmatpush.bf16.msrb.mxu2 %v6397_v53  ;;  %4355 = vmatpush.bf16.msra.mxu0 %v6404_v38  ;;  %v6400_v53 = vld [vmem:[%s8725_s7 + $0x150] sm:$0xff] }
 0xa68   :  { %v2547_v55 = vshll.u32 %v8195_v43, %v2545_v28  ;;  %v2550_v13 = vsub.s32 4294967266, %v2545_v28  ;;  %v3213_v16 = vsel %vm3211_vm6, %v2262_v30, %v2275_v40  ;;  %v3216_v4 = vsel %vm3214_vm9, %v2278_v14, %v8173_v15  ;;  %4204 = vmatpush.bf16.msra.mxu1 %v6413_v2  ;;  %v6396_v43 = vld [vmem:[%s8725_s7 + $0x130] sm:$0xff]  ;;  %v6393_v2 = vld [vmem:[%s8725_s7 + $0x118] sm:$0xff] }
 0xa69   :  { %v2276_v56 = vsel %vm2274_vm1, %v2262_v30, %v2275_v40  ;;  %v2279_v60 = vsel %vm2277_vm12, %v2278_v14, %v8173_v15  ;;  %v2724_v0 = vadd.f32 1.0, %v2723_v24  ;;  %v2548_v23 = vshrl.u32 %v8201_v7, %v2546_v11  ;;  %v6394_v14 = vld [vmem:[%s8725_s7 + $0x120] sm:$0xff]  ;;  %v6409_v24 = vld [vmem:[%s8725_s7 + $0x198] sm:$0xff] }
 0xa6a   :  { %v2551_v31 = vadd.s32 127, %v2550_v13  ;;  %v3217_v6 = vsel %vm3210_vm8, %v3213_v16, %v3216_v4  ;;  %v2280_v15 = vsel %vm2273_vm10, %v2276_v56, %v2279_v60  ;;  %vm2735_vm4 = vcmp.lt.s32.totalorder %v8232_v34, 2  ;;  %4224 = vmatpush.bf16.msrb.mxu3 %v6419_v49  ;;  %v8777_v13 = vld [vmem:[#allocation7_spill] sm:$0xff] }
 0xa6b   :  { %v3218_v7 = vsel %vm2271_vm13, nan, %v3217_v6  ;;  %v2281_v12 = vsel %vm2271_vm13, nan, %v2280_v15  ;;  %v2740_v17 = vxor.u32 2147483648, %v2724_v0  ;;  %v3678_v26 = vsel %vm3676_vm11, %v2724_v0, %v2737_v47  ;;  %4337 = vmatpush.bf16.msrb.mxu2 %v6396_v43  ;;  %4356 = vmatpush.bf16.msra.mxu0 %v6403_v44  ;;  %v6415_v60 = vld [vmem:[%s8725_s7 + $0x1c8] sm:$0xff]  ;;  %v6414_v44 = vld [vmem:[%s8725_s7 + $0x1c0] sm:$0xff] }
 0xa6c   :  { %v2549_v27 = vor.u32 %v2548_v23, %v2547_v55  ;;  %v2552_v51 = vshll.u32 %v2551_v31, 23  ;;  %v3686_v61 = vmul.f32 %v8773_v22, %v3218_v7  ;;  %v2746_v19 = vmul.f32 %v8773_v22, %v2281_v12  ;;  %4205 = vmatpush.bf16.msra.mxu1 %v6412_v42  ;;  %v8776_v55 = vld [vmem:[#allocation8_spill] sm:$0xff]  ;;  %v6399_v43 = vld [vmem:[%s8725_s7 + $0x148] sm:$0xff]  ;;  %v6398_v7 = vld [vmem:[%s8725_s7 + $0x140] sm:$0xff] }
 0xa6d   :  { %v3681_v59 = vsel %vm3679_vm15, %v2740_v17, %v8255_v25  ;;  %v2738_v48 = vsel %vm2736_vm0, %v2724_v0, %v2737_v47  ;;  %vm2739_vm6 = vcmp.eq.s32.totalorder %v8232_v34, 2  ;;  %vm2733_vm9 = vweird.f32 %v7534_v46  ;;  %v6417_v46 = vld [vmem:[%s8725_s7 + $0x1d8] sm:$0xff]  ;;  %v6408_v42 = vld [vmem:[%s8725_s7 + $0x190] sm:$0xff] }
 0xa6e   :  { %v2553_v45 = vor.u32 4788187, %v2552_v51  ;;  %v8354_v62 = vpack.c.bf16 %v3686_v61, %v3684_v1  ;;  %v8356_v18 = vpack.c.bf16 %v2746_v19, %v2744_v36  ;;  %v2741_v35 = vsel %vm2739_vm6, %v2740_v17, %v8255_v25  ;;  %4225 = vmatpush.bf16.msrb.mxu3 %v6418_v29  ;;  %v6416_v36 = vld [vmem:[%s8725_s7 + $0x1d0] sm:$0xff]  ;;  %v6391_v17 = vld [vmem:[%s8725_s7 + $0x108] sm:$0xff]  ;;  %v6453_v22 = vld [vmem:[%s8725_s7 + $0x2f8] sm:$0xff] }
 0xa6f   :  { %v3682_v34 = vsel %vm3675_vm14, %v3678_v26, %v3681_v59  ;;  %v2742_v39 = vsel %vm2735_vm4, %v2738_v48, %v2741_v35  ;;  %v2556_v30 = vcvt.s32.f32 %v2549_v27  ;;  %4338 = vmatpush.bf16.msrb.mxu2 %v6395_v5  ;;  %4357 = vmatpush.bf16.msra.mxu0 %v6402_v8  ;;  %vm2438_vm1 = vcmp.lt.s32.totalorder %v7822_v3, 0  ;;  %v6407_v26 = vld [vmem:[%s8725_s7 + $0x188] sm:$0xff]  ;;  %v6437_v61 = vld [vmem:[%s8725_s7 + $0x278] sm:$0xff]  ;;  %v6390_v59 = vld [vmem:[%s8725_s7 + $0x100] sm:$0xff] }
 0xa70   :  { %v2554_v52 = vand.u32 2147483647, %v2553_v45  ;;  %3863 = vmatmul.bf16.vlgmr.msrb.gmra.mxu1 %v8354_v62  ;;  %3995 = vmatmul.bf16.vlgmr.msra.gmra.mxu2 %v8356_v18  ;;  %v3683_v33 = vsel %vm2733_vm9, nan, %v3682_v34  ;;  %v2743_v9 = vsel %vm2733_vm9, nan, %v2742_v39  ;;  %v2560_v1 = vsub.s32 4, %v8169_v37  ;;  %v6406_v48 = vld [vmem:[%s8725_s7 + $0x180] sm:$0xff] }
 0xa71   :  { %4206 = vmatpush.bf16.msra.mxu1 %v6411_v32  ;;  %v3689_v57 = vmul.f32 %v8216_v41, %v3683_v33  ;;  %v2749_v25 = vmul.f32 %v8216_v41, %v2743_v9  ;;  %v6410_v41 = vld [vmem:[%s8725_s7 + $0x1a0] sm:$0xff]  ;;  %vm8394_vm8 = vcmp.le.f32.partialorder %v2436_v63, 0.7853982  ;;  %v1745_v16 = vadd.f32 %v8777_v13, %v8776_v55  ;;  %v6452_v35 = vld [vmem:[%s8725_s7 + $0x2f0] sm:$0xff]  ;;  %v6443_v55 = vld [vmem:[%s8725_s7 + $0x2a8] sm:$0xff] }
 0xa72   :  { %v2557_v20 = vmul.f32 %v2556_v30, %v2554_v52  ;;  %4226 = vmatpush.bf16.msrb.mxu3 %v6417_v46  ;;  %v2561_v11 = vsel %vm2438_vm1, %v2560_v1, %v8169_v37  ;;  %v6392_v37 = vld [vmem:[%s8725_s7 + $0x110] sm:$0xff]  ;;  %v6429_v52 = vld [vmem:[%s8725_s7 + $0x238] sm:$0xff]  ;;  %vm2579_vm2 = vweird.f32 %v7822_v3 }
 0xa73   :  { %v8378_v21 = vpack.c.bf16 %v3689_v57, %v3689_v57  ;;  %v8380_v40 = vpack.c.bf16 %v2749_v25, %v2749_v25  ;;  %4358 = vmatpush.bf16.msra.mxu0 %v6401_v50  ;;  %4339 = vmatpush.bf16.msrb.mxu2 %v6394_v14  ;;  %v2563_v0 = vsel %vm8394_vm8, 0, %v2561_v11  ;;  %v1806_v6 = vmin.f32 %v1745_v16, 4.6051702  ;;  %v6436_v34 = vld [vmem:[%s8725_s7 + $0x270] sm:$0xff]  ;;  %v6445_v30 = vld [vmem:[%s8725_s7 + $0x2b8] sm:$0xff]  ;;  %v6451_v25 = vld [vmem:[%s8725_s7 + $0x2e8] sm:$0xff] }
 0xa74   :  { %v2558_v54 = vxor.u32 2147483648, %v2557_v20  ;;  %v3518_v12 = vadd.s32 3, %v2563_v0  ;;  %v2580_v39 = vand.u32 3, %v2563_v0  ;;  %v6428_v46 = vld [vmem:[%s8725_s7 + $0x230] sm:$0xff]  ;;  %v6425_v0 = vld [vmem:[%s8725_s7 + $0x218] sm:$0xff] }
 0xa75   :  { %3886 = vmatmul.bf16.gmra.mxu3 %v8378_v21  ;;  %4018 = vmatmul.bf16.gmra.mxu0 %v8380_v40  ;;  %v1816_v19 = vmul.f32 1.442695, %v1806_v6  ;;  %v6444_v50 = vld [vmem:[%s8725_s7 + $0x2b0] sm:$0xff]  ;;  %v6431_v6 = vld [vmem:[%s8725_s7 + $0x248] sm:$0xff] }
 0xa76   :  { %v2559_v38 = vsel %vm2438_vm1, %v2558_v54, %v2557_v20  ;;  %4207 = vmatpush.bf16.msra.mxu1 %v6410_v41  ;;  %4227 = vmatpush.bf16.msrb.mxu3 %v6416_v36  ;;  %v3519_v8 = vand.u32 3, %v3518_v12  ;;  %v6435_v20 = vld [vmem:[%s8725_s7 + $0x268] sm:$0xff]  ;;  %vm2581_vm11 = vcmp.lt.s32.totalorder %v2580_v39, 2  ;;  %vm2582_vm15 = vcmp.eq.s32.totalorder %v2580_v39, 0 }
 0xa77   :  { %v2562_v63 = vsel %vm8394_vm8, %v7822_v3, %v2559_v38  ;;  %4359 = vmatpush.bf16.msra.mxu0 %v6400_v53  ;;  %4340 = vmatpush.bf16.msrb.mxu2 %v6393_v2  ;;  %6558 = vpow2.f32 %v1816_v19  ;;  %vm2585_vm0 = vcmp.eq.s32.totalorder %v2580_v39, 2  ;;  %v6450_v2 = vld [vmem:[%s8725_s7 + $0x2e0] sm:$0xff]  ;;  %v6427_v3 = vld [vmem:[%s8725_s7 + $0x228] sm:$0xff]  ;;  %v6468_v19 = vld [vmem:[%s8725_s7 + $0x370] sm:$0xff] }
 0xa78   :  { %v2564_v47 = vmul.f32 %v2562_v63, %v2562_v63  ;;  %vm3520_vm10 = vcmp.lt.s32.totalorder %v3519_v8, 2  ;;  %vm3521_vm13 = vcmp.eq.s32.totalorder %v3519_v8, 0  ;;  %vm3524_vm12 = vcmp.eq.s32.totalorder %v3519_v8, 2  ;;  %v6423_v12 = vld [vmem:[%s8725_s7 + $0x208] sm:$0xff]  ;;  %v6482_v8 = vld [vmem:[%s8725_s7 + $0x3e0] sm:$0xff] }
 0xa79   :  { %v6475_v39 = vld [vmem:[%s8725_s7 + $0x3a8] sm:$0xff] }
 0xa7a   :  { %v2572_v4 = vmul.f32 -0.00019511016, %v2564_v47  ;;  %v2565_v56 = vmul.f32 -0.001358992, %v2564_v47  ;;  %4208 = vmatpush.bf16.msra.mxu1 %v6409_v24  ;;  %4228 = vmatpush.bf16.msrb.mxu3 %v6415_v60  ;;  %v6434_v24 = vld [vmem:[%s8725_s7 + $0x260] sm:$0xff] }
 0xa7b   :  { %4360 = vmatpush.bf16.msra.mxu0 %v6399_v43  ;;  %4341 = vmatpush.bf16.msrb.mxu2 %v6392_v37  ;;  %v6426_v60 = vld [vmem:[%s8725_s7 + $0x220] sm:$0xff]  ;;  %v6448_v37 = vld [vmem:[%s8725_s7 + $0x2d0] sm:$0xff] }
 0xa7c   :  { %v2573_v23 = vadd.f32 0.008332121, %v2572_v4  ;;  %v2566_v31 = vadd.f32 0.041655596, %v2565_v56  ;;  %v6449_v4 = vld [vmem:[%s8725_s7 + $0x2d8] sm:$0xff]  ;;  %v6442_v43 = vld [vmem:[%s8725_s7 + $0x2a0] sm:$0xff] }
 0xa7d   :  { %v6559_v36 = vpop.eup %6558  ;;  %v6433_v56 = vld [vmem:[%s8725_s7 + $0x258] sm:$0xff] }
 0xa7e   :  { %v2574_v15 = vmul.f32 %v2573_v23, %v2564_v47  ;;  %v2567_v49 = vmul.f32 %v2566_v31, %v2564_v47  ;;  %4209 = vmatpush.bf16.msra.mxu1 %v6408_v42  ;;  %4229 = vmatpush.bf16.msrb.mxu3 %v6414_v44  ;;  %v6432_v42 = vld [vmem:[%s8725_s7 + $0x250] sm:$0xff]  ;;  %v6441_v23 = vld [vmem:[%s8725_s7 + $0x298] sm:$0xff]  ;;  %v6447_v31 = vld [vmem:[%s8725_s7 + $0x2c8] sm:$0xff] }
 0xa7f   :  { %4361 = vmatpush.bf16.msra.mxu0 %v6398_v7  ;;  %4342 = vmatpush.bf16.msrb.mxu2 %v6391_v17  ;;  %v6446_v44 = vld [vmem:[%s8725_s7 + $0x2c0] sm:$0xff]  ;;  %v6439_v17 = vld [vmem:[%s8725_s7 + $0x288] sm:$0xff] }
 0xa80   :  { %v2575_v27 = vadd.f32 -0.16666654, %v2574_v15  ;;  %v2568_v51 = vadd.f32 -0.4999988, %v2567_v49  ;;  %v6424_v15 = vld [vmem:[%s8725_s7 + $0x210] sm:$0xff]  ;;  %v6430_v7 = vld [vmem:[%s8725_s7 + $0x240] sm:$0xff] }
 0xa81   :  { %v6440_v49 = vld [vmem:[%s8725_s7 + $0x290] sm:$0xff] }
 0xa82   :  { %v2576_v5 = vmul.f32 %v2575_v27, %v2564_v47  ;;  %v2569_v32 = vmul.f32 %v2568_v51, %v2564_v47  ;;  %4210 = vmatpush.bf16.msra.mxu1 %v6407_v26  ;;  %4571 = vmatpush.bf16.msra.mxu3 %v6453_v22  ;;  %v6485_v26 = vld [vmem:[%s8725_s7 + $0x3f8] sm:$0xff]  ;;  %v6422_v51 = vld [vmem:[%s8725_s7 + $0x200] sm:$0xff] }
 0xa83   :  { %4703 = vmatpush.bf16.msrb.mxu0 %v6437_v61  ;;  %4343 = vmatpush.bf16.msrb.mxu2 %v6390_v59  ;;  %v6469_v27 = vld [vmem:[%s8725_s7 + $0x378] sm:$0xff]  ;;  %v6438_v22 = vld [vmem:[%s8725_s7 + $0x280] sm:$0xff]  ;;  %v6484_v61 = vld [vmem:[%s8725_s7 + $0x3f0] sm:$0xff] }
 0xa84   :  { %v2577_v45 = vadd.f32 1.0, %v2576_v5  ;;  %v2570_v29 = vadd.f32 1.0, %v2569_v32  ;;  %v6461_v5 = vld [vmem:[%s8725_s7 + $0x338] sm:$0xff]  ;;  %v6483_v59 = vld [vmem:[%s8725_s7 + $0x3e8] sm:$0xff] }
 0xa85   :  { %4230 = vmatmul.bf16.vlgmr.msrb.gmra.mxu3 %v8259_v58  ;;  %4362 = vmatmul.bf16.vlgmr.msra.gmra.mxu0 %v8263_v10  ;;  %v6477_v32 = vld [vmem:[%s8725_s7 + $0x3b8] sm:$0xff] }
 0xa86   :  { %v2578_v33 = vmul.f32 %v2577_v45, %v2562_v63  ;;  %v2586_v9 = vxor.u32 2147483648, %v2570_v29  ;;  %4211 = vmatpush.bf16.msra.mxu1 %v6406_v48  ;;  %4572 = vmatpush.bf16.msra.mxu3 %v6452_v35  ;;  %v6467_v48 = vld [vmem:[%s8725_s7 + $0x368] sm:$0xff]  ;;  %v6460_v45 = vld [vmem:[%s8725_s7 + $0x330] sm:$0xff]  ;;  %v6466_v35 = vld [vmem:[%s8725_s7 + $0x360] sm:$0xff] }
 0xa87   :  { %4704 = vmatpush.bf16.msrb.mxu0 %v6436_v34  ;;  %4685 = vmatpush.bf16.msra.mxu2 %v6429_v52  ;;  %v6459_v34 = vld [vmem:[%s8725_s7 + $0x328] sm:$0xff]  ;;  %v6481_v52 = vld [vmem:[%s8725_s7 + $0x3d8] sm:$0xff] }
 0xa88   :  { %v2583_v57 = vxor.u32 2147483648, %v2578_v33  ;;  %v3526_v41 = vsel %vm3524_vm12, %v2586_v9, %v2578_v33  ;;  %v2587_v1 = vsel %vm2585_vm0, %v2586_v9, %v2578_v33  ;;  %v6458_v33 = vld [vmem:[%s8725_s7 + $0x320] sm:$0xff] }
 0xa89   :  { %v6474_v9 = vld [vmem:[%s8725_s7 + $0x3a0] sm:$0xff] }
 0xa8a   :  { %4553 = vmatpush.bf16.msrb.mxu1 %v6445_v30  ;;  %v3523_v14 = vsel %vm3521_vm13, %v2570_v29, %v2583_v57  ;;  %v2584_v54 = vsel %vm2582_vm15, %v2570_v29, %v2583_v57  ;;  %4573 = vmatpush.bf16.msra.mxu3 %v6451_v25  ;;  %v6476_v29 = vld [vmem:[%s8725_s7 + $0x3b0] sm:$0xff]  ;;  %v6465_v30 = vld [vmem:[%s8725_s7 + $0x358] sm:$0xff] }
 0xa8b   :  { %v3527_v28 = vsel %vm3520_vm10, %v3523_v14, %v3526_v41  ;;  %v2588_v38 = vsel %vm2581_vm11, %v2584_v54, %v2587_v1  ;;  %4705 = vmatpush.bf16.msrb.mxu0 %v6435_v20  ;;  %4686 = vmatpush.bf16.msra.mxu2 %v6428_v46  ;;  %v6480_v57 = vld [vmem:[%s8725_s7 + $0x3d0] sm:$0xff]  ;;  %v6457_v20 = vld [vmem:[%s8725_s7 + $0x318] sm:$0xff]  ;;  %v6463_v14 = vld [vmem:[%s8725_s7 + $0x348] sm:$0xff] }
 0xa8c   :  { %v3528_v53 = vsel %vm2579_vm2, nan, %v3527_v28  ;;  %v2589_v63 = vsel %vm2579_vm2, nan, %v2588_v38  ;;  %v6464_v25 = vld [vmem:[%s8725_s7 + $0x350] sm:$0xff]  ;;  %v6473_v46 = vld [vmem:[%s8725_s7 + $0x398] sm:$0xff]  ;;  %v6478_v1 = vld [vmem:[%s8725_s7 + $0x3c0] sm:$0xff] }
 0xa8d   :  { %v3688_v47 = vmul.f32 %v6559_v36, %v3528_v53  ;;  %v2748_v11 = vmul.f32 %v6559_v36, %v2589_v63  ;;  %v6456_v41 = vld [vmem:[%s8725_s7 + $0x310] sm:$0xff]  ;;  %v6462_v28 = vld [vmem:[%s8725_s7 + $0x340] sm:$0xff]  ;;  %v6455_v38 = vld [vmem:[%s8725_s7 + $0x308] sm:$0xff] }
 0xa8e   :  { %4554 = vmatpush.bf16.msrb.mxu1 %v6444_v50  ;;  %4574 = vmatpush.bf16.msra.mxu3 %v6450_v2  ;;  %v6479_v50 = vld [vmem:[%s8725_s7 + $0x3c8] sm:$0xff]  ;;  %v6472_v54 = vld [vmem:[%s8725_s7 + $0x390] sm:$0xff]  ;;  %v6454_v53 = vld [vmem:[%s8725_s7 + $0x300] sm:$0xff] }
 0xa8f   :  { %v8498_v13 = vpack.c.bf16 %v3688_v47, %v3688_v47  ;;  %v8500_v16 = vpack.c.bf16 %v2748_v11, %v2748_v11  ;;  %4706 = vmatpush.bf16.msrb.mxu0 %v6434_v24  ;;  %4687 = vmatpush.bf16.msra.mxu2 %v6427_v3  ;;  %v6471_v36 = vld [vmem:[%s8725_s7 + $0x388] sm:$0xff]  ;;  %v6470_v63 = vld [vmem:[%s8725_s7 + $0x380] sm:$0xff] }
 0xa91   :  { %3868 = vmatmul.bf16.gmra.mxu1 %v8498_v13  ;;  %4000 = vmatmul.bf16.gmra.mxu2 %v8500_v16 }
 0xa92   :  { %4555 = vmatpush.bf16.msrb.mxu1 %v6443_v55  ;;  %4575 = vmatpush.bf16.msra.mxu3 %v6449_v4 }
 0xa93   :  { %4707 = vmatpush.bf16.msrb.mxu0 %v6433_v56  ;;  %4688 = vmatpush.bf16.msra.mxu2 %v6426_v60 }
 0xa95   :  { %4235 = vmatmul.bf16.gmra.mxu3 %v8378_v21  ;;  %4367 = vmatmul.bf16.gmra.mxu0 %v8380_v40 }
 0xa96   :  { %4556 = vmatpush.bf16.msrb.mxu1 %v6442_v43  ;;  %4576 = vmatpush.bf16.msra.mxu3 %v6448_v37 }
 0xa97   :  { %4708 = vmatpush.bf16.msrb.mxu0 %v6432_v42  ;;  %4689 = vmatpush.bf16.msra.mxu2 %v6425_v0  ;;  %v4026_v42 = vld [vmem:[#allocation6] sm:$0xff] }
 0xa9a   :  { %4557 = vmatpush.bf16.msrb.mxu1 %v6441_v23  ;;  %4577 = vmatpush.bf16.msra.mxu3 %v6447_v31 }
 0xa9b   :  { %4709 = vmatpush.bf16.msrb.mxu0 %v6431_v6  ;;  %4690 = vmatpush.bf16.msra.mxu2 %v6424_v15  ;;  %v4027_v6 = vld [vmem:[#allocation6 + $0x8] sm:$0x1] }
 0xa9e   :  { %4558 = vmatpush.bf16.msrb.mxu1 %v6440_v49  ;;  %4578 = vmatpush.bf16.msra.mxu3 %v6446_v44 }
 0xa9f   :  { %4710 = vmatpush.bf16.msrb.mxu0 %v6430_v7  ;;  %4691 = vmatpush.bf16.msra.mxu2 %v6423_v12 }
 0xaa1   :  { %4212 = vmatmul.bf16.vlgmr.msra.gmra.mxu1 %v8354_v62  ;;  %4344 = vmatmul.bf16.vlgmr.msrb.gmra.mxu2 %v8356_v18 }
 0xaa2   :  { %4559 = vmatpush.bf16.msrb.mxu1 %v6439_v17  ;;  %4920 = vmatpush.bf16.msrb.mxu3 %v6485_v26 }
 0xaa3   :  { %5052 = vmatpush.bf16.msra.mxu0 %v6469_v27  ;;  %4692 = vmatpush.bf16.msra.mxu2 %v6422_v51 }
 0xaa5   :  { %4579 = vmatmul.bf16.vlgmr.msra.gmra.mxu3 %v8259_v58  ;;  %4711 = vmatmul.bf16.vlgmr.msrb.gmra.mxu0 %v8263_v10 }
 0xaa6   :  { %4560 = vmatpush.bf16.msrb.mxu1 %v6438_v22  ;;  %4921 = vmatpush.bf16.msrb.mxu3 %v6484_v61 }
 0xaa7   :  { %5053 = vmatpush.bf16.msra.mxu0 %v6468_v19  ;;  %5034 = vmatpush.bf16.msrb.mxu2 %v6461_v5 }
 0xaaa   :  { %4902 = vmatpush.bf16.msra.mxu1 %v6477_v32  ;;  %4922 = vmatpush.bf16.msrb.mxu3 %v6483_v59 }
 0xaab   :  { %5054 = vmatpush.bf16.msra.mxu0 %v6467_v48  ;;  %5035 = vmatpush.bf16.msrb.mxu2 %v6460_v45  ;;  %v4034_v48 = vld [vmem:[#allocation6 + $0xc] sm:$0xff]  ;;  %v4035_v45 = vld [vmem:[#allocation6 + $0x14] sm:$0x1] }
 0xaae   :  { %4903 = vmatpush.bf16.msra.mxu1 %v6476_v29  ;;  %4923 = vmatpush.bf16.msrb.mxu3 %v6482_v8 }
 0xaaf   :  { %5055 = vmatpush.bf16.msra.mxu0 %v6466_v35  ;;  %5036 = vmatpush.bf16.msrb.mxu2 %v6459_v34 }
 0xab1   :  { %4217 = vmatmul.bf16.gmra.mxu1 %v8498_v13  ;;  %4349 = vmatmul.bf16.gmra.mxu2 %v8500_v16 }
 0xab2   :  { %4904 = vmatpush.bf16.msra.mxu1 %v6475_v39  ;;  %4924 = vmatpush.bf16.msrb.mxu3 %v6481_v52 }
 0xab3   :  { %5056 = vmatpush.bf16.msra.mxu0 %v6465_v30  ;;  %5037 = vmatpush.bf16.msrb.mxu2 %v6458_v33 }
 0xab5   :  { %4584 = vmatmul.bf16.gmra.mxu3 %v8378_v21  ;;  %4716 = vmatmul.bf16.gmra.mxu0 %v8380_v40 }
 0xab6   :  { %4905 = vmatpush.bf16.msra.mxu1 %v6474_v9  ;;  %4925 = vmatpush.bf16.msrb.mxu3 %v6480_v57 }
 0xab7   :  { %5057 = vmatpush.bf16.msra.mxu0 %v6464_v25  ;;  %5038 = vmatpush.bf16.msrb.mxu2 %v6457_v20 }
 0xaba   :  { %4906 = vmatpush.bf16.msra.mxu1 %v6473_v46  ;;  %4926 = vmatpush.bf16.msrb.mxu3 %v6479_v50 }
 0xabb   :  { %5058 = vmatpush.bf16.msra.mxu0 %v6463_v14  ;;  %5039 = vmatpush.bf16.msrb.mxu2 %v6456_v41 }
 0xabe   :  { %4907 = vmatpush.bf16.msra.mxu1 %v6472_v54  ;;  %4927 = vmatpush.bf16.msrb.mxu3 %v6478_v1 }
 0xabf   :  { %5059 = vmatpush.bf16.msra.mxu0 %v6462_v28  ;;  %5040 = vmatpush.bf16.msrb.mxu2 %v6455_v38 }
 0xac1   :  { %4561 = vmatmul.bf16.vlgmr.msrb.gmra.mxu1 %v8354_v62  ;;  %4693 = vmatmul.bf16.vlgmr.msra.gmra.mxu2 %v8356_v18 }
 0xac2   :  { %4908 = vmatpush.bf16.msra.mxu1 %v6471_v36 }
 0xac3   :  { %5041 = vmatpush.bf16.msrb.mxu2 %v6454_v53 }
 0xac5   :  { %4928 = vmatmul.bf16.vlgmr.msrb.gmra.mxu3 %v8259_v58  ;;  %5060 = vmatmul.bf16.vlgmr.msra.gmra.mxu0 %v8263_v10 }
 0xac6   :  { %4909 = vmatpush.bf16.msra.mxu1 %v6470_v63 }
 0xad1   :  { %4566 = vmatmul.bf16.gmra.mxu1 %v8498_v13  ;;  %4698 = vmatmul.bf16.gmra.mxu2 %v8500_v16 }
 0xad5   :  { %4933 = vmatmul.bf16.gmra.mxu3 %v8378_v21  ;;  %5065 = vmatmul.bf16.gmra.mxu0 %v8380_v40 }
 0xae1   :  { %4910 = vmatmul.bf16.vlgmr.msra.gmra.mxu1 %v8354_v62  ;;  %5042 = vmatmul.bf16.vlgmr.msrb.gmra.mxu2 %v8356_v18 }
 0xae2   :  { %v4014_v2 = vpop.f32.mrf.mxu0 }
 0xae7   :  { %v3882_v24 = vpop.f32.mrf.mxu3 }
 0xaea   :  { %v4016_v47 = vpop.f32.mrf.mxu0 }
 0xaed   :  { %v3864_v11 = vpop.f32.mrf.mxu1 }
 0xaee   :  { %v3883_v58 = vadd.f32 %v3882_v24, %v3864_v11 }
 0xaef   :  { %v3884_v3 = vpop.f32.mrf.mxu3 }
 0xaf1   :  { %4915 = vmatmul.bf16.gmra.mxu1 %v8498_v13  ;;  %5047 = vmatmul.bf16.gmra.mxu2 %v8500_v16 }
 0xaf2   :  { %v4019_v10 = vpop.f32.mrf.mxu0 }
 0xaf3   :  { %v3996_v55 = vpop.f32.mrf.mxu2 }
 0xaf4   :  { %v3997_v4 = vadd.f32 %v3996_v55, %v3883_v58 }
 0xaf5   :  { %v3866_v56 = vpop.f32.mrf.mxu1 }
 0xaf6   :  { %v4015_v21 = vadd.f32 %v4014_v2, %v3997_v4  ;;  %v3885_v40 = vadd.f32 %v3884_v3, %v3866_v56  ;;  %v4376_v3 = vld [vmem:[#allocation6 + $0x9] sm:$0x1] }
 0xaf8   :  { %4023 = vst.msk [vmem:[#allocation5] sm:$0xff] %vm52_vm3, %v4015_v21  ;;  %v3887_v62 = vpop.f32.mrf.mxu3 }
 0xafa   :  { %v4021_v18 = vpop.f32.mrf.mxu0 }
 0xafb   :  { %v3998_v60 = vpop.f32.mrf.mxu2 }
 0xafc   :  { %v3999_v43 = vadd.f32 %v3998_v60, %v3885_v40  ;;  %v4384_v40 = vld [vmem:[#allocation6 + $0x15] sm:$0x1] }
 0xafe   :  { %v4017_v37 = vadd.f32 %v4016_v47, %v3999_v43 }
 0xaff   :  { %v4028_v0 = vld [vmem:[#allocation5] sm:$0xff] }
 0xb00   :  { %4024 = vst.msk [vmem:[#allocation5 + $0x8] sm:$0xff] %vm52_vm3, %v4017_v37  ;;  %v3889_v13 = vpop.f32.mrf.mxu3  ;;  %v4030_v16 = vadd.f32 %v4028_v0, %v4026_v42 }
 0xb02   :  { %v4363_v23 = vpop.f32.mrf.mxu0  ;;  %4032 = vst.msk [vmem:[#allocation6] sm:$0xff] %vm52_vm3, %v4030_v16 }
 0xb07   :  { %v4029_v15 = vld [vmem:[#allocation5 + $0x8] sm:$0x1] }
 0xb08   :  { %v4231_v31 = vpop.f32.mrf.mxu3  ;;  %v4031_v44 = vadd.f32 %v4029_v15, %v4027_v6 }
 0xb0a   :  { %v4365_v49 = vpop.f32.mrf.mxu0  ;;  %4033 = vst.msk [vmem:[#allocation6 + $0x8] sm:$0x1] %vm387_vm5, %v4031_v44 }
 0xb0e   :  { %v3869_v7 = vpop.f32.mrf.mxu1 }
 0xb0f   :  { %v3888_v26 = vadd.f32 %v3887_v62, %v3869_v7 }
 0xb10   :  { %v4233_v12 = vpop.f32.mrf.mxu3 }
 0xb11   :  { %v4375_v28 = vld [vmem:[#allocation6 + $0x1] sm:$0xff] }
 0xb12   :  { %v4368_v17 = vpop.f32.mrf.mxu0 }
 0xb14   :  { %v4001_v27 = vpop.f32.mrf.mxu2 }
 0xb15   :  { %v4002_v51 = vadd.f32 %v4001_v27, %v3888_v26 }
 0xb16   :  { %v3871_v22 = vpop.f32.mrf.mxu1 }
 0xb17   :  { %v4020_v61 = vadd.f32 %v4019_v10, %v4002_v51 }
 0xb18   :  { %v4236_v19 = vpop.f32.mrf.mxu3 }
 0xb19   :  { %4025 = vst.msk [vmem:[#allocation5 + $0x10] sm:$0x3] %vm719_vm7, %v4020_v61 }
 0xb1a   :  { %v4370_v5 = vpop.f32.mrf.mxu0 }
 0xb1c   :  { %v4003_v32 = vpop.f32.mrf.mxu2 }
 0xb1e   :  { %v4213_v59 = vpop.f32.mrf.mxu1 }
 0xb1f   :  { %v4232_v30 = vadd.f32 %v4231_v31, %v4213_v59 }
 0xb20   :  { %v4036_v29 = vld [vmem:[#allocation5 + $0x9] sm:$0xff]  ;;  %v4037_v8 = vld [vmem:[#allocation5 + $0x11] sm:$0x1]  ;;  %v4238_v35 = vpop.f32.mrf.mxu3 }
 0xb21   :  { %v4038_v34 = vadd.f32 %v4036_v29, %v4034_v48  ;;  %v4039_v39 = vadd.f32 %v4037_v8, %v4035_v45  ;;  %v4725_v29 = vld [vmem:[#allocation6 + $0xa] sm:$0x1] }
 0xb22   :  { %v4712_v52 = vpop.f32.mrf.mxu0 }
 0xb23   :  { %4040 = vst.msk [vmem:[#allocation6 + $0xc] sm:$0xff] %vm52_vm3, %v4038_v34 }
 0xb24   :  { %v4345_v33 = vpop.f32.mrf.mxu2  ;;  %4041 = vst.msk [vmem:[#allocation6 + $0x14] sm:$0x1] %vm387_vm5, %v4039_v39 }
 0xb25   :  { %v4346_v9 = vadd.f32 %v4345_v33, %v4232_v30  ;;  %v4733_v33 = vld [vmem:[#allocation6 + $0x16] sm:$0x1] }
 0xb26   :  { %v4215_v57 = vpop.f32.mrf.mxu1 }
 0xb27   :  { %v4364_v25 = vadd.f32 %v4363_v23, %v4346_v9  ;;  %v4234_v50 = vadd.f32 %v4233_v12, %v4215_v57 }
 0xb28   :  { %v4580_v20 = vpop.f32.mrf.mxu3 }
 0xb29   :  { %4372 = vst.msk [vmem:[#allocation5] sm:$0xff] %vm52_vm3, %v4364_v25 }
 0xb2a   :  { %v4714_v46 = vpop.f32.mrf.mxu0 }
 0xb2b   :  { %v4383_v18 = vld [vmem:[#allocation6 + $0xd] sm:$0xff] }
 0xb2c   :  { %v4347_v14 = vpop.f32.mrf.mxu2 }
 0xb2d   :  { %v4348_v41 = vadd.f32 %v4347_v14, %v4234_v50 }
 0xb2e   :  { %v4218_v54 = vpop.f32.mrf.mxu1 }
 0xb2f   :  { %v4366_v1 = vadd.f32 %v4365_v49, %v4348_v41  ;;  %v4237_v2 = vadd.f32 %v4236_v19, %v4218_v54 }
 0xb30   :  { %v4377_v38 = vld [vmem:[#allocation5] sm:$0xff]  ;;  %v4582_v36 = vpop.f32.mrf.mxu3 }
 0xb31   :  { %4373 = vst.msk [vmem:[#allocation5 + $0x8] sm:$0xff] %vm52_vm3, %v4366_v1  ;;  %v4379_v53 = vadd.f32 %v4377_v38, %v4375_v28 }
 0xb32   :  { %v4717_v63 = vpop.f32.mrf.mxu0 }
 0xb33   :  { %4381 = vst.msk [vmem:[#allocation6 + $0x1] sm:$0xff] %vm52_vm3, %v4379_v53 }
 0xb34   :  { %v4350_v24 = vpop.f32.mrf.mxu2 }
 0xb35   :  { %v4351_v47 = vadd.f32 %v4350_v24, %v4237_v2 }
 0xb36   :  { %v4220_v11 = vpop.f32.mrf.mxu1 }
 0xb37   :  { %v4369_v58 = vadd.f32 %v4368_v17, %v4351_v47 }
 0xb38   :  { %v4378_v10 = vld [vmem:[#allocation5 + $0x8] sm:$0x1]  ;;  %v4585_v55 = vpop.f32.mrf.mxu3 }
 0xb39   :  { %4374 = vst.msk [vmem:[#allocation5 + $0x10] sm:$0x3] %vm719_vm7, %v4369_v58  ;;  %v4380_v4 = vadd.f32 %v4378_v10, %v4376_v3 }
 0xb3a   :  { %v4719_v21 = vpop.f32.mrf.mxu0 }
 0xb3b   :  { %4382 = vst.msk [vmem:[#allocation6 + $0x9] sm:$0x1] %vm387_vm5, %v4380_v4  ;;  %v5074_v4 = vld [vmem:[#allocation6 + $0xb] sm:$0x1] }
 0xb3c   :  { %v4352_v56 = vpop.f32.mrf.mxu2 }
 0xb3e   :  { %v4562_v62 = vpop.f32.mrf.mxu1 }
 0xb3f   :  { %v4581_v13 = vadd.f32 %v4580_v20, %v4562_v62 }
 0xb40   :  { %v4385_v60 = vld [vmem:[#allocation5 + $0x9] sm:$0xff]  ;;  %v4386_v43 = vld [vmem:[#allocation5 + $0x11] sm:$0x1]  ;;  %v4587_v37 = vpop.f32.mrf.mxu3 }
 0xb41   :  { %v4387_v42 = vadd.f32 %v4385_v60, %v4383_v18  ;;  %v4388_v0 = vadd.f32 %v4386_v43, %v4384_v40  ;;  %v5090_v40 = vld [vmem:[%s8726_s11] sm:$0xff] }
 0xb42   :  { %v5061_v16 = vpop.f32.mrf.mxu0  ;;  %v4724_v51 = vld [vmem:[#allocation6 + $0x2] sm:$0xff] }
 0xb43   :  { %4389 = vst.msk [vmem:[#allocation6 + $0xd] sm:$0xff] %vm52_vm3, %v4387_v42  ;;  %v5082_v42 = vld [vmem:[#allocation6 + $0x17] sm:$0x1] }
 0xb44   :  { %v4694_v23 = vpop.f32.mrf.mxu2  ;;  %4390 = vst.msk [vmem:[#allocation6 + $0x15] sm:$0x1] %vm387_vm5, %v4388_v0 }
 0xb45   :  { %v4695_v31 = vadd.f32 %v4694_v23, %v4581_v13 }
 0xb46   :  { %v4564_v6 = vpop.f32.mrf.mxu1 }
 0xb47   :  { %v4713_v15 = vadd.f32 %v4712_v52, %v4695_v31  ;;  %v4583_v44 = vadd.f32 %v4582_v36, %v4564_v6 }
 0xb48   :  { %v4929_v49 = vpop.f32.mrf.mxu3 }
 0xb49   :  { %4721 = vst.msk [vmem:[#allocation5] sm:$0xff] %vm52_vm3, %v4713_v15 }
 0xb4a   :  { %v5063_v7 = vpop.f32.mrf.mxu0 }
 0xb4b   :  { %v4732_v25 = vld [vmem:[#allocation6 + $0xe] sm:$0xff] }
 0xb4c   :  { %v4696_v12 = vpop.f32.mrf.mxu2 }
 0xb4d   :  { %v4697_v17 = vadd.f32 %v4696_v12, %v4583_v44 }
 0xb4e   :  { %v4567_v26 = vpop.f32.mrf.mxu1 }
 0xb4f   :  { %v4715_v27 = vadd.f32 %v4714_v46, %v4697_v17  ;;  %v4586_v19 = vadd.f32 %v4585_v55, %v4567_v26 }
 0xb50   :  { %v4726_v22 = vld [vmem:[#allocation5] sm:$0xff]  ;;  %v4931_v5 = vpop.f32.mrf.mxu3 }
 0xb51   :  { %4722 = vst.msk [vmem:[#allocation5 + $0x8] sm:$0xff] %vm52_vm3, %v4715_v27  ;;  %v4728_v61 = vadd.f32 %v4726_v22, %v4724_v51 }
 0xb52   :  { %v5066_v32 = vpop.f32.mrf.mxu0 }
 0xb53   :  { %4730 = vst.msk [vmem:[#allocation6 + $0x2] sm:$0xff] %vm52_vm3, %v4728_v61 }
 0xb54   :  { %v4699_v59 = vpop.f32.mrf.mxu2 }
 0xb55   :  { %v4700_v48 = vadd.f32 %v4699_v59, %v4586_v19 }
 0xb56   :  { %v4569_v45 = vpop.f32.mrf.mxu1 }
 0xb57   :  { %v4718_v8 = vadd.f32 %v4717_v63, %v4700_v48 }
 0xb58   :  { %v4727_v35 = vld [vmem:[#allocation5 + $0x8] sm:$0x1]  ;;  %v4934_v30 = vpop.f32.mrf.mxu3 }
 0xb59   :  { %4723 = vst.msk [vmem:[#allocation5 + $0x10] sm:$0x3] %vm719_vm7, %v4718_v8  ;;  %v4729_v34 = vadd.f32 %v4727_v35, %v4725_v29 }
 0xb5a   :  { %v5068_v39 = vpop.f32.mrf.mxu0 }
 0xb5b   :  { %4731 = vst.msk [vmem:[#allocation6 + $0xa] sm:$0x1] %vm387_vm5, %v4729_v34 }
 0xb5c   :  { %v4701_v52 = vpop.f32.mrf.mxu2 }
 0xb5e   :  { %v4911_v9 = vpop.f32.mrf.mxu1 }
 0xb5f   :  { %v4930_v14 = vadd.f32 %v4929_v49, %v4911_v9 }
 0xb60   :  { %v4735_v57 = vld [vmem:[#allocation5 + $0x11] sm:$0x1]  ;;  %v4734_v20 = vld [vmem:[#allocation5 + $0x9] sm:$0xff]  ;;  %v4936_v1 = vpop.f32.mrf.mxu3 }
 0xb61   :  { %v4737_v46 = vadd.f32 %v4735_v57, %v4733_v33  ;;  %v4736_v50 = vadd.f32 %v4734_v20, %v4732_v25 }
 0xb62   :  { %v5073_v11 = vld [vmem:[#allocation6 + $0x3] sm:$0xff] }
 0xb63   :  { %4739 = vst.msk [vmem:[#allocation6 + $0x16] sm:$0x1] %vm387_vm5, %v4737_v46 }
 0xb64   :  { %v5043_v41 = vpop.f32.mrf.mxu2  ;;  %4738 = vst.msk [vmem:[#allocation6 + $0xe] sm:$0xff] %vm52_vm3, %v4736_v50 }
 0xb65   :  { %v5044_v54 = vadd.f32 %v5043_v41, %v4930_v14 }
 0xb66   :  { %v4913_v28 = vpop.f32.mrf.mxu1 }
 0xb67   :  { %v5062_v38 = vadd.f32 %v5061_v16, %v5044_v54  ;;  %v4932_v36 = vadd.f32 %v4931_v5, %v4913_v28 }
 0xb69   :  { %5070 = vst.msk [vmem:[#allocation5] sm:$0xff] %vm52_vm3, %v5062_v38 }
 0xb6b   :  { %v5081_v0 = vld [vmem:[#allocation6 + $0xf] sm:$0xff] }
 0xb6c   :  { %v5045_v53 = vpop.f32.mrf.mxu2 }
 0xb6d   :  { %v5046_v63 = vadd.f32 %v5045_v53, %v4932_v36 }
 0xb6e   :  { %v4916_v2 = vpop.f32.mrf.mxu1 }
 0xb6f   :  { %v5064_v24 = vadd.f32 %v5063_v7, %v5046_v63  ;;  %v4935_v58 = vadd.f32 %v4934_v30, %v4916_v2 }
 0xb70   :  { %v5075_v47 = vld [vmem:[#allocation5] sm:$0xff] }
 0xb71   :  { %5071 = vst.msk [vmem:[#allocation5 + $0x8] sm:$0xff] %vm52_vm3, %v5064_v24  ;;  %v5077_v3 = vadd.f32 %v5075_v47, %v5073_v11 }
 0xb73   :  { %5079 = vst.msk [vmem:[#allocation6 + $0x3] sm:$0xff] %vm52_vm3, %v5077_v3 }
 0xb74   :  { %v5048_v10 = vpop.f32.mrf.mxu2 }
 0xb75   :  { %v5049_v55 = vadd.f32 %v5048_v10, %v4935_v58 }
 0xb76   :  { %v4918_v21 = vpop.f32.mrf.mxu1 }
 0xb77   :  { %v5067_v56 = vadd.f32 %v5066_v32, %v5049_v55 }
 0xb78   :  { %v5076_v62 = vld [vmem:[#allocation5 + $0x8] sm:$0x1] }
 0xb79   :  { %v5078_v18 = vadd.f32 %v5076_v62, %v5074_v4  ;;  %5072 = vst.msk [vmem:[#allocation5 + $0x10] sm:$0x3] %vm719_vm7, %v5067_v56 }
 0xb7a   :  { %v5089_v60 = vld [vmem:[#allocation6 + $0x2] sm:$0xff] }
 0xb7b   :  { %5080 = vst.msk [vmem:[#allocation6 + $0xb] sm:$0x1] %vm387_vm5, %v5078_v18  ;;  %v5091_v43 = vmul.f32 %v5090_v40, %v5089_v60 }
 0xb7c   :  { %v5050_v37 = vpop.f32.mrf.mxu2 }
 0xb7d   :  { %5092 = vst.msk [vmem:[%s8727_s12] sm:$0xff] %vm52_vm3, %v5091_v43 }
 0xb80   :  { %v5083_v13 = vld [vmem:[#allocation5 + $0x9] sm:$0xff]  ;;  %v5084_v16 = vld [vmem:[#allocation5 + $0x11] sm:$0x1] }
 0xb81   :  { %v5085_v23 = vadd.f32 %v5083_v13, %v5081_v0  ;;  %v5086_v31 = vadd.f32 %v5084_v16, %v5082_v42 }
 0xb83   :  { %5087 = vst.msk [vmem:[#allocation6 + $0xf] sm:$0xff] %vm52_vm3, %v5085_v23 }
 0xb84   :  { %5088 = vst.msk [vmem:[#allocation6 + $0x17] sm:$0x1] %vm387_vm5, %v5086_v31 }
 0xb8a   :  { %v5093_v6 = vld [vmem:[#allocation6 + $0xe] sm:$0xff] }
 0xb8b   :  { %v5095_v15 = vmul.f32 %v5093_v6, %v5090_v40 }
 0xb8d   :  { %6281 = vst.msk [vmem:[%s8727_s12 + $0x8] sm:$0xff] %vm52_vm3, %v5095_v15 }

</bundles_post_ra>
